<compile_context>
chip_gen: v6e
topology: v6e:2x2x1
jax: 0.10.0
libtpu: 0.0.40
codegen_flags: <defaults>
</compile_context>

<pallas_src>
import jax
import jax.numpy as jnp
import numpy as np
from jax.experimental import pallas as pl
from jax.experimental.pallas import tpu as pltpu


def _round_up(a, b):
    return ((a + b - 1) // b) * b


def _cdiv(a, b):
    return (a + b - 1) // b


def _sine_layer_kernel(x_ref, wt_ref, b_ref, o_ref):
    # x_ref : (TM, IN)  bf16 tile of input rows
    # wt_ref: (IN, TN)  bf16 omega-prescaled W^T tile
    # b_ref : (1, TN)   f32 omega-prescaled bias row
    # o_ref : (TM, TN)
    z = jnp.dot(x_ref[...], wt_ref[...], preferred_element_type=jnp.float32)
    z = z + b_ref[...]                      # broadcast (1, TN) -> (TM, TN), f32
    o_ref[...] = jnp.sin(z).astype(o_ref.dtype)


def sine_layer_pallas(x, weight, bias, omega_0=30.0, *,
                      tile_m=1024, compute_dtype=jnp.bfloat16,
                      vmem_budget_bytes=12 * 1024 * 1024):
    """Compute sin(omega_0 * (x @ weight.T + bias)) with a Pallas TPU kernel.

    x:      (M, in_features)
    weight: (out_features, in_features)   (PyTorch nn.Linear layout)
    bias:   (out_features,)
    """
    M, in_features = x.shape
    out_features, in_features_w = weight.shape
    assert in_features == in_features_w
    out_dtype = x.dtype

    # Fold omega_0 into weight/bias once: kernel computes sin(x @ W' + b').
    wt = (jnp.asarray(weight, jnp.float32).T * omega_0).astype(compute_dtype)
    b2 = (jnp.asarray(bias, jnp.float32) * omega_0).reshape(1, out_features)
    x_c = x.astype(compute_dtype)

    op_bytes = np.dtype(compute_dtype).itemsize

    # ---- N (output-feature) tiling: only for wide layers, in 512 chunks.
    if out_features > 1024 and out_features % 512 == 0:
        tn = 512
    else:
        tn = out_features
    gn = out_features // tn

    # ---- M (row) tiling.
    tm = max(8, min(int(tile_m), _round_up(M, 8)))
    tm = _round_up(tm, 8)
    # Keep at least two row tiles so v7x's two TensorCores both get work.
    if M > 8 and _cdiv(M, tm) < 2:
        tm = max(8, _round_up(_cdiv(M, 2), 8))

    def _tile_bytes(tm_):
        return (2 * tm_ * in_features * op_bytes     # x tile (double buffered)
                + 2 * tm_ * tn * 4                   # out tile f32 (double buffered)
                + 2 * in_features * tn * op_bytes    # W' tile (<= 2 buffers)
                + 2 * tn * 4)                        # bias tile

    while tm > 8 and _tile_bytes(tm) > vmem_budget_bytes:
        tm = max(8, _round_up(tm // 2, 8))

    # Pad ragged batches instead of asserting divisibility.
    m_pad = _round_up(M, tm)
    if m_pad != M:
        x_c = jnp.pad(x_c, ((0, m_pad - M), (0, 0)))
    gm = m_pad // tm

    w_is_resident = (gn == 1)

    def _call(single_buffer_invariants):
        w_kw, b_kw = {}, {}
        if single_buffer_invariants and w_is_resident and hasattr(pl, "Buffered"):
            # Invariant operands (constant index_map): one VMEM copy is enough.
            w_kw = dict(pipeline_mode=pl.Buffered(1))
            b_kw = dict(pipeline_mode=pl.Buffered(1))
        in_specs = [
            pl.BlockSpec((tm, in_features), lambda i, j: (i, 0)),          # x rows
            pl.BlockSpec((in_features, tn), lambda i, j: (0, j), **w_kw),  # W'
            pl.BlockSpec((1, tn), lambda i, j: (0, j), **b_kw),            # bias
        ]
        out_specs = pl.BlockSpec((tm, tn), lambda i, j: (i, j))
        return pl.pallas_call(
            _sine_layer_kernel,
            out_shape=jax.ShapeDtypeStruct((m_pad, out_features), out_dtype),
            grid_spec=pltpu.PrefetchScalarGridSpec(
                num_scalar_prefetch=0,
                grid=(gm, gn),
                in_specs=in_specs,
                out_specs=out_specs,
            ),
            compiler_params=pltpu.CompilerParams(
                dimension_semantics=("parallel", "parallel")),
        )(x_c, wt, b2)

    try:
        y = _call(single_buffer_invariants=True)
    except Exception:
        # pipeline_mode=pl.Buffered(1) not supported on this build; fall back
        # to default double buffering (slightly more VMEM, same result).
        y = _call(single_buffer_invariants=False)

    return y[:M] if m_pad != M else y


def init_sine_layer_params(key, in_features, out_features, is_first, omega_0):
    """Deterministic SIREN init matching SineLayer.init_weights().

    PyTorch only re-initializes the *weight*; the bias keeps the default
    nn.Linear init U(-1/sqrt(in), 1/sqrt(in)), reproduced here.
    """
    kw, kb = jax.random.split(key)
    if is_first:
        bound_w = 1.0 / in_features
    else:
        bound_w = np.sqrt(6.0 / in_features) / omega_0
    weight = jax.random.uniform(
        kw, (out_features, in_features), jnp.float32, -bound_w, bound_w)
    bound_b = 1.0 / np.sqrt(in_features)
    bias = jax.random.uniform(
        kb, (out_features,), jnp.float32, -bound_b, bound_b)
    return weight, bias


if __name__ == "__main__":
    key = jax.random.PRNGKey(0)
    k_x, k_p = jax.random.split(key)

    # Small shapes consistent with a SIREN hidden SineLayer.
    batch = 256          # number of coordinate samples (rows)
    in_features = 16
    out_features = 32
    omega_0 = 30.0
    is_first = False

    x = jax.random.normal(k_x, (batch, in_features), dtype=jnp.float32)
    weight, bias = init_sine_layer_params(
        k_p, in_features, out_features, is_first, omega_0)

    y = sine_layer_pallas(x, weight, bias, omega_0)
    y = jax.block_until_ready(y)

    # Pure-JAX f32 reference (same math as torch.sin(omega_0 * linear(x))).
    # Matmul operands are bf16 in the kernel -> relaxed tolerance.
    y_ref = jnp.sin(omega_0 * (x @ weight.T + bias))
    np.testing.assert_allclose(np.asarray(y), np.asarray(y_ref),
                               rtol=2e-2, atol=2e-2)

    print("KERNEL_OK")
</pallas_src>

<mosaic_0001>
module attributes {stable_mosaic.version = 11 : i64} {
  func.func @_sine_layer_kernel(%arg0: i32, %arg1: i32, %arg2: memref<128x16xbf16, #tpu.memory_space<vmem>>, %arg3: memref<16x32xbf16, #tpu.memory_space<vmem>>, %arg4: memref<1x32xf32, #tpu.memory_space<vmem>>, %arg5: memref<128x32xf32, #tpu.memory_space<vmem>>) attributes {dimension_semantics = [#tpu.dimension_semantics<parallel>, #tpu.dimension_semantics<parallel>], iteration_bounds = array<i64: 2, 1>, scalar_prefetch = 0 : i64, scratch_operands = 0 : i64, tpu.core_type = #tpu.core_type<tc>, window_params = [{transform_indices = @transform_0, window_bounds = array<i64: 128, 16>}, {pipeline_mode = #tpu.pipeline_mode<synchronous>, transform_indices = @transform_1, window_bounds = array<i64: 16, 32>}, {pipeline_mode = #tpu.pipeline_mode<synchronous>, transform_indices = @transform_2, window_bounds = array<i64: 1, 32>}, {transform_indices = @transform_3, window_bounds = array<i64: 128, 32>}]} {
    %c0 = arith.constant 0 : index
    %c0_0 = arith.constant 0 : index
    %0 = vector.load %arg2[%c0, %c0_0] : memref<128x16xbf16, #tpu.memory_space<vmem>>, vector<128x16xbf16>
    %c0_1 = arith.constant 0 : index
    %c0_2 = arith.constant 0 : index
    %1 = vector.load %arg3[%c0_1, %c0_2] : memref<16x32xbf16, #tpu.memory_space<vmem>>, vector<16x32xbf16>
    %cst = arith.constant dense<0.000000e+00> : vector<128x32xf32>
    %2 = tpu.matmul %0, %1, %cst {dimension_numbers = #tpu.dot_dimension_numbers<[1], [0], [0], [1], [0, 0, 1, 1], [], []>} : vector<128x16xbf16>, vector<16x32xbf16>, vector<128x32xf32> -> vector<128x32xf32>
    %c0_3 = arith.constant 0 : index
    %c0_4 = arith.constant 0 : index
    %3 = vector.load %arg4[%c0_3, %c0_4] : memref<1x32xf32, #tpu.memory_space<vmem>>, vector<1x32xf32>
    %4 = vector.broadcast %3 : vector<1x32xf32> to vector<128x32xf32>
    %5 = arith.addf %2, %4 : vector<128x32xf32>
    %6 = math.sin %5 : vector<128x32xf32>
    %c0_5 = arith.constant 0 : index
    %c0_6 = arith.constant 0 : index
    %7 = vector.load %arg5[%c0_5, %c0_6] : memref<128x32xf32, #tpu.memory_space<vmem>>, vector<128x32xf32>
    tpu.vector_store %arg5[%c0_5, %c0_6], %6 {strides = array<i32>} : memref<128x32xf32, #tpu.memory_space<vmem>>, vector<128x32xf32>,
    return
  }
  func.func @transform_0(%arg0: i32, %arg1: i32) -> (i32, i32) {
    %c0_i32 = arith.constant 0 : i32
    %c0_i32_0 = arith.constant 0 : i32
    return %arg0, %c0_i32 : i32, i32
  }
  func.func @transform_1(%arg0: i32, %arg1: i32) -> (i32, i32) {
    %c0_i32 = arith.constant 0 : i32
    %c0_i32_0 = arith.constant 0 : i32
    return %c0_i32, %arg1 : i32, i32
  }
  func.func @transform_2(%arg0: i32, %arg1: i32) -> (i32, i32) {
    %c0_i32 = arith.constant 0 : i32
    %c0_i32_0 = arith.constant 0 : i32
    return %c0_i32, %arg1 : i32, i32
  }
  func.func @transform_3(%arg0: i32, %arg1: i32) -> (i32, i32) {
    %c0_i32 = arith.constant 0 : i32
    return %arg0, %arg1 : i32, i32
  }
}

module attributes {stable_mosaic.version = 11 : i64} {
  func.func @_sine_layer_kernel(%arg0: i32, %arg1: i32, %arg2: memref<128x16xbf16, #tpu.memory_space<vmem>>, %arg3: memref<16x32xbf16, #tpu.memory_space<vmem>>, %arg4: memref<1x32xf32, #tpu.memory_space<vmem>>, %arg5: memref<128x32xf32, #tpu.memory_space<vmem>>) attributes {dimension_semantics = [#tpu.dimension_semantics<parallel>, #tpu.dimension_semantics<parallel>], iteration_bounds = array<i64: 2, 1>, scalar_prefetch = 0 : i64, scratch_operands = 0 : i64, tpu.core_type = #tpu.core_type<tc>, window_params = [{transform_indices = @transform_0, window_bounds = array<i64: 128, 16>}, {transform_indices = @transform_1, window_bounds = array<i64: 16, 32>}, {transform_indices = @transform_2, window_bounds = array<i64: 1, 32>}, {transform_indices = @transform_3, window_bounds = array<i64: 128, 32>}]} {
    %c0 = arith.constant 0 : index
    %c0_0 = arith.constant 0 : index
    %0 = vector.load %arg2[%c0, %c0_0] : memref<128x16xbf16, #tpu.memory_space<vmem>>, vector<128x16xbf16>
    %c0_1 = arith.constant 0 : index
    %c0_2 = arith.constant 0 : index
    %1 = vector.load %arg3[%c0_1, %c0_2] : memref<16x32xbf16, #tpu.memory_space<vmem>>, vector<16x32xbf16>
    %cst = arith.constant dense<0.000000e+00> : vector<128x32xf32>
    %2 = tpu.matmul %0, %1, %cst {dimension_numbers = #tpu.dot_dimension_numbers<[1], [0], [0], [1], [0, 0, 1, 1], [], []>} : vector<128x16xbf16>, vector<16x32xbf16>, vector<128x32xf32> -> vector<128x32xf32>
    %c0_3 = arith.constant 0 : index
    %c0_4 = arith.constant 0 : index
    %3 = vector.load %arg4[%c0_3, %c0_4] : memref<1x32xf32, #tpu.memory_space<vmem>>, vector<1x32xf32>
    %4 = vector.broadcast %3 : vector<1x32xf32> to vector<128x32xf32>
    %5 = arith.addf %2, %4 : vector<128x32xf32>
    %6 = math.sin %5 : vector<128x32xf32>
    %c0_5 = arith.constant 0 : index
    %c0_6 = arith.constant 0 : index
    %7 = vector.load %arg5[%c0_5, %c0_6] : memref<128x32xf32, #tpu.memory_space<vmem>>, vector<128x32xf32>
    tpu.vector_store %arg5[%c0_5, %c0_6], %6 {strides = array<i32>} : memref<128x32xf32, #tpu.memory_space<vmem>>, vector<128x32xf32>,
    return
  }
  func.func @transform_0(%arg0: i32, %arg1: i32) -> (i32, i32) {
    %c0_i32 = arith.constant 0 : i32
    %c0_i32_0 = arith.constant 0 : i32
    return %arg0, %c0_i32 : i32, i32
  }
  func.func @transform_1(%arg0: i32, %arg1: i32) -> (i32, i32) {
    %c0_i32 = arith.constant 0 : i32
    %c0_i32_0 = arith.constant 0 : i32
    return %c0_i32, %arg1 : i32, i32
  }
  func.func @transform_2(%arg0: i32, %arg1: i32) -> (i32, i32) {
    %c0_i32 = arith.constant 0 : i32
    %c0_i32_0 = arith.constant 0 : i32
    return %c0_i32, %arg1 : i32, i32
  }
  func.func @transform_3(%arg0: i32, %arg1: i32) -> (i32, i32) {
    %c0_i32 = arith.constant 0 : i32
    return %arg0, %arg1 : i32, i32
  }
}

</mosaic_0001>

<bundles_post_ra>
// kernel: tpu_custom_call.1
= control target key start
LH: loop header
LB: loop body
LE: loop exit
PB: predicated region body
PF: predicated region fallthrough
CT: control target
= control target key end

     0   :  { %s2545_s12 = smov 0   ;;  %s2547_s13 = smov 0   ;;  %s3750_s0 = inlined_call_operand.vmem [shape: bf16[256,16], index: 0, kind: input, shape index: {}]   ;;  %s3751_s1 = inlined_call_operand.vmem [shape: bf16[16,32], index: 1, kind: input, shape index: {}]   ;;  %s3752_s2 = inlined_call_operand.vmem [shape: f32[1,32], index: 2, kind: input, shape index: {}]   ;;  %s3753_s3 = inlined_call_operand.vmem [shape: f32[256,32], index: 3, kind: output, shape index: {}]  }
   0x1   :  { %s2549_s14 = smov 0  }
   0x2 LB: > { %s25_s15 = sadd.s32 1, %s2513_s13  ;;  %p2208_p0 = scmp.ge.s32.totalorder %s2517_s14, 1  ;;  %s2517_s14 = sphi %s2549_s14, %s13_s14   ;;  %s2513_s13 = sphi %s2547_s13, %s3783_s13   ;;  %s2509_s12 = sphi %s2545_s12, %s3782_s12  }
   0x3   : > { %p27_p1 = scmp.ge.s32.totalorder %s25_s15, 2  ;;  %p169_p2 = scmp.lt.s32.totalorder %s2517_s14, 3 }
   0x5   : > { %s3785_s15 = smov (%p27_p1, %s25_s15), 0  ;;  %p170_p3 = pnand %p2208_p0, %p169_p2 }
   0x6   : > { %s2209_s18 = sshll.u32 (!%p170_p3), %s2509_s12, 4 }
   0x7   : > { %173 = sbr.rel (%p170_p3) target bundleno = 647 (0x287), region = 32  ;;  %p204_p4 = scmp.lt.s32.totalorder (!%p170_p3), %s2209_s18, 31 }
   0xc   : > { %v2420_v0 = vld [vmem:[%s3751_s1] sm:$0xff]   ;;  %s3787_s18 = smov (!%p204_p4, %s2209_s18), 31  ;;  %vm297_vm0 = vcmask 130048   ;;  %v2519_v45 = vmov 683565275  }
   0xd   : > { %2306 = vmatprep.subr.bf16.mxu0 %v2420_v0  ;;  %2324 = vmatprep.subr.bf16.mxu1 %v2420_v0  ;;  %s2210_s19 = sshll.u32 %s3787_s18, 2  ;;  %v2583_v9 = vld [vmem:[%s3752_s2] ss:$0 sm:$0xff]  ;;  %v2520_v49 = vmov 2475754826   ;;  %s2212_s25 = sshll.u32 %s3787_s18, 3 }
   0xe   : > { %2307 = vmatpush3.bf16.msra.mxu0 %v2420_v0  ;;  %2325 = vmatpush3.bf16.msra.mxu1 %v2420_v0  ;;  %s207_s22 = scalar_lea.vmem %s3750_s0, %s2210_s19  ;;  %v2521_v51 = vmov 2131351028   ;;  %v2522_v53 = vmov 2102212464   ;;  %v2523_v55 = vmov 920167782   ;;  %s2876_s28 = scalar_lea.vmem %s3753_s3, %s2212_s25 }
   0xf   : > { %v2421_v1 = vld [vmem:[%s207_s22] sm:$0xff]   ;;  %v2423_v3 = vld [vmem:[%s207_s22 + $0x8] sm:$0xff]   ;;  %v2425_v5 = vld [vmem:[%s207_s22 + $0x10] sm:$0xff]   ;;  %v2524_v62 = vmov 1326507024  }
  0x10   : > { %v2422_v2 = vld [vmem:[%s207_s22 + $0x20] sm:$0xff]   ;;  %2308 = vmatprep.mubr.msk.bf16.mxu0 %vm297_vm0, %v2421_v1  ;;  %v2424_v4 = vld [vmem:[%s207_s22 + $0x28] sm:$0xff]   ;;  %v2426_v6 = vld [vmem:[%s207_s22 + $0x30] sm:$0xff]  }
  0x11   : > { %2316 = vmatprep.mubr.msk.bf16.mxu1 %vm297_vm0, %v2422_v2  ;;  %2309 = vmatmul.mubr.msk.bf16.vlgmr.msra.gmra.mxu0 %vm297_vm0, %v2423_v3  ;;  %v2427_v7 = vld [vmem:[%s207_s22 + $0x18] sm:$0xff]  }
  0x12   : > { %2317 = vmatmul.mubr.msk.bf16.vlgmr.msra.gmra.mxu1 %vm297_vm0, %v2424_v4  ;;  %2312 = vmatprep.mubr.msk.bf16.mxu0 %vm297_vm0, %v2425_v5  ;;  %v2428_v8 = vld [vmem:[%s207_s22 + $0x38] sm:$0xff]  }
  0x13   : > { %2320 = vmatprep.mubr.msk.bf16.mxu1 %vm297_vm0, %v2426_v6 }
  0x19   : > { %2313 = vmatmul.mubr.msk.bf16.gmra.mxu0 %vm297_vm0, %v2427_v7 }
  0x1a   : > { %2321 = vmatmul.mubr.msk.bf16.gmra.mxu1 %vm297_vm0, %v2428_v8 }
  0xd1   : > { %v2310_v10 = vpop.f32.mrf.mxu0 }
  0xd2   : > { %v2586_v11 = vadd.f32 %v2310_v10, %v2583_v9  ;;  %v2318_v12 = vpop.f32.mrf.mxu1 }
  0xd3   : > { %v2589_v13 = vadd.f32 %v2318_v12, %v2583_v9  ;;  %v356_v14 = vpop.f32.mrf.mxu0 }
  0xd4   : > { %v627_v15 = vand.u32 2147483647, %v2586_v11  ;;  %v630_v16 = vand.u32 2139095040, %v2586_v11  ;;  %v2598_v21 = vadd.f32 %v2583_v9, %v356_v14  ;;  %v388_v33 = vpop.f32.mrf.mxu1  ;;  %vm629_vm14 = vcmp.lt.s32.totalorder %v2586_v11, 0 }
  0xd5   : > { %v1459_v17 = vand.u32 2147483647, %v2589_v13  ;;  %v1462_v18 = vand.u32 2139095040, %v2589_v13  ;;  %v2605_v39 = vadd.f32 %v2583_v9, %v388_v33 }
  0xd6   : > { %v631_v19 = vshrl.u32 %v630_v16, 23  ;;  %v634_v20 = vand.u32 8388607, %v627_v15  ;;  %v422_v26 = vand.u32 2139095040, %v2598_v21  ;;  %v419_v31 = vand.u32 2147483647, %v2598_v21 }
  0xd7   : > { %v1463_v22 = vshrl.u32 %v1462_v18, 23  ;;  %v1466_v23 = vand.u32 8388607, %v1459_v17  ;;  %vm2710_vm15 = vcmp.le.f32.partialorder %v627_v15, 0.7853982 }
  0xd8   : > { %v2239_v24 = vadd.s32 4294967169, %v631_v19  ;;  %v635_v27 = vor.u32 8388608, %v634_v20  ;;  %v423_v32 = vshrl.u32 %v422_v26, 23  ;;  %v2615_v43 = vand.u32 8388607, %v419_v31 }
  0xd9   : > { %v2271_v25 = vadd.s32 4294967169, %v1463_v22  ;;  %v1467_v29 = vor.u32 8388608, %v1466_v23 }
  0xda   : > { %v637_v28 = vadd.s32 1, %v2239_v24  ;;  %v2231_v35 = vadd.s32 4294967169, %v423_v32  ;;  %v2607_v40 = vshll.u32 %v635_v27, 8 }
  0xdb   : > { %v1469_v30 = vadd.s32 1, %v2271_v25  ;;  %v2611_v42 = vshll.u32 %v1467_v29, 8 }
  0xdc   : > { %vm638_vm1 = vcmp.gt.s32.totalorder %v637_v28, 0  ;;  %v2618_v48 = vadd.s32 1, %v2231_v35 }
  0xdd   : > { %v639_v34 = vsel %vm638_vm1, %v637_v28, 0  ;;  %vm1470_vm2 = vcmp.gt.s32.totalorder %v1469_v30, 0 }
  0xde   : > { %v640_v36 = vshrl.u32 %v639_v34, 5  ;;  %v641_v37 = vand.u32 31, %v639_v34  ;;  %v1471_v38 = vsel %vm1470_vm2, %v1469_v30, 0  ;;  %vm430_vm12 = vcmp.gt.s32.totalorder %v2618_v48, 0 }
  0xdf   : > { %v2609_v41 = vshrl.u32 %v1471_v38, 5  ;;  %v1473_v47 = vand.u32 31, %v1471_v38 }
  0xe0   : > { %v642_v44 = vsub.s32 32, %v641_v37  ;;  %v644_v46 = vshll.u32 %v2519_v45, %v641_v37  ;;  %v647_v50 = vshll.u32 %v2520_v49, %v641_v37  ;;  %v650_v52 = vshll.u32 %v2521_v51, %v641_v37 }
  0xe1   : > { %v653_v54 = vshll.u32 %v2522_v53, %v641_v37  ;;  %v656_v56 = vshll.u32 %v2523_v55, %v641_v37  ;;  %vm659_vm3 = vcmp.lt.s32.totalorder %v640_v36, 1  ;;  %vm660_vm4 = vcmp.lt.s32.totalorder %v640_v36, 2 }
  0xe2   : > { %v645_v57 = vshrl.u32 %v2520_v49, %v642_v44  ;;  %v648_v58 = vshrl.u32 %v2521_v51, %v642_v44  ;;  %v651_v59 = vshrl.u32 %v2522_v53, %v642_v44  ;;  %v643_v60 = vshrl.u32 %v2519_v45, %v642_v44 }
  0xe3   : > { %v654_v61 = vshrl.u32 %v2523_v55, %v642_v44  ;;  %v657_v63 = vshrl.u32 %v2524_v62, %v642_v44  ;;  %v1474_v3 = vsub.s32 32, %v1473_v47  ;;  %vm661_vm5 = vcmp.lt.s32.totalorder %v640_v36, 3 }
  0xe4   : > { %v646_v0 = vor.u32 %v645_v57, %v644_v46  ;;  %v649_v1 = vor.u32 %v648_v58, %v647_v50  ;;  %v652_v2 = vor.u32 %v651_v59, %v650_v52  ;;  %vm662_vm6 = vcmp.lt.s32.totalorder %v640_v36, 4 }
  0xe5   : > { %v655_v4 = vor.u32 %v654_v61, %v653_v54  ;;  %v658_v5 = vor.u32 %v657_v63, %v656_v56  ;;  %v1476_v18 = vshll.u32 %v2519_v45, %v1473_v47  ;;  %v1477_v22 = vshrl.u32 %v2520_v49, %v1474_v3 }
  0xe6   : > { %v663_v6 = vsel %vm659_vm3, %v643_v60, %v646_v0  ;;  %v664_v7 = vsel %vm662_vm6, %v652_v2, 2102212464  ;;  %v667_v8 = vsel %vm659_vm3, %v646_v0, %v649_v1  ;;  %v671_v10 = vsel %vm659_vm3, %v649_v1, %v652_v2 }
  0xe7   : > { %v665_v12 = vsel %vm661_vm5, %v649_v1, %v664_v7  ;;  %v668_v14 = vsel %vm662_vm6, %v655_v4, 920167782  ;;  %v672_v16 = vsel %vm662_vm6, %v658_v5, 1326507024  ;;  %v1479_v23 = vshll.u32 %v2520_v49, %v1473_v47 }
  0xe8   : > { %v669_v19 = vsel %vm661_vm5, %v652_v2, %v668_v14  ;;  %v673_v20 = vsel %vm661_vm5, %v655_v4, %v672_v16  ;;  %v666_v24 = vsel %vm660_vm4, %v663_v6, %v665_v12  ;;  %v1480_v27 = vshrl.u32 %v2521_v51, %v1474_v3 }
  0xe9   : > { %v670_v25 = vsel %vm660_vm4, %v667_v8, %v669_v19  ;;  %v674_v26 = vsel %vm660_vm4, %v671_v10, %v673_v20  ;;  %v1478_v33 = vor.u32 %v1477_v22, %v1476_v18  ;;  %v1482_v35 = vshll.u32 %v2521_v51, %v1473_v47 }
  0xea   : > { %v2641_v28 = vmul.u32.u64.low %v2607_v40, %v674_v26  ;;  %v2642_v29 = vmul.u32.u64.high %v2607_v40, %v674_v26, %v2641_v28  ;;  %v2645_v30 = vmul.u32.u64.low %v2607_v40, %v670_v25  ;;  %v2646_v32 = vmul.u32.u64.high %v2607_v40, %v670_v25, %v2645_v30 }
  0xeb   : > { %v1481_v34 = vor.u32 %v1480_v27, %v1479_v23  ;;  %v1483_v37 = vshrl.u32 %v2522_v53, %v1474_v3  ;;  %v1475_v38 = vshrl.u32 %v2519_v45, %v1474_v3  ;;  %v1485_v36 = vshll.u32 %v2522_v53, %v1473_v47 }
  0xec   : > { %v1486_v44 = vshrl.u32 %v2523_v55, %v1474_v3  ;;  %v1489_v46 = vshrl.u32 %v2524_v62, %v1474_v3  ;;  %v682_v50 = vmul.u32 %v2607_v40, %v666_v24  ;;  %v1488_v54 = vshll.u32 %v2523_v55, %v1473_v47 }
  0xed   : > { %v1484_v52 = vor.u32 %v1483_v37, %v1482_v35  ;;  %vm1491_vm7 = vcmp.lt.s32.totalorder %v2609_v41, 1  ;;  %vm684_vm8 = vc.u32 %v2642_v29, %v2645_v30  ;;  %v685_v56 = vadd.s32 1, %v2646_v32 }
  0xee   : > { %v1487_v57 = vor.u32 %v1486_v44, %v1485_v36  ;;  %vm1492_vm9 = vcmp.lt.s32.totalorder %v2609_v41, 2  ;;  %v1490_v58 = vor.u32 %v1489_v46, %v1488_v54  ;;  %vm1493_vm10 = vcmp.lt.s32.totalorder %v2609_v41, 3 }
  0xef   : > { %vm1494_vm11 = vcmp.lt.s32.totalorder %v2609_v41, 4  ;;  %v1499_v59 = vsel %vm1491_vm7, %v1478_v33, %v1481_v34  ;;  %v686_v40 = vsel %vm684_vm8, %v685_v56, %v2646_v32  ;;  %v1503_v47 = vsel %vm1491_vm7, %v1481_v34, %v1484_v52 }
  0xf0   : > { %v1496_v60 = vsel %vm1494_vm11, %v1484_v52, 2102212464  ;;  %v1500_v61 = vsel %vm1494_vm11, %v1487_v57, 920167782  ;;  %v687_v63 = vadd.s32 %v686_v40, %v682_v50  ;;  %v1495_v0 = vsel %vm1491_vm7, %v1475_v38, %v1478_v33 }
  0xf1   : > { %v1501_v1 = vsel %vm1493_vm10, %v1484_v52, %v1500_v61  ;;  %v1504_v2 = vsel %vm1494_vm11, %v1490_v58, 1326507024  ;;  %v1497_v3 = vsel %vm1493_vm10, %v1481_v34, %v1496_v60  ;;  %v431_v16 = vsel %vm430_vm12, %v2618_v48, 0 }
  0xf2   : > { %v1502_v4 = vsel %vm1492_vm9, %v1499_v59, %v1501_v1  ;;  %v1505_v5 = vsel %vm1493_vm10, %v1487_v57, %v1504_v2  ;;  %v688_v6 = vadd.s32 536870912, %v687_v63  ;;  %v1498_v19 = vsel %vm1492_vm9, %v1495_v0, %v1497_v3 }
  0xf3   : > { %v1506_v7 = vsel %vm1492_vm9, %v1503_v47, %v1505_v5  ;;  %v2669_v8 = vmul.u32.u64.low %v2611_v42, %v1502_v4  ;;  %v2670_v10 = vmul.u32.u64.high %v2611_v42, %v1502_v4, %v2669_v8  ;;  %v433_v20 = vand.u32 31, %v431_v16 }
  0xf4   : > { %v2674_v12 = vmul.u32.u64.low %v2611_v42, %v1506_v7  ;;  %v2675_v14 = vmul.u32.u64.high %v2611_v42, %v1506_v7, %v2674_v12  ;;  %v689_v18 = vshrl.u32 %v688_v6, 30  ;;  %v1254_v22 = vand.u32 2139095040, %v2605_v39 }
  0xf5   : > { %v1517_v24 = vadd.s32 1, %v2670_v10  ;;  %v427_v25 = vor.u32 8388608, %v2615_v43  ;;  %v1514_v26 = vmul.u32 %v2611_v42, %v1498_v19  ;;  %v434_v27 = vsub.s32 32, %v433_v20 }
  0xf6   : > { %v690_v23 = vshll.u32 %v689_v18, 30  ;;  %vm1516_vm13 = vc.u32 %v2675_v14, %v2669_v8  ;;  %v1255_v41 = vshrl.u32 %v1254_v22, 23  ;;  %v683_v33 = vadd.s32 %v2645_v30, %v2642_v29 }
  0xf7   : > { %v1518_v48 = vsel %vm1516_vm13, %v1517_v24, %v2670_v10  ;;  %v2692_v35 = vshll.u32 %v427_v25, 8  ;;  %v1251_v42 = vand.u32 2147483647, %v2605_v39  ;;  %v2695_v37 = vshrl.u32 %v431_v16, 5 }
  0xf8   : > { %v2686_v28 = vsub.s32 %v687_v63, %v690_v23  ;;  %v1519_v32 = vadd.s32 %v1518_v48, %v1514_v26  ;;  %v437_v38 = vshrl.u32 %v2520_v49, %v434_v27  ;;  %v440_v36 = vshrl.u32 %v2521_v51, %v434_v27 }
  0xf9   : > { %v443_v46 = vshrl.u32 %v2522_v53, %v434_v27  ;;  %v446_v50 = vshrl.u32 %v2523_v55, %v434_v27  ;;  %v2702_v29 = vadd.s32 4294967169, %v1255_v41  ;;  %v713_v30 = vsub.s32 4, %v689_v18 }
  0xfa   : > { %v693_v34 = vsub.s32 0, %v2686_v28  ;;  %v1520_v43 = vadd.s32 536870912, %v1519_v32  ;;  %v436_v54 = vshll.u32 %v2519_v45, %v433_v20  ;;  %v439_v56 = vshll.u32 %v2520_v49, %v433_v20 }
  0xfb   : > { %v442_v59 = vshll.u32 %v2521_v51, %v433_v20  ;;  %v445_v40 = vshll.u32 %v2522_v53, %v433_v20  ;;  %v449_v60 = vshrl.u32 %v2524_v62, %v434_v27  ;;  %v2720_v0 = vand.u32 8388607, %v1251_v42 }
  0xfc   : > { %v2240_v44 = vmin.u32 %v693_v34, %v2686_v28  ;;  %v2704_v52 = vshrl.u32 %v1520_v43, 30  ;;  %v438_v47 = vor.u32 %v437_v38, %v436_v54  ;;  %v441_v63 = vor.u32 %v440_v36, %v439_v56 }
  0xfd   : > { %v444_v15 = vor.u32 %v443_v46, %v442_v59  ;;  %v447_v2 = vor.u32 %v446_v50, %v445_v40  ;;  %v448_v3 = vshll.u32 %v2523_v55, %v433_v20  ;;  %v714_v4 = vsel %vm629_vm14, %v713_v30, %v689_v18 }
  0xfe   : > { %v695_v58 = vclz %v2240_v44  ;;  %v1522_v61 = vshll.u32 %v2704_v52, 30  ;;  %v435_v6 = vshrl.u32 %v2519_v45, %v434_v27  ;;  %vm451_vm0 = vcmp.lt.s32.totalorder %v2695_v37, 1 }
  0xff   : > { %v450_v7 = vor.u32 %v449_v60, %v448_v3  ;;  %vm452_vm2 = vcmp.lt.s32.totalorder %v2695_v37, 2  ;;  %vm453_vm3 = vcmp.lt.s32.totalorder %v2695_v37, 3  ;;  %vm1461_vm4 = vcmp.lt.s32.totalorder %v2589_v13, 0 }
 0x100   : > { %v2241_v1 = vadd.s32 4294967294, %v695_v58  ;;  %v2725_v5 = vsub.s32 %v1519_v32, %v1522_v61  ;;  %vm454_vm5 = vcmp.lt.s32.totalorder %v2695_v37, 4  ;;  %v459_v16 = vsel %vm451_vm0, %v438_v47, %v441_v63 }
 0x101   : > { %v456_v20 = vsel %vm454_vm5, %v444_v15, 2102212464  ;;  %v460_v22 = vsel %vm454_vm5, %v447_v2, 920167782  ;;  %v463_v26 = vsel %vm451_vm0, %v441_v63, %v444_v15  ;;  %v464_v32 = vsel %vm454_vm5, %v450_v7, 1326507024 }
 0x102   : > { %vm2242_vm1 = vcmp.lt.s32.totalorder %v2241_v1, 0  ;;  %v1525_v12 = vsub.s32 0, %v2725_v5  ;;  %v461_v25 = vsel %vm453_vm3, %v444_v15, %v460_v22  ;;  %v716_v34 = vsel %vm2710_vm15, 0, %v714_v4 }
 0x103   : > { %v698_v10 = vsel %vm2242_vm1, 0, %v2241_v1  ;;  %v462_v41 = vsel %vm452_vm2, %v459_v16, %v461_v25  ;;  %vm2748_vm6 = vcmp.le.f32.partialorder %v1459_v17, 0.7853982  ;;  %v455_v38 = vsel %vm451_vm0, %v435_v6, %v438_v47 }
 0x104   : > { %v699_v18 = vsub.s32 32, %v698_v10  ;;  %v703_v19 = vsub.s32 4294967266, %v698_v10  ;;  %v700_v23 = vshll.u32 %v2686_v28, %v698_v10  ;;  %v2272_v24 = vmin.u32 %v1525_v12, %v2725_v5 }
 0x105   : > { %v1545_v46 = vsub.s32 4, %v2704_v52  ;;  %v465_v50 = vsel %vm453_vm3, %v447_v2, %v464_v32  ;;  %v2762_v54 = vmul.u32.u64.low %v2692_v35, %v462_v41  ;;  %v2763_v56 = vmul.u32.u64.high %v2692_v35, %v462_v41, %v2762_v54 }
 0x106   : > { %v701_v27 = vshrl.u32 %v683_v33, %v699_v18  ;;  %v704_v48 = vadd.s32 127, %v703_v19  ;;  %v1527_v43 = vclz %v2272_v24  ;;  %v457_v33 = vsel %vm453_vm3, %v441_v63, %v456_v20  ;;  %v2311_v18 = vpop.f32.mrf.mxu0 }
 0x107   : > { %v466_v17 = vsel %vm452_vm2, %v463_v26, %v465_v50  ;;  %v458_v59 = vsel %vm452_vm2, %v455_v38, %v457_v33  ;;  %v720_v61 = vadd.s32 3, %v716_v34  ;;  %v1515_v47 = vadd.s32 %v2669_v8, %v2675_v14 }
 0x108   : > { %v702_v36 = vor.u32 %v701_v27, %v700_v23  ;;  %v705_v44 = vshll.u32 %v704_v48, 23  ;;  %v2273_v30 = vadd.s32 4294967294, %v1527_v43  ;;  %v1261_v63 = vadd.s32 1, %v2702_v29 }
 0x109   : > { %v2769_v40 = vmul.u32.u64.low %v2692_v35, %v466_v17  ;;  %v2770_v60 = vmul.u32.u64.high %v2692_v35, %v466_v17, %v2769_v40  ;;  %v1546_v3 = vsel %vm1461_vm4, %v1545_v46, %v2704_v52  ;;  %v474_v6 = vmul.u32 %v2692_v35, %v458_v59 }
 0x10a   : > { %v706_v58 = vor.u32 4788187, %v705_v44  ;;  %vm2274_vm7 = vcmp.lt.s32.totalorder %v2273_v30, 0  ;;  %v709_v15 = vcvt.s32.f32 %v702_v36  ;;  %v477_v7 = vadd.s32 1, %v2763_v56 }
 0x10b   : > { %v1530_v2 = vsel %vm2274_vm7, 0, %v2273_v30  ;;  %vm476_vm8 = vc.u32 %v2770_v60, %v2762_v54  ;;  %vm1262_vm9 = vcmp.gt.s32.totalorder %v1261_v63, 0  ;;  %v1548_v19 = vsel %vm2748_vm6, 0, %v1546_v3 }
 0x10c   : > { %v707_v1 = vand.u32 2147483647, %v706_v58  ;;  %v1531_v37 = vsub.s32 32, %v1530_v2  ;;  %v1535_v4 = vsub.s32 4294967266, %v1530_v2  ;;  %v1532_v12 = vshll.u32 %v2725_v5, %v1530_v2 }
 0x10d   : > { %v478_v29 = vsel %vm476_vm8, %v477_v7, %v2763_v56  ;;  %v1263_v16 = vsel %vm1262_vm9, %v1261_v63, 0  ;;  %v2789_v26 = vadd.f32 %v2311_v18, %v2583_v9  ;;  %v2794_v48 = vand.u32 3, %v720_v61 }
 0x10e   : > { %v710_v10 = vmul.f32 %v709_v15, %v707_v1  ;;  %v1533_v8 = vshrl.u32 %v1515_v47, %v1531_v37  ;;  %v1536_v14 = vadd.s32 127, %v1535_v4  ;;  %v479_v35 = vadd.s32 %v478_v29, %v474_v6 }
 0x10f   : > { %v1265_v20 = vand.u32 31, %v1263_v16  ;;  %v2796_v32 = vadd.s32 3, %v1548_v19  ;;  %v1259_v43 = vor.u32 8388608, %v2720_v0  ;;  %vm421_vm10 = vcmp.lt.s32.totalorder %v2598_v21, 0 }
 0x110   : > { %v711_v52 = vxor.u32 2147483648, %v710_v10  ;;  %v1534_v22 = vor.u32 %v1533_v8, %v1532_v12  ;;  %v1537_v23 = vshll.u32 %v1536_v14, 23  ;;  %v480_v24 = vadd.s32 536870912, %v479_v35 }
 0x111   : > { %v1266_v25 = vsub.s32 32, %v1265_v20  ;;  %v2802_v46 = vshrl.u32 %v1263_v16, 5  ;;  %v1268_v50 = vshll.u32 %v2519_v45, %v1265_v20  ;;  %v1271_v56 = vshll.u32 %v2520_v49, %v1265_v20 }
 0x112   : > { %v712_v5 = vsel %vm629_vm14, %v711_v52, %v710_v10  ;;  %v1538_v41 = vor.u32 4788187, %v1537_v23  ;;  %v481_v34 = vshrl.u32 %v480_v24, 30  ;;  %v1541_v36 = vcvt.s32.f32 %v1534_v22 }
 0x113   : > { %v715_v27 = vsel %vm2710_vm15, %v2586_v11, %v712_v5  ;;  %v1269_v38 = vshrl.u32 %v2520_v49, %v1266_v25  ;;  %v1272_v44 = vshrl.u32 %v2521_v51, %v1266_v25  ;;  %v1275_v30 = vshrl.u32 %v2522_v53, %v1266_v25 }
 0x114   : > { %2429 = vcosq.f32 %v715_v27  ;;  %v1539_v33 = vand.u32 2147483647, %v1538_v41  ;;  %v482_v57 = vshll.u32 %v481_v34, 30  ;;  %v1277_v0 = vshll.u32 %v2522_v53, %v1265_v20 }
 0x115   : > { %2431 = vsinq.f32 %v715_v27  ;;  %v1278_v58 = vshrl.u32 %v2523_v55, %v1266_v25  ;;  %v1270_v40 = vor.u32 %v1269_v38, %v1268_v50  ;;  %v1274_v61 = vshll.u32 %v2521_v51, %v1265_v20 }
 0x116   : > { %v1542_v17 = vmul.f32 %v1541_v36, %v1539_v33  ;;  %v2809_v59 = vsub.s32 %v479_v35, %v482_v57  ;;  %v734_v47 = vand.u32 2139095040, %v2789_v26  ;;  %v1273_v1 = vor.u32 %v1272_v44, %v1271_v56 }
 0x117   : > { %v1279_v15 = vor.u32 %v1278_v58, %v1277_v0  ;;  %v1281_v2 = vshrl.u32 %v2524_v62, %v1266_v25  ;;  %v475_v3 = vadd.s32 %v2762_v54, %v2770_v60  ;;  %v1276_v4 = vor.u32 %v1275_v30, %v1274_v61 }
 0x118   : > { %v1543_v63 = vxor.u32 2147483648, %v1542_v17  ;;  %v485_v37 = vsub.s32 0, %v2809_v59  ;;  %v1280_v6 = vshll.u32 %v2523_v55, %v1265_v20  ;;  %vm726_vm11 = vcmp.eq.s32.totalorder %v2794_v48, 2 }
 0x119   : > { %v505_v10 = vsub.s32 4, %v481_v34  ;;  %vm1283_vm12 = vcmp.lt.s32.totalorder %v2802_v46, 1  ;;  %v2822_v12 = vshll.u32 %v1259_v43, 8  ;;  %vm723_vm13 = vcmp.eq.s32.totalorder %v2794_v48, 0 }
 0x11a   : > { %v1544_v7 = vsel %vm1461_vm4, %v1543_v63, %v1542_v17  ;;  %v2232_v60 = vmin.u32 %v485_v37, %v2809_v59  ;;  %v1282_v8 = vor.u32 %v1281_v2, %v1280_v6  ;;  %vm1286_vm14 = vcmp.lt.s32.totalorder %v2802_v46, 4 }
 0x11b   : > { %v1547_v54 = vsel %vm2748_vm6, %v2589_v13, %v1544_v7  ;;  %vm722_vm15 = vcmp.lt.s32.totalorder %v2794_v48, 2  ;;  %vm2083_vm0 = vcmask 261120   ;;  %v1267_v14 = vshrl.u32 %v2519_v45, %v1266_v25 }
 0x11c   : > { %2433 = vcosq.f32 %v1547_v54  ;;  %v1291_v29 = vsel %vm1283_vm12, %v1270_v40, %v1273_v1  ;;  %v1292_v16 = vsel %vm1286_vm14, %v1279_v15, 920167782  ;;  %vm719_vm1 = vweird.f32 %v2586_v11 }
 0x11d   : > { %2435 = vsinq.f32 %v1547_v54  ;;  %vm2839_vm2 = vcmp.le.f32.partialorder %v419_v31, 0.7853982  ;;  %v487_v18 = vclz %v2232_v60  ;;  %vm1285_vm3 = vcmp.lt.s32.totalorder %v2802_v46, 3 }
 0x11e   : > { %v1288_v52 = vsel %vm1286_vm14, %v1276_v4, 2102212464  ;;  %v506_v19 = vsel %vm421_vm10, %v505_v10, %v481_v34  ;;  %vm1284_vm4 = vcmp.lt.s32.totalorder %v2802_v46, 2  ;;  %v1293_v35 = vsel %vm1285_vm3, %v1276_v4, %v1292_v16 }
 0x11f   : > { %v1295_v20 = vsel %vm1283_vm12, %v1273_v1, %v1276_v4  ;;  %v2233_v31 = vadd.s32 4294967294, %v487_v18  ;;  %v1287_v22 = vsel %vm1283_vm12, %v1267_v14, %v1270_v40  ;;  %v1294_v23 = vsel %vm1284_vm4, %v1291_v29, %v1293_v35 }
 0x120   : > { %v1296_v5 = vsel %vm1286_vm14, %v1282_v8, 1326507024  ;;  %v1289_v25 = vsel %vm1285_vm3, %v1273_v1, %v1288_v52  ;;  %v2858_v41 = vmul.u32.u64.low %v2822_v12, %v1294_v23  ;;  %v2859_v34 = vmul.u32.u64.high %v2822_v12, %v1294_v23, %v2858_v41 }
 0x121   : > { %v2430_v24 = vpop.eup %2429  ;;  %v1297_v27 = vsel %vm1285_vm3, %v1279_v15, %v1296_v5  ;;  %vm2234_vm5 = vcmp.lt.s32.totalorder %v2233_v31, 0  ;;  %v735_v36 = vshrl.u32 %v734_v47, 23  ;;  %v1290_v58 = vsel %vm1284_vm4, %v1287_v22, %v1289_v25 }
 0x122   : > { %v2432_v43 = vpop.eup %2431  ;;  %v727_v38 = vxor.u32 2147483648, %v2430_v24  ;;  %v1298_v33 = vsel %vm1284_vm4, %v1295_v20, %v1297_v27  ;;  %v490_v57 = vsel %vm2234_vm5, 0, %v2233_v31  ;;  %v1553_v61 = vand.u32 3, %v2796_v32  ;;  %v2319_v32 = vpop.f32.mrf.mxu1 }
 0x123   : > { %v724_v44 = vxor.u32 2147483648, %v2432_v43  ;;  %v2866_v50 = vmul.u32.u64.low %v2822_v12, %v1298_v33  ;;  %v2867_v30 = vmul.u32.u64.high %v2822_v12, %v1298_v33, %v2866_v50  ;;  %v491_v56 = vsub.s32 32, %v490_v57 }
 0x124   : > { %v728_v17 = vsel %vm726_vm11, %v727_v38, %v2432_v43  ;;  %v495_v0 = vsub.s32 4294967266, %v490_v57  ;;  %v1309_v47 = vadd.s32 1, %v2859_v34  ;;  %v2243_v63 = vadd.s32 4294967169, %v735_v36 }
 0x125   : > { %v725_v40 = vsel %vm723_vm13, %v2430_v24, %v724_v44  ;;  %v492_v46 = vshll.u32 %v2809_v59, %v490_v57  ;;  %v493_v15 = vshrl.u32 %v475_v3, %v491_v56  ;;  %v508_v4 = vsel %vm2839_vm2, 0, %v506_v19 }
 0x126   : > { %v729_v1 = vsel %vm722_vm15, %v725_v40, %v728_v17  ;;  %v496_v2 = vadd.s32 127, %v495_v0  ;;  %v1306_v6 = vmul.u32 %v2822_v12, %v1290_v58  ;;  %vm1308_vm6 = vc.u32 %v2867_v30, %v2858_v41 }
 0x127   : > { %v730_v37 = vsel %vm719_vm1, nan, %v729_v1  ;;  %v494_v48 = vor.u32 %v493_v15, %v492_v46  ;;  %v1310_v59 = vsel %vm1308_vm6, %v1309_v47, %v2859_v34  ;;  %v741_v3 = vadd.s32 1, %v2243_v63 }
 0x128   : > { %2086 = vst.msk [vmem:[%s2876_s28 + $0x10] sm:$0xff] %vm2083_vm0, %v730_v37  ;;  %v497_v7 = vshll.u32 %v496_v2, 23  ;;  %v1311_v10 = vadd.s32 %v1310_v59, %v1306_v6  ;;  %v731_v11 = vand.u32 2147483647, %v2789_v26  ;;  %vm1558_vm7 = vcmp.eq.s32.totalorder %v1553_v61, 2 }
 0x129   : > { %v2434_v54 = vpop.eup %2433  ;;  %vm742_vm8 = vcmp.gt.s32.totalorder %v741_v3, 0  ;;  %v2897_v12 = vadd.f32 %v2319_v32, %v2583_v9  ;;  %v512_v29 = vadd.s32 3, %v508_v4  ;;  %v501_v35 = vcvt.s32.f32 %v494_v48 }
 0x12a   : > { %v498_v60 = vor.u32 4788187, %v497_v7  ;;  %v2436_v8 = vpop.eup %2435  ;;  %v1559_v14 = vxor.u32 2147483648, %v2434_v54  ;;  %v1312_v16 = vadd.s32 536870912, %v1311_v10  ;;  %v743_v18 = vsel %vm742_vm8, %v741_v3, 0 }
 0x12b   : > { %v1556_v52 = vxor.u32 2147483648, %v2436_v8  ;;  %v745_v20 = vand.u32 31, %v743_v18  ;;  %vm1555_vm9 = vcmp.eq.s32.totalorder %v1553_v61, 0  ;;  %v738_v23 = vand.u32 8388607, %v731_v11 }
 0x12c   : > { %v499_v19 = vand.u32 2147483647, %v498_v60  ;;  %v1560_v31 = vsel %vm1558_vm7, %v1559_v14, %v2436_v8  ;;  %v2899_v22 = vshrl.u32 %v1312_v16, 30  ;;  %vm1554_vm11 = vcmp.lt.s32.totalorder %v1553_v61, 2 }
 0x12d   : > { %v1557_v5 = vsel %vm1555_vm9, %v2434_v54, %v1556_v52  ;;  %v746_v25 = vsub.s32 32, %v745_v20  ;;  %vm1551_vm12 = vweird.f32 %v2589_v13  ;;  %v2905_v33 = vand.u32 3, %v512_v29 }
 0x12e   : > { %v502_v24 = vmul.f32 %v501_v35, %v499_v19  ;;  %v1561_v27 = vsel %vm1554_vm11, %v1557_v5, %v1560_v31  ;;  %v1314_v34 = vshll.u32 %v2899_v22, 30  ;;  %v739_v57 = vor.u32 8388608, %v738_v23 }
 0x12f   : > { %v1562_v43 = vsel %vm1551_vm12, nan, %v1561_v27  ;;  %v749_v36 = vshrl.u32 %v2520_v49, %v746_v25  ;;  %v752_v50 = vshrl.u32 %v2521_v51, %v746_v25  ;;  %v1566_v17 = vand.u32 2139095040, %v2897_v12 }
 0x130   : > { %v503_v38 = vxor.u32 2147483648, %v502_v24  ;;  %2094 = vst.msk [vmem:[%s2876_s28 + $0x50] sm:$0xff] %vm2083_vm0, %v1562_v43  ;;  %v2910_v44 = vsub.s32 %v1311_v10, %v1314_v34  ;;  %v744_v56 = vshrl.u32 %v743_v18, 5  ;;  %v748_v0 = vshll.u32 %v2519_v45, %v745_v20 }
 0x131   : > { %v755_v58 = vshrl.u32 %v2522_v53, %v746_v25  ;;  %v751_v47 = vshll.u32 %v2520_v49, %v745_v20  ;;  %v754_v63 = vshll.u32 %v2521_v51, %v745_v20  ;;  %v757_v46 = vshll.u32 %v2522_v53, %v745_v20 }
 0x132   : > { %v504_v13 = vsel %vm421_vm10, %v503_v38, %v502_v24  ;;  %v1317_v61 = vsub.s32 0, %v2910_v44  ;;  %v750_v1 = vor.u32 %v749_v36, %v748_v0  ;;  %v758_v15 = vshrl.u32 %v2523_v55, %v746_v25 }
 0x133   : > { %v507_v40 = vsel %vm2839_vm2, %v2598_v21, %v504_v13  ;;  %v753_v37 = vor.u32 %v752_v50, %v751_v47  ;;  %v756_v4 = vor.u32 %v755_v58, %v754_v63  ;;  %v760_v28 = vshll.u32 %v2523_v55, %v745_v20 }
 0x134   : > { %2437 = vcosq.f32 %v507_v40  ;;  %v2264_v2 = vmin.u32 %v1317_v61, %v2910_v44  ;;  %v759_v6 = vor.u32 %v758_v15, %v757_v46  ;;  %v761_v32 = vshrl.u32 %v2524_v62, %v746_v25 }
 0x135   : > { %2439 = vsinq.f32 %v507_v40  ;;  %v779_v48 = vshll.u32 %v739_v57, 8  ;;  %v747_v59 = vshrl.u32 %v2519_v45, %v746_v25  ;;  %vm763_vm10 = vcmp.lt.s32.totalorder %v744_v56, 1 }
 0x136   : > { %v1319_v7 = vclz %v2264_v2  ;;  %v1567_v3 = vshrl.u32 %v1566_v17, 23  ;;  %vm1253_vm13 = vcmp.lt.s32.totalorder %v2605_v39, 0  ;;  %v762_v10 = vor.u32 %v761_v32, %v760_v28 }
 0x137   : > { %vm764_vm14 = vcmp.lt.s32.totalorder %v744_v56, 2  ;;  %vm765_vm15 = vcmp.lt.s32.totalorder %v744_v56, 3  ;;  %vm766_vm1 = vcmp.lt.s32.totalorder %v744_v56, 4  ;;  %v771_v8 = vsel %vm763_vm10, %v750_v1, %v753_v37 }
 0x138   : > { %v2265_v54 = vadd.s32 4294967294, %v1319_v7  ;;  %v768_v60 = vsel %vm766_vm1, %v756_v4, 2102212464  ;;  %v772_v14 = vsel %vm766_vm1, %v759_v6, 920167782  ;;  %v767_v29 = vsel %vm763_vm10, %v747_v59, %v750_v1 }
 0x139   : > { %v773_v16 = vsel %vm765_vm15, %v756_v4, %v772_v14  ;;  %v775_v18 = vsel %vm763_vm10, %v753_v37, %v756_v4  ;;  %v776_v52 = vsel %vm766_vm1, %v762_v10, 1326507024  ;;  %vm2933_vm2 = vcmp.le.f32.partialorder %v1251_v42, 0.7853982 }
 0x13a   : > { %vm2266_vm3 = vcmp.lt.s32.totalorder %v2265_v54, 0  ;;  %v769_v35 = vsel %vm765_vm15, %v753_v37, %v768_v60  ;;  %v774_v20 = vsel %vm764_vm14, %v771_v8, %v773_v16  ;;  %v777_v31 = vsel %vm765_vm15, %v759_v6, %v776_v52 }
 0x13b   : > { %v1322_v23 = vsel %vm2266_vm3, 0, %v2265_v54  ;;  %v778_v5 = vsel %vm764_vm14, %v775_v18, %v777_v31  ;;  %v2939_v24 = vmul.u32.u64.low %v779_v48, %v774_v20  ;;  %v2940_v25 = vmul.u32.u64.high %v779_v48, %v774_v20, %v2939_v24 }
 0x13c   : > { %v1307_v27 = vadd.s32 %v2858_v41, %v2867_v30  ;;  %v1323_v34 = vsub.s32 32, %v1322_v23  ;;  %v1327_v42 = vsub.s32 4294967266, %v1322_v23  ;;  %v1337_v43 = vsub.s32 4, %v2899_v22 }
 0x13d   : > { %v2946_v38 = vmul.u32.u64.low %v779_v48, %v778_v5  ;;  %v2947_v36 = vmul.u32.u64.high %v779_v48, %v778_v5, %v2946_v38  ;;  %v1563_v57 = vand.u32 2147483647, %v2897_v12  ;;  %v2275_v50 = vadd.s32 4294967169, %v1567_v3  ;;  %v359_v3 = vpop.f32.mrf.mxu0 }
 0x13e   : > { %v1324_v17 = vshll.u32 %v2910_v44, %v1322_v23  ;;  %v1325_v13 = vshrl.u32 %v1307_v27, %v1323_v34  ;;  %v1328_v0 = vadd.s32 127, %v1327_v42  ;;  %v770_v58 = vsel %vm764_vm14, %v767_v29, %v769_v35 }
 0x13f   : > { %vm514_vm4 = vcmp.lt.s32.totalorder %v2905_v33, 2  ;;  %vm515_vm5 = vcmp.eq.s32.totalorder %v2905_v33, 0  ;;  %v789_v41 = vadd.s32 1, %v2940_v25  ;;  %v1573_v30 = vadd.s32 1, %v2275_v50 }
 0x140   : > { %vm518_vm6 = vcmp.eq.s32.totalorder %v2905_v33, 2  ;;  %v1326_v61 = vor.u32 %v1325_v13, %v1324_v17  ;;  %v1329_v47 = vshll.u32 %v1328_v0, 23  ;;  %v1338_v44 = vsel %vm1253_vm13, %v1337_v43, %v2899_v22 }
 0x141   : > { %v2438_v40 = vpop.eup %2437  ;;  %v786_v56 = vmul.u32 %v779_v48, %v770_v58  ;;  %vm788_vm7 = vc.u32 %v2947_v36, %v2939_v24  ;;  %vm1574_vm8 = vcmp.gt.s32.totalorder %v1573_v30, 0  ;;  %v1570_v37 = vand.u32 8388607, %v1563_v57 }
 0x142   : > { %v2440_v63 = vpop.eup %2439  ;;  %v519_v1 = vxor.u32 2147483648, %v2438_v40  ;;  %v1330_v15 = vor.u32 4788187, %v1329_v47  ;;  %v790_v2 = vsel %vm788_vm7, %v789_v41, %v2940_v25  ;;  %v1340_v6 = vsel %vm2933_vm2, 0, %v1338_v44 }
 0x143   : > { %v516_v46 = vxor.u32 2147483648, %v2440_v63  ;;  %v791_v22 = vadd.s32 %v790_v2, %v786_v56  ;;  %v1575_v28 = vsel %vm1574_vm8, %v1573_v30, 0  ;;  %v1333_v7 = vcvt.s32.f32 %v1326_v61 }
 0x144   : > { %v520_v4 = vsel %vm518_vm6, %v519_v1, %v2440_v63  ;;  %v1331_v48 = vand.u32 2147483647, %v1330_v15  ;;  %v1577_v59 = vand.u32 31, %v1575_v28  ;;  %vm511_vm9 = vweird.f32 %v2598_v21 }
 0x145   : > { %v517_v32 = vsel %vm515_vm5, %v2438_v40, %v516_v46  ;;  %v792_v54 = vadd.s32 536870912, %v791_v22  ;;  %v1344_v14 = vadd.s32 3, %v1340_v6  ;;  %v1571_v18 = vor.u32 8388608, %v1570_v37 }
 0x146   : > { %v521_v10 = vsel %vm514_vm4, %v517_v32, %v520_v4  ;;  %v1334_v8 = vmul.f32 %v1333_v7, %v1331_v48  ;;  %v1578_v29 = vsub.s32 32, %v1577_v59  ;;  %v1580_v52 = vshll.u32 %v2519_v45, %v1577_v59 }
 0x147   : > { %v522_v60 = vsel %vm511_vm9, nan, %v521_v10  ;;  %v2973_v16 = vshrl.u32 %v792_v54, 30  ;;  %v2977_v35 = vadd.f32 %v2583_v9, %v359_v3  ;;  %v1583_v33 = vshll.u32 %v2520_v49, %v1577_v59 }
 0x148   : > { %2084 = vst.msk [vmem:[%s2876_s28] sm:$0xff] %vm2083_vm0, %v522_v60  ;;  %v1335_v20 = vxor.u32 2147483648, %v1334_v8  ;;  %v1581_v21 = vshrl.u32 %v2520_v49, %v1578_v29  ;;  %v1584_v31 = vshrl.u32 %v2521_v51, %v1578_v29  ;;  %v1586_v5 = vshll.u32 %v2521_v51, %v1577_v59 }
 0x149   : > { %v794_v23 = vshll.u32 %v2973_v16, 30  ;;  %v1587_v25 = vshrl.u32 %v2522_v53, %v1578_v29  ;;  %v1590_v27 = vshrl.u32 %v2523_v55, %v1578_v29  ;;  %v1576_v9 = vshrl.u32 %v1575_v28, 5 }
 0x14a   : > { %v1336_v34 = vsel %vm1253_vm13, %v1335_v20, %v1334_v8  ;;  %v1582_v42 = vor.u32 %v1581_v21, %v1580_v52  ;;  %v1589_v43 = vshll.u32 %v2522_v53, %v1577_v59  ;;  %v1585_v17 = vor.u32 %v1584_v31, %v1583_v33 }
 0x14b   : > { %v1339_v38 = vsel %vm2933_vm2, %v2605_v39, %v1336_v34  ;;  %v2992_v50 = vsub.s32 %v791_v22, %v794_v23  ;;  %v1588_v13 = vor.u32 %v1587_v25, %v1586_v5  ;;  %v1592_v58 = vshll.u32 %v2523_v55, %v1577_v59 }
 0x14c   : > { %2441 = vcosq.f32 %v1339_v38  ;;  %v1591_v0 = vor.u32 %v1590_v27, %v1589_v43  ;;  %v1593_v41 = vshrl.u32 %v2524_v62, %v1578_v29  ;;  %v2996_v30 = vand.u32 3, %v1344_v14 }
 0x14d   : > { %2443 = vsinq.f32 %v1339_v38  ;;  %v797_v40 = vsub.s32 0, %v2992_v50  ;;  %vm733_vm11 = vcmp.lt.s32.totalorder %v2789_v26, 0  ;;  %vm1598_vm12 = vcmp.lt.s32.totalorder %v1576_v9, 4 }
 0x14e   : > { %v1594_v61 = vor.u32 %v1593_v41, %v1592_v58  ;;  %v1611_v19 = vshll.u32 %v1571_v18, 8  ;;  %v526_v47 = vand.u32 2139095040, %v2977_v35  ;;  %v1579_v63 = vshrl.u32 %v2519_v45, %v1578_v29 }
 0x14f   : > { %v2244_v44 = vmin.u32 %v797_v40, %v2992_v50  ;;  %vm1595_vm10 = vcmp.lt.s32.totalorder %v1576_v9, 1  ;;  %v1600_v1 = vsel %vm1598_vm12, %v1588_v13, 2102212464  ;;  %vm1596_vm13 = vcmp.lt.s32.totalorder %v1576_v9, 2 }
 0x150   : > { %v1603_v56 = vsel %vm1595_vm10, %v1582_v42, %v1585_v17  ;;  %v1604_v46 = vsel %vm1598_vm12, %v1591_v0, 920167782  ;;  %v523_v15 = vand.u32 2147483647, %v2977_v35  ;;  %vm1597_vm14 = vcmp.lt.s32.totalorder %v1576_v9, 3 }
 0x151   : > { %v799_v2 = vclz %v2244_v44  ;;  %v1599_v37 = vsel %vm1595_vm10, %v1579_v63, %v1582_v42  ;;  %v1607_v4 = vsel %vm1595_vm10, %v1585_v17, %v1588_v13  ;;  %v1601_v6 = vsel %vm1597_vm14, %v1585_v17, %v1600_v1 }
 0x152   : > { %v1605_v22 = vsel %vm1597_vm14, %v1588_v13, %v1604_v46  ;;  %v1608_v28 = vsel %vm1598_vm12, %v1594_v61, 1326507024  ;;  %v527_v32 = vshrl.u32 %v526_v47, 23  ;;  %v817_v7 = vsub.s32 4, %v2973_v16 }
 0x153   : > { %v2245_v48 = vadd.s32 4294967294, %v799_v2  ;;  %v1606_v59 = vsel %vm1596_vm13, %v1603_v56, %v1605_v22  ;;  %v1609_v3 = vsel %vm1597_vm14, %v1591_v0, %v1608_v28  ;;  %v1602_v14 = vsel %vm1596_vm13, %v1599_v37, %v1601_v6 }
 0x154   : > { %v1610_v10 = vsel %vm1596_vm13, %v1607_v4, %v1609_v3  ;;  %v3010_v54 = vmul.u32.u64.low %v1611_v19, %v1606_v59  ;;  %v3011_v60 = vmul.u32.u64.high %v1611_v19, %v1606_v59, %v3010_v54  ;;  %v2235_v8 = vadd.s32 4294967169, %v527_v32 }
 0x155   : > { %vm2246_vm15 = vcmp.lt.s32.totalorder %v2245_v48, 0  ;;  %v3015_v29 = vmul.u32.u64.low %v1611_v19, %v1610_v10  ;;  %v3016_v18 = vmul.u32.u64.high %v1611_v19, %v1610_v10, %v3015_v29  ;;  %vm1343_vm1 = vweird.f32 %v2605_v39 }
 0x156   : > { %vm1350_vm2 = vcmp.eq.s32.totalorder %v2996_v30, 2  ;;  %vm3022_vm3 = vcmp.le.f32.partialorder %v731_v11, 0.7853982  ;;  %v802_v20 = vsel %vm2246_vm15, 0, %v2245_v48  ;;  %v533_v21 = vadd.s32 1, %v2235_v8 }
 0x157   : > { %v787_v33 = vadd.s32 %v2939_v24, %v2947_v36  ;;  %v803_v31 = vsub.s32 32, %v802_v20  ;;  %v807_v23 = vsub.s32 4294967266, %v802_v20  ;;  %v818_v5 = vsel %vm733_vm11, %v817_v7, %v2973_v16  ;;  %v391_v24 = vpop.f32.mrf.mxu1 }
 0x158   : > { %v1618_v25 = vmul.u32 %v1611_v19, %v1602_v14  ;;  %v1621_v27 = vadd.s32 1, %v3011_v60  ;;  %v530_v11 = vand.u32 8388607, %v523_v15  ;;  %vm534_vm4 = vcmp.gt.s32.totalorder %v533_v21, 0  ;;  %v3046_v19 = vld [vmem:[%s3752_s2] ss:$0 sm:$0xff] }
 0x159   : > { %v2442_v34 = vpop.eup %2441  ;;  %v804_v9 = vshll.u32 %v2992_v50, %v802_v20  ;;  %v805_v42 = vshrl.u32 %v787_v33, %v803_v31  ;;  %v808_v43 = vadd.s32 127, %v807_v23  ;;  %vm1620_vm5 = vc.u32 %v3016_v18, %v3010_v54 }
 0x15a   : > { %v2444_v36 = vpop.eup %2443  ;;  %v1351_v38 = vxor.u32 2147483648, %v2442_v34  ;;  %v820_v16 = vsel %vm3022_vm3, 0, %v818_v5  ;;  %v1622_v17 = vsel %vm1620_vm5, %v1621_v27, %v3011_v60  ;;  %v535_v13 = vsel %vm534_vm4, %v533_v21, 0 }
 0x15b   : > { %v1348_v0 = vxor.u32 2147483648, %v2444_v36  ;;  %v806_v58 = vor.u32 %v805_v42, %v804_v9  ;;  %v809_v41 = vshll.u32 %v808_v43, 23  ;;  %v1623_v40 = vadd.s32 %v1622_v17, %v1618_v25 }
 0x15c   : > { %vm1347_vm6 = vcmp.eq.s32.totalorder %v2996_v30, 0  ;;  %v1352_v50 = vsel %vm1350_vm2, %v1351_v38, %v2444_v36  ;;  %v537_v61 = vand.u32 31, %v535_v13  ;;  %v3049_v47 = vadd.f32 %v3046_v19, %v391_v24 }
 0x15d   : > { %vm1346_vm7 = vcmp.lt.s32.totalorder %v2996_v30, 2  ;;  %v1349_v44 = vsel %vm1347_vm6, %v2442_v34, %v1348_v0  ;;  %v810_v63 = vor.u32 4788187, %v809_v41  ;;  %v1624_v1 = vadd.s32 536870912, %v1623_v40 }
 0x15e   : > { %v1353_v56 = vsel %vm1346_vm7, %v1349_v44, %v1352_v50  ;;  %v3052_v46 = vadd.s32 3, %v820_v16  ;;  %v531_v2 = vor.u32 8388608, %v530_v11  ;;  %v538_v37 = vsub.s32 32, %v537_v61 }
 0x15f   : > { %v1354_v4 = vsel %vm1343_vm1, nan, %v1353_v56  ;;  %v811_v6 = vand.u32 2147483647, %v810_v63  ;;  %v813_v22 = vcvt.s32.f32 %v806_v58  ;;  %v3056_v28 = vshrl.u32 %v1624_v1, 30 }
 0x160   : > { %2092 = vst.msk [vmem:[%s2876_s28 + $0x40] sm:$0xff] %vm2083_vm0, %v1354_v4  ;;  %v541_v32 = vshrl.u32 %v2520_v49, %v538_v37  ;;  %v544_v30 = vshrl.u32 %v2521_v51, %v538_v37  ;;  %v547_v48 = vshrl.u32 %v2522_v53, %v538_v37  ;;  %v1358_v7 = vand.u32 2139095040, %v3049_v47 }
 0x161   : > { %v814_v59 = vmul.f32 %v813_v22, %v811_v6  ;;  %v1626_v3 = vshll.u32 %v3056_v28, 30  ;;  %v540_v39 = vshll.u32 %v2519_v45, %v537_v61  ;;  %v543_v10 = vshll.u32 %v2520_v49, %v537_v61 }
 0x162   : > { %v536_v60 = vshrl.u32 %v535_v13, 5  ;;  %v546_v8 = vshll.u32 %v2521_v51, %v537_v61  ;;  %v549_v14 = vshll.u32 %v2522_v53, %v537_v61  ;;  %v550_v29 = vshrl.u32 %v2523_v55, %v538_v37 }
 0x163   : > { %v815_v20 = vxor.u32 2147483648, %v814_v59  ;;  %v3070_v21 = vsub.s32 %v1623_v40, %v1626_v3  ;;  %v542_v33 = vor.u32 %v541_v32, %v540_v39  ;;  %v545_v31 = vor.u32 %v544_v30, %v543_v10 }
 0x164   : > { %v548_v23 = vor.u32 %v547_v48, %v546_v8  ;;  %v551_v5 = vor.u32 %v550_v29, %v549_v14  ;;  %v552_v25 = vshll.u32 %v2523_v55, %v537_v61  ;;  %v553_v27 = vshrl.u32 %v2524_v62, %v538_v37 }
 0x165   : > { %v816_v11 = vsel %vm733_vm11, %v815_v20, %v814_v59  ;;  %v1629_v34 = vsub.s32 0, %v3070_v21  ;;  %v571_v9 = vshll.u32 %v531_v2, 8  ;;  %v1355_v42 = vand.u32 2147483647, %v3049_v47 }
 0x166   : > { %v819_v43 = vsel %vm3022_vm3, %v2789_v26, %v816_v11  ;;  %v539_v24 = vshrl.u32 %v2519_v45, %v538_v37  ;;  %v554_v36 = vor.u32 %v553_v27, %v552_v25  ;;  %v1359_v38 = vshrl.u32 %v1358_v7, 23 }
 0x167   : > { %2445 = vcosq.f32 %v819_v43  ;;  %v2276_v16 = vmin.u32 %v1629_v34, %v3070_v21  ;;  %vm555_vm8 = vcmp.lt.s32.totalorder %v536_v60, 1  ;;  %vm558_vm9 = vcmp.lt.s32.totalorder %v536_v60, 4 }
 0x168   : > { %2447 = vsinq.f32 %v819_v43  ;;  %v560_v17 = vsel %vm558_vm9, %v548_v23, 2102212464  ;;  %v563_v13 = vsel %vm555_vm8, %v542_v33, %v545_v31  ;;  %v564_v0 = vsel %vm558_vm9, %v551_v5, 920167782 }
 0x169   : > { %v1631_v58 = vclz %v2276_v16  ;;  %vm556_vm11 = vcmp.lt.s32.totalorder %v536_v60, 2  ;;  %vm557_vm12 = vcmp.lt.s32.totalorder %v536_v60, 3  ;;  %v559_v41 = vsel %vm555_vm8, %v539_v24, %v542_v33  ;;  %v2314_v24 = vpop.f32.mrf.mxu0 }
 0x16a   : > { %v561_v40 = vsel %vm557_vm12, %v545_v31, %v560_v17  ;;  %v565_v52 = vsel %vm557_vm12, %v548_v23, %v564_v0  ;;  %v567_v50 = vsel %vm555_vm8, %v545_v31, %v548_v23  ;;  %v568_v61 = vsel %vm558_vm9, %v554_v36, 1326507024 }
 0x16b   : > { %v2277_v44 = vadd.s32 4294967294, %v1631_v58  ;;  %v1649_v63 = vsub.s32 4, %v3056_v28  ;;  %v566_v1 = vsel %vm556_vm11, %v563_v13, %v565_v52  ;;  %v569_v56 = vsel %vm557_vm12, %v551_v5, %v568_v61 }
 0x16c   : > { %v562_v2 = vsel %vm556_vm11, %v559_v41, %v561_v40  ;;  %v570_v37 = vsel %vm556_vm11, %v567_v50, %v569_v56  ;;  %v3084_v4 = vmul.u32.u64.low %v571_v9, %v566_v1  ;;  %v3085_v6 = vmul.u32.u64.high %v571_v9, %v566_v1, %v3084_v4 }
 0x16d   : > { %vm2278_vm10 = vcmp.lt.s32.totalorder %v2277_v44, 0  ;;  %v3087_v22 = vmul.u32.u64.low %v571_v9, %v570_v37  ;;  %v3088_v32 = vmul.u32.u64.high %v571_v9, %v570_v37, %v3087_v22  ;;  %v2267_v30 = vadd.s32 4294967169, %v1359_v38 }
 0x16e   : > { %vm3092_vm13 = vcmp.le.f32.partialorder %v1563_v57, 0.7853982  ;;  %vm1565_vm14 = vcmp.lt.s32.totalorder %v2897_v12, 0  ;;  %v1619_v7 = vadd.s32 %v3010_v54, %v3016_v18  ;;  %v1634_v59 = vsel %vm2278_vm10, 0, %v2277_v44 }
 0x16f   : > { %v1635_v3 = vsub.s32 32, %v1634_v59  ;;  %v1639_v39 = vsub.s32 4294967266, %v1634_v59  ;;  %v1650_v10 = vsel %vm1565_vm14, %v1649_v63, %v3056_v28  ;;  %v1365_v60 = vadd.s32 1, %v2267_v30 }
 0x170   : > { %v825_v8 = vand.u32 3, %v3052_v46  ;;  %v578_v14 = vmul.u32 %v571_v9, %v562_v2  ;;  %v581_v57 = vadd.s32 1, %v3085_v6  ;;  %v1362_v29 = vand.u32 8388607, %v1355_v42 }
 0x171   : > { %v1636_v20 = vshll.u32 %v3070_v21, %v1634_v59  ;;  %v1637_v33 = vshrl.u32 %v1619_v7, %v1635_v3  ;;  %v1640_v54 = vadd.s32 127, %v1639_v39  ;;  %vm580_vm15 = vc.u32 %v3088_v32, %v3084_v4 }
 0x172   : > { %v1652_v18 = vsel %vm3092_vm13, 0, %v1650_v10  ;;  %v582_v28 = vsel %vm580_vm15, %v581_v57, %v3085_v6  ;;  %vm1366_vm1 = vcmp.gt.s32.totalorder %v1365_v60, 0  ;;  %vm823_vm2 = vweird.f32 %v2789_v26 }
 0x173   : > { %v1638_v31 = vor.u32 %v1637_v33, %v1636_v20  ;;  %v1641_v46 = vshll.u32 %v1640_v54, 23  ;;  %v583_v23 = vadd.s32 %v582_v28, %v578_v14  ;;  %v1367_v5 = vsel %vm1366_vm1, %v1365_v60, 0 }
 0x174   : > { %v2446_v25 = vpop.eup %2445  ;;  %vm826_vm3 = vcmp.lt.s32.totalorder %v825_v8, 2  ;;  %vm827_vm4 = vcmp.eq.s32.totalorder %v825_v8, 0  ;;  %v1369_v21 = vand.u32 31, %v1367_v5  ;;  %v1363_v43 = vor.u32 8388608, %v1362_v29 }
 0x175   : > { %v2448_v27 = vpop.eup %2447  ;;  %v831_v11 = vxor.u32 2147483648, %v2446_v25  ;;  %v1642_v34 = vor.u32 4788187, %v1641_v46  ;;  %v584_v9 = vadd.s32 536870912, %v583_v23  ;;  %vm830_vm5 = vcmp.eq.s32.totalorder %v825_v8, 2 }
 0x176   : > { %v828_v36 = vxor.u32 2147483648, %v2448_v27  ;;  %v3112_v38 = vadd.s32 3, %v1652_v18  ;;  %v1370_v16 = vsub.s32 32, %v1369_v21  ;;  %v1645_v0 = vcvt.s32.f32 %v1638_v31 }
 0x177   : > { %v832_v17 = vsel %vm830_vm5, %v831_v11, %v2448_v27  ;;  %v1643_v13 = vand.u32 2147483647, %v1642_v34  ;;  %v585_v58 = vshrl.u32 %v584_v9, 30  ;;  %v3116_v40 = vadd.s32 %v3084_v4, %v3088_v32 }
 0x178   : > { %v829_v41 = vsel %vm827_vm4, %v2446_v25, %v828_v36  ;;  %v1373_v52 = vshrl.u32 %v2520_v49, %v1370_v16  ;;  %v3120_v50 = vadd.f32 %v3046_v19, %v2314_v24  ;;  %v3123_v1 = vshll.u32 %v1363_v43, 8 }
 0x179   : > { %v833_v61 = vsel %vm826_vm3, %v829_v41, %v832_v17  ;;  %v1646_v44 = vmul.f32 %v1645_v0, %v1643_v13  ;;  %v586_v63 = vshll.u32 %v585_v58, 30  ;;  %v1372_v2 = vshll.u32 %v2519_v45, %v1369_v21 }
 0x17a   : > { %v834_v56 = vsel %vm823_vm2, nan, %v833_v61  ;;  %v1376_v37 = vshrl.u32 %v2521_v51, %v1370_v16  ;;  %v1379_v4 = vshrl.u32 %v2522_v53, %v1370_v16  ;;  %v1368_v32 = vshrl.u32 %v1367_v5, 5 }
 0x17b   : > { %2087 = vst.msk [vmem:[%s2876_s28 + $0x18] sm:$0xff] %vm2083_vm0, %v834_v56  ;;  %v1647_v6 = vxor.u32 2147483648, %v1646_v44  ;;  %v3132_v22 = vsub.s32 %v583_v23, %v586_v63  ;;  %v1375_v30 = vshll.u32 %v2520_v49, %v1369_v21  ;;  %v1374_v7 = vor.u32 %v1373_v52, %v1372_v2 }
 0x17c   : > { %v1378_v59 = vshll.u32 %v2521_v51, %v1369_v21  ;;  %v1381_v26 = vshll.u32 %v2522_v53, %v1369_v21  ;;  %v1382_v3 = vshrl.u32 %v2523_v55, %v1370_v16  ;;  %vm525_vm6 = vcmp.lt.s32.totalorder %v2977_v35, 0 }
 0x17d   : > { %v1648_v39 = vsel %vm1565_vm14, %v1647_v6, %v1646_v44  ;;  %v589_v10 = vsub.s32 0, %v3132_v22  ;;  %v1384_v60 = vshll.u32 %v2523_v55, %v1369_v21  ;;  %v1385_v8 = vshrl.u32 %v2524_v62, %v1370_v16 }
 0x17e   : > { %v1651_v14 = vsel %vm3092_vm13, %v2897_v12, %v1648_v39  ;;  %v1377_v57 = vor.u32 %v1376_v37, %v1375_v30  ;;  %v1380_v29 = vor.u32 %v1379_v4, %v1378_v59  ;;  %v1383_v20 = vor.u32 %v1382_v3, %v1381_v26 }
 0x17f   : > { %2449 = vcosq.f32 %v1651_v14  ;;  %v2236_v33 = vmin.u32 %v589_v10, %v3132_v22  ;;  %v1386_v54 = vor.u32 %v1385_v8, %v1384_v60  ;;  %v1046_v18 = vand.u32 2139095040, %v3120_v50 }
 0x180   : > { %2451 = vsinq.f32 %v1651_v14  ;;  %v609_v28 = vsub.s32 4, %v585_v58  ;;  %v1371_v31 = vshrl.u32 %v2519_v45, %v1370_v16  ;;  %vm1387_vm7 = vcmp.lt.s32.totalorder %v1368_v32, 1 }
 0x181   : > { %v591_v46 = vclz %v2236_v33  ;;  %vm1388_vm8 = vcmp.lt.s32.totalorder %v1368_v32, 2  ;;  %vm1389_vm9 = vcmp.lt.s32.totalorder %v1368_v32, 3  ;;  %vm1390_vm11 = vcmp.lt.s32.totalorder %v1368_v32, 4 }
 0x182   : > { %v1392_v48 = vsel %vm1390_vm11, %v1380_v29, 2102212464  ;;  %v1395_v23 = vsel %vm1387_vm7, %v1374_v7, %v1377_v57  ;;  %v1396_v5 = vsel %vm1390_vm11, %v1383_v20, 920167782  ;;  %v1399_v25 = vsel %vm1387_vm7, %v1377_v57, %v1380_v29 }
 0x183   : > { %v2237_v21 = vadd.s32 4294967294, %v591_v46  ;;  %v1391_v27 = vsel %vm1387_vm7, %v1371_v31, %v1374_v7  ;;  %v1397_v11 = vsel %vm1389_vm9, %v1380_v29, %v1396_v5  ;;  %v1400_v34 = vsel %vm1390_vm11, %v1386_v54, 1326507024  ;;  %v2322_v31 = vpop.f32.mrf.mxu1 }
 0x184   : > { %v1393_v9 = vsel %vm1389_vm9, %v1377_v57, %v1392_v48  ;;  %v1398_v43 = vsel %vm1388_vm8, %v1395_v23, %v1397_v11  ;;  %v1401_v24 = vsel %vm1389_vm9, %v1383_v20, %v1400_v34  ;;  %v1047_v36 = vshrl.u32 %v1046_v18, 23 }
 0x185   : > { %vm2238_vm12 = vcmp.lt.s32.totalorder %v2237_v21, 0  ;;  %v1402_v16 = vsel %vm1388_vm8, %v1399_v25, %v1401_v24  ;;  %v3153_v17 = vmul.u32.u64.low %v3123_v1, %v1398_v43  ;;  %v3154_v13 = vmul.u32.u64.high %v3123_v1, %v1398_v43, %v3153_v17 }
 0x186   : > { %v594_v0 = vsel %vm2238_vm12, 0, %v2237_v21  ;;  %v610_v41 = vsel %vm525_vm6, %v609_v28, %v585_v58  ;;  %v3160_v52 = vmul.u32.u64.low %v3123_v1, %v1402_v16  ;;  %v3161_v61 = vmul.u32.u64.high %v3123_v1, %v1402_v16, %v3160_v52 }
 0x187   : > { %v595_v44 = vsub.s32 32, %v594_v0  ;;  %v599_v63 = vsub.s32 4294967266, %v594_v0  ;;  %v1394_v56 = vsel %vm1388_vm8, %v1391_v27, %v1393_v9  ;;  %v2255_v2 = vadd.s32 4294967169, %v1047_v36 }
 0x188   : > { %vm3166_vm10 = vcmp.le.f32.partialorder %v523_v15, 0.7853982  ;;  %v596_v4 = vshll.u32 %v3132_v22, %v594_v0  ;;  %v1043_v6 = vand.u32 2147483647, %v3120_v50  ;;  %v1413_v7 = vadd.s32 1, %v3154_v13 }
 0x189   : > { %v597_v58 = vshrl.u32 %v3116_v40, %v595_v44  ;;  %v600_v30 = vadd.s32 127, %v599_v63  ;;  %v1053_v59 = vadd.s32 1, %v2255_v2  ;;  %v1657_v32 = vand.u32 3, %v3112_v38 }
 0x18a   : > { %v612_v26 = vsel %vm3166_vm10, 0, %v610_v41  ;;  %v1410_v15 = vmul.u32 %v3123_v1, %v1394_v56  ;;  %vm1412_vm13 = vc.u32 %v3161_v61, %v3153_v17  ;;  %vm1655_vm15 = vweird.f32 %v2897_v12 }
 0x18b   : > { %v598_v3 = vor.u32 %v597_v58, %v596_v4  ;;  %v601_v22 = vshll.u32 %v600_v30, 23  ;;  %v1414_v39 = vsel %vm1412_vm13, %v1413_v7, %v3154_v13  ;;  %vm1054_vm14 = vcmp.gt.s32.totalorder %v1053_v59, 0 }
 0x18c   : > { %v2450_v40 = vpop.eup %2449  ;;  %v1415_v10 = vadd.s32 %v1414_v39, %v1410_v15  ;;  %v1055_v60 = vsel %vm1054_vm14, %v1053_v59, 0  ;;  %v616_v57 = vadd.s32 3, %v612_v26  ;;  %v1050_v1 = vand.u32 8388607, %v1043_v6 }
 0x18d   : > { %v2452_v8 = vpop.eup %2451  ;;  %v1663_v38 = vxor.u32 2147483648, %v2450_v40  ;;  %v602_v14 = vor.u32 4788187, %v601_v22  ;;  %vm1662_vm1 = vcmp.eq.s32.totalorder %v1657_v32, 2  ;;  %v1057_v33 = vand.u32 31, %v1055_v60 }
 0x18e   : > { %v1660_v29 = vxor.u32 2147483648, %v2452_v8  ;;  %v1416_v20 = vadd.s32 536870912, %v1415_v10  ;;  %vm1659_vm2 = vcmp.eq.s32.totalorder %v1657_v32, 0  ;;  %v605_v28 = vcvt.s32.f32 %v598_v3 }
 0x18f   : > { %v1664_v54 = vsel %vm1662_vm1, %v1663_v38, %v2452_v8  ;;  %v603_v18 = vand.u32 2147483647, %v602_v14  ;;  %vm1658_vm3 = vcmp.lt.s32.totalorder %v1657_v32, 2  ;;  %v1058_v23 = vsub.s32 32, %v1057_v33 }
 0x190   : > { %v1661_v46 = vsel %vm1659_vm2, %v2450_v40, %v1660_v29  ;;  %v3184_v48 = vshrl.u32 %v1416_v20, 30  ;;  %v3186_v21 = vand.u32 3, %v616_v57  ;;  %v1051_v27 = vor.u32 8388608, %v1050_v1 }
 0x191   : > { %v1665_v5 = vsel %vm1658_vm3, %v1661_v46, %v1664_v54  ;;  %v606_v25 = vmul.f32 %v605_v28, %v603_v18  ;;  %v1060_v9 = vshll.u32 %v2519_v45, %v1057_v33  ;;  %v3193_v43 = vadd.f32 %v3046_v19, %v2322_v31 }
 0x192   : > { %v1666_v11 = vsel %vm1655_vm15, nan, %v1665_v5  ;;  %v1418_v34 = vshll.u32 %v3184_v48, 30  ;;  %v1061_v36 = vshrl.u32 %v2520_v49, %v1058_v23  ;;  %v1064_v16 = vshrl.u32 %v2521_v51, %v1058_v23 }
 0x193   : > { %2095 = vst.msk [vmem:[%s2876_s28 + $0x58] sm:$0xff] %vm2083_vm0, %v1666_v11  ;;  %v607_v24 = vxor.u32 2147483648, %v606_v25  ;;  %v1067_v13 = vshrl.u32 %v2522_v53, %v1058_v23  ;;  %v1063_v12 = vshll.u32 %v2520_v49, %v1057_v33  ;;  %v1066_v41 = vshll.u32 %v2521_v51, %v1057_v33 }
 0x194   : > { %v3200_v0 = vsub.s32 %v1415_v10, %v1418_v34  ;;  %v1070_v52 = vshrl.u32 %v2523_v55, %v1058_v23  ;;  %v1056_v63 = vshrl.u32 %v1055_v60, 5  ;;  %v1062_v56 = vor.u32 %v1061_v36, %v1060_v9 }
 0x195   : > { %v608_v44 = vsel %vm525_vm6, %v607_v24, %v606_v25  ;;  %v1069_v2 = vshll.u32 %v2522_v53, %v1057_v33  ;;  %v1065_v30 = vor.u32 %v1064_v16, %v1063_v12  ;;  %v1068_v7 = vor.u32 %v1067_v13, %v1066_v41 }
 0x196   : > { %v611_v4 = vsel %vm3166_vm10, %v2977_v35, %v608_v44  ;;  %v1421_v58 = vsub.s32 0, %v3200_v0  ;;  %v1072_v32 = vshll.u32 %v2523_v55, %v1057_v33  ;;  %v1073_v26 = vshrl.u32 %v2524_v62, %v1058_v23 }
 0x197   : > { %2453 = vcosq.f32 %v611_v4  ;;  %v1071_v59 = vor.u32 %v1070_v52, %v1069_v2  ;;  %v1091_v3 = vshll.u32 %v1051_v27, 8  ;;  %v1878_v22 = vand.u32 2139095040, %v3193_v43 }
 0x198   : > { %2455 = vsinq.f32 %v611_v4  ;;  %v2268_v15 = vmin.u32 %v1421_v58, %v3200_v0  ;;  %v1059_v39 = vshrl.u32 %v2519_v45, %v1058_v23  ;;  %v1074_v37 = vor.u32 %v1073_v26, %v1072_v32 }
 0x199   : > { %vm1075_vm4 = vcmp.lt.s32.totalorder %v1056_v63, 1  ;;  %vm1076_vm5 = vcmp.lt.s32.totalorder %v1056_v63, 2  ;;  %vm1077_vm6 = vcmp.lt.s32.totalorder %v1056_v63, 3  ;;  %vm1078_vm7 = vcmp.lt.s32.totalorder %v1056_v63, 4 }
 0x19a   : > { %v1423_v40 = vclz %v2268_v15  ;;  %v1083_v10 = vsel %vm1075_vm4, %v1062_v56, %v1065_v30  ;;  %v1080_v60 = vsel %vm1078_vm7, %v1068_v7, 2102212464  ;;  %v1084_v8 = vsel %vm1078_vm7, %v1071_v59, 920167782 }
 0x19b   : > { %v1087_v38 = vsel %vm1075_vm4, %v1065_v30, %v1068_v7  ;;  %v1088_v14 = vsel %vm1078_vm7, %v1074_v37, 1326507024  ;;  %v1441_v1 = vsub.s32 4, %v3184_v48  ;;  %v1085_v29 = vsel %vm1077_vm6, %v1068_v7, %v1084_v8 }
 0x19c   : > { %v2269_v57 = vadd.s32 4294967294, %v1423_v40  ;;  %v1089_v20 = vsel %vm1077_vm6, %v1071_v59, %v1088_v14  ;;  %v1079_v33 = vsel %vm1075_vm4, %v1059_v39, %v1062_v56  ;;  %v1086_v54 = vsel %vm1076_vm5, %v1083_v10, %v1085_v29 }
 0x19d   : > { %v1090_v18 = vsel %vm1076_vm5, %v1087_v38, %v1089_v20  ;;  %v1879_v28 = vshrl.u32 %v1878_v22, 23  ;;  %v1081_v31 = vsel %vm1077_vm6, %v1065_v30, %v1080_v60  ;;  %vm3232_vm9 = vcmp.le.f32.partialorder %v1355_v42, 0.7853982 }
 0x19e   : > { %vm2270_vm8 = vcmp.lt.s32.totalorder %v2269_v57, 0  ;;  %v3223_v46 = vmul.u32.u64.low %v1091_v3, %v1090_v18  ;;  %v3224_v23 = vmul.u32.u64.high %v1091_v3, %v1090_v18, %v3223_v46  ;;  %v1411_v9 = vadd.s32 %v3153_v17, %v3161_v61 }
 0x19f   : > { %v1426_v5 = vsel %vm2270_vm8, 0, %v2269_v57  ;;  %v3226_v25 = vmul.u32.u64.low %v1091_v3, %v1086_v54  ;;  %v3227_v27 = vmul.u32.u64.high %v1091_v3, %v1086_v54, %v3226_v25  ;;  %v2287_v11 = vadd.s32 4294967169, %v1879_v28 }
 0x1a0   : > { %v1427_v24 = vsub.s32 32, %v1426_v5  ;;  %v1431_v36 = vsub.s32 4294967266, %v1426_v5  ;;  %vm615_vm11 = vweird.f32 %v2977_v35  ;;  %vm618_vm12 = vcmp.lt.s32.totalorder %v3186_v21, 2 }
 0x1a1   : > { %vm1357_vm10 = vcmp.lt.s32.totalorder %v3049_v47, 0  ;;  %v1082_v16 = vsel %vm1076_vm5, %v1079_v33, %v1081_v31  ;;  %v1885_v13 = vadd.s32 1, %v2287_v11  ;;  %v1428_v12 = vshll.u32 %v3200_v0, %v1426_v5  ;;  %v372_v0 = vpop.f32.mrf.mxu0 }
 0x1a2   : > { %v1429_v42 = vshrl.u32 %v1411_v9, %v1427_v24  ;;  %v1432_v41 = vadd.s32 127, %v1431_v36  ;;  %vm1100_vm13 = vc.u32 %v3224_v23, %v3226_v25  ;;  %vm619_vm14 = vcmp.eq.s32.totalorder %v3186_v21, 0 }
 0x1a3   : > { %v1442_v17 = vsel %vm1357_vm10, %v1441_v1, %v3184_v48  ;;  %v1101_v61 = vadd.s32 1, %v3227_v27  ;;  %vm1886_vm15 = vcmp.gt.s32.totalorder %v1885_v13, 0  ;;  %v1098_v56 = vmul.u32 %v1091_v3, %v1082_v16 }
 0x1a4   : > { %v2454_v52 = vpop.eup %2453  ;;  %v1430_v44 = vor.u32 %v1429_v42, %v1428_v12  ;;  %v1433_v63 = vshll.u32 %v1432_v41, 23  ;;  %v1887_v2 = vsel %vm1886_vm15, %v1885_v13, 0  ;;  %v1875_v7 = vand.u32 2147483647, %v3193_v43 }
 0x1a5   : > { %v2456_v4 = vpop.eup %2455  ;;  %v623_v58 = vxor.u32 2147483648, %v2454_v52  ;;  %v1102_v30 = vsel %vm1100_vm13, %v1101_v61, %v3227_v27  ;;  %v1889_v59 = vand.u32 31, %v1887_v2  ;;  %vm622_vm1 = vcmp.eq.s32.totalorder %v3186_v21, 2 }
 0x1a6   : > { %v620_v32 = vxor.u32 2147483648, %v2456_v4  ;;  %v1434_v48 = vor.u32 4788187, %v1433_v63  ;;  %v1103_v26 = vadd.s32 %v1102_v30, %v1098_v56  ;;  %v1444_v22 = vsel %vm3232_vm9, 0, %v1442_v17 }
 0x1a7   : > { %v624_v15 = vsel %vm622_vm1, %v623_v58, %v2456_v4  ;;  %v1890_v3 = vsub.s32 32, %v1889_v59  ;;  %v3256_v39 = vadd.f32 %v3046_v19, %v372_v0  ;;  %v1437_v10 = vcvt.s32.f32 %v1430_v44 }
 0x1a8   : > { %v621_v37 = vsel %vm619_vm14, %v2454_v52, %v620_v32  ;;  %v1435_v40 = vand.u32 2147483647, %v1434_v48  ;;  %v1104_v60 = vadd.s32 536870912, %v1103_v26  ;;  %v1882_v38 = vand.u32 8388607, %v1875_v7 }
 0x1a9   : > { %v625_v8 = vsel %vm618_vm12, %v621_v37, %v624_v15  ;;  %v1893_v14 = vshrl.u32 %v2520_v49, %v1890_v3  ;;  %v1896_v57 = vshrl.u32 %v2521_v51, %v1890_v3  ;;  %v1899_v33 = vshrl.u32 %v2522_v53, %v1890_v3 }
 0x1aa   : > { %v626_v1 = vsel %vm615_vm11, nan, %v625_v8  ;;  %v1438_v29 = vmul.f32 %v1437_v10, %v1435_v40  ;;  %v1105_v20 = vshrl.u32 %v1104_v60, 30  ;;  %v1888_v54 = vshrl.u32 %v1887_v2, 5 }
 0x1ab   : > { %2085 = vst.msk [vmem:[%s2876_s28 + $0x8] sm:$0xff] %vm2083_vm0, %v626_v1  ;;  %v1892_v21 = vshll.u32 %v2519_v45, %v1889_v59  ;;  %v1898_v18 = vshll.u32 %v2521_v51, %v1889_v59  ;;  %v1902_v28 = vshrl.u32 %v2523_v55, %v1890_v3  ;;  %v1895_v5 = vshll.u32 %v2520_v49, %v1889_v59 }
 0x1ac   : > { %v1439_v31 = vxor.u32 2147483648, %v1438_v29  ;;  %v1106_v46 = vshll.u32 %v1105_v20, 30  ;;  %v1901_v35 = vshll.u32 %v2522_v53, %v1889_v59  ;;  %v1904_v9 = vshll.u32 %v2523_v55, %v1889_v59 }
 0x1ad   : > { %v1894_v27 = vor.u32 %v1893_v14, %v1892_v21  ;;  %v1900_v11 = vor.u32 %v1899_v33, %v1898_v18  ;;  %v1905_v24 = vshrl.u32 %v2524_v62, %v1890_v3  ;;  %v1897_v13 = vor.u32 %v1896_v57, %v1895_v5 }
 0x1ae   : > { %v1440_v36 = vsel %vm1357_vm10, %v1439_v31, %v1438_v29  ;;  %v3280_v16 = vsub.s32 %v1103_v26, %v1106_v46  ;;  %v1903_v12 = vor.u32 %v1902_v28, %v1901_v35  ;;  %v1448_v41 = vadd.s32 3, %v1444_v22 }
 0x1af   : > { %v1443_v42 = vsel %vm3232_vm9, %v3049_v47, %v1440_v36  ;;  %v1883_v17 = vor.u32 8388608, %v1882_v38  ;;  %v1906_v61 = vor.u32 %v1905_v24, %v1904_v9  ;;  %vm1910_vm2 = vcmp.lt.s32.totalorder %v1888_v54, 4 }
 0x1b0   : > { %2457 = vcosq.f32 %v1443_v42  ;;  %v1109_v52 = vsub.s32 0, %v3280_v16  ;;  %v838_v44 = vand.u32 2139095040, %v3256_v39  ;;  %v1891_v63 = vshrl.u32 %v2519_v45, %v1890_v3 }
 0x1b1   : > { %2459 = vsinq.f32 %v1443_v42  ;;  %vm1907_vm3 = vcmp.lt.s32.totalorder %v1888_v54, 1  ;;  %v1912_v56 = vsel %vm1910_vm2, %v1900_v11, 2102212464  ;;  %vm1909_vm4 = vcmp.lt.s32.totalorder %v1888_v54, 3 }
 0x1b2   : > { %v2256_v2 = vmin.u32 %v1109_v52, %v3280_v16  ;;  %v1915_v0 = vsel %vm1907_vm3, %v1894_v27, %v1897_v13  ;;  %v1916_v34 = vsel %vm1910_vm2, %v1903_v12, 920167782  ;;  %v1129_v4 = vsub.s32 4, %v1105_v20 }
 0x1b3   : > { %v1917_v58 = vsel %vm1909_vm4, %v1900_v11, %v1916_v34  ;;  %v1919_v30 = vsel %vm1907_vm3, %v1897_v13, %v1900_v11  ;;  %v1920_v59 = vsel %vm1910_vm2, %v1906_v61, 1326507024  ;;  %vm1908_vm5 = vcmp.lt.s32.totalorder %v1888_v54, 2 }
 0x1b4   : > { %v1111_v32 = vclz %v2256_v2  ;;  %v1911_v48 = vsel %vm1907_vm3, %v1891_v63, %v1894_v27  ;;  %v1913_v26 = vsel %vm1909_vm4, %v1897_v13, %v1912_v56  ;;  %v1918_v15 = vsel %vm1908_vm5, %v1915_v0, %v1917_v58 }
 0x1b5   : > { %v1921_v22 = vsel %vm1909_vm4, %v1903_v12, %v1920_v59  ;;  %v1923_v37 = vshll.u32 %v1883_v17, 8  ;;  %v839_v40 = vshrl.u32 %v838_v44, 23  ;;  %vm1045_vm6 = vcmp.lt.s32.totalorder %v3120_v50, 0  ;;  %v404_v59 = vpop.f32.mrf.mxu1 }
 0x1b6   : > { %v2257_v3 = vadd.s32 4294967294, %v1111_v32  ;;  %v1922_v10 = vsel %vm1908_vm5, %v1919_v30, %v1921_v22  ;;  %v1130_v57 = vsel %vm1045_vm6, %v1129_v4, %v1105_v20  ;;  %v1914_v1 = vsel %vm1908_vm5, %v1911_v48, %v1913_v26 }
 0x1b7   : > { %v3290_v60 = vmul.u32.u64.low %v1923_v37, %v1922_v10  ;;  %v3291_v8 = vmul.u32.u64.high %v1923_v37, %v1922_v10, %v3290_v60  ;;  %v3293_v38 = vmul.u32.u64.low %v1923_v37, %v1918_v15  ;;  %v3294_v14 = vmul.u32.u64.high %v1923_v37, %v1918_v15, %v3293_v38 }
 0x1b8   : > { %vm2258_vm7 = vcmp.lt.s32.totalorder %v2257_v3, 0  ;;  %v2247_v29 = vadd.s32 4294967169, %v839_v40  ;;  %v1449_v33 = vand.u32 3, %v1448_v41  ;;  %vm3301_vm8 = vcmp.le.f32.partialorder %v1043_v6, 0.7853982 }
 0x1b9   : > { %v1114_v21 = vsel %vm2258_vm7, 0, %v2257_v3  ;;  %v835_v18 = vand.u32 2147483647, %v3256_v39  ;;  %v1099_v28 = vadd.s32 %v3226_v25, %v3224_v23  ;;  %v1132_v20 = vsel %vm3301_vm8, 0, %v1130_v57 }
 0x1ba   : > { %v1115_v31 = vsub.s32 32, %v1114_v21  ;;  %v1119_v46 = vsub.s32 4294967266, %v1114_v21  ;;  %v845_v5 = vadd.s32 1, %v2247_v29  ;;  %v1930_v35 = vmul.u32 %v1923_v37, %v1914_v1 }
 0x1bb   : > { %vm1932_vm9 = vc.u32 %v3291_v8, %v3293_v38  ;;  %v1933_v6 = vadd.s32 1, %v3294_v14  ;;  %v1116_v27 = vshll.u32 %v3280_v16, %v1114_v21  ;;  %vm1454_vm12 = vcmp.eq.s32.totalorder %v1449_v33, 2 }
 0x1bc   : > { %v1117_v11 = vshrl.u32 %v1099_v28, %v1115_v31  ;;  %v1120_v9 = vadd.s32 127, %v1119_v46  ;;  %vm846_vm11 = vcmp.gt.s32.totalorder %v845_v5, 0  ;;  %v1136_v61 = vadd.s32 3, %v1132_v20 }
 0x1bd   : > { %v2458_v24 = vpop.eup %2457  ;;  %v1934_v23 = vsel %vm1932_vm9, %v1933_v6, %v3294_v14  ;;  %v847_v25 = vsel %vm846_vm11, %v845_v5, 0  ;;  %v842_v52 = vand.u32 8388607, %v835_v18  ;;  %vm1451_vm10 = vcmp.eq.s32.totalorder %v1449_v33, 0 }
 0x1be   : > { %v2460_v36 = vpop.eup %2459  ;;  %v1455_v13 = vxor.u32 2147483648, %v2458_v24  ;;  %v1118_v12 = vor.u32 %v1117_v11, %v1116_v27  ;;  %v1121_v42 = vshll.u32 %v1120_v9, 23  ;;  %v1935_v41 = vadd.s32 %v1934_v23, %v1930_v35 }
 0x1bf   : > { %v1452_v17 = vxor.u32 2147483648, %v2460_v36  ;;  %v849_v44 = vand.u32 31, %v847_v25  ;;  %vm1447_vm13 = vweird.f32 %v3049_v47  ;;  %vm1450_vm14 = vcmp.lt.s32.totalorder %v1449_v33, 2 }
 0x1c0   : > { %v1456_v16 = vsel %vm1454_vm12, %v1455_v13, %v2460_v36  ;;  %v1122_v63 = vor.u32 4788187, %v1121_v42  ;;  %v1936_v56 = vadd.s32 536870912, %v1935_v41  ;;  %v1125_v58 = vcvt.s32.f32 %v1118_v12 }
 0x1c1   : > { %v1453_v2 = vsel %vm1451_vm10, %v2458_v24, %v1452_v17  ;;  %v850_v0 = vsub.s32 32, %v849_v44  ;;  %v3320_v48 = vand.u32 3, %v1136_v61  ;;  %v843_v26 = vor.u32 8388608, %v842_v52 }
 0x1c2   : > { %v1457_v34 = vsel %vm1450_vm14, %v1453_v2, %v1456_v16  ;;  %v1123_v4 = vand.u32 2147483647, %v1122_v63  ;;  %v3318_v30 = vshrl.u32 %v1936_v56, 30  ;;  %v848_v40 = vshrl.u32 %v847_v25, 5 }
 0x1c3   : > { %v1458_v32 = vsel %vm1447_vm13, nan, %v1457_v34  ;;  %v853_v47 = vshrl.u32 %v2520_v49, %v850_v0  ;;  %v856_v37 = vshrl.u32 %v2521_v51, %v850_v0  ;;  %v859_v3 = vshrl.u32 %v2522_v53, %v850_v0 }
 0x1c4   : > { %2093 = vst.msk [vmem:[%s2876_s28 + $0x48] sm:$0xff] %vm2083_vm0, %v1458_v32  ;;  %v1126_v15 = vmul.f32 %v1125_v58, %v1123_v4  ;;  %v1938_v22 = vshll.u32 %v3318_v30, 30  ;;  %v862_v10 = vshrl.u32 %v2523_v55, %v850_v0  ;;  %v3330_v60 = vadd.f32 %v3046_v19, %v404_v59 }
 0x1c5   : > { %v852_v1 = vshll.u32 %v2519_v45, %v849_v44  ;;  %v855_v29 = vshll.u32 %v2520_v49, %v849_v44  ;;  %v858_v33 = vshll.u32 %v2521_v51, %v849_v44  ;;  %v861_v21 = vshll.u32 %v2522_v53, %v849_v44 }
 0x1c6   : > { %v1127_v14 = vxor.u32 2147483648, %v1126_v15  ;;  %v3332_v57 = vsub.s32 %v1935_v41, %v1938_v22  ;;  %v864_v28 = vshll.u32 %v2523_v55, %v849_v44  ;;  %v865_v31 = vshrl.u32 %v2524_v62, %v850_v0 }
 0x1c7   : > { %v854_v5 = vor.u32 %v853_v47, %v852_v1  ;;  %v857_v20 = vor.u32 %v856_v37, %v855_v29  ;;  %vm1877_vm15 = vcmp.lt.s32.totalorder %v3193_v43, 0  ;;  %v860_v6 = vor.u32 %v859_v3, %v858_v33 }
 0x1c8   : > { %v1128_v46 = vsel %vm1045_vm6, %v1127_v14, %v1126_v15  ;;  %v1941_v19 = vsub.s32 0, %v3332_v57  ;;  %v863_v27 = vor.u32 %v862_v10, %v861_v21  ;;  %v866_v11 = vor.u32 %v865_v31, %v864_v28 }
 0x1c9   : > { %v1131_v35 = vsel %vm3301_vm8, %v3120_v50, %v1128_v46  ;;  %v883_v24 = vshll.u32 %v843_v26, 8  ;;  %v1670_v23 = vand.u32 2139095040, %v3330_v60  ;;  %v1961_v25 = vsub.s32 4, %v3318_v30 }
 0x1ca   : > { %2461 = vcosq.f32 %v1131_v35  ;;  %v2288_v9 = vmin.u32 %v1941_v19, %v3332_v57  ;;  %v851_v36 = vshrl.u32 %v2519_v45, %v850_v0  ;;  %vm867_vm1 = vcmp.lt.s32.totalorder %v848_v40, 1 }
 0x1cb   : > { %2463 = vsinq.f32 %v1131_v35  ;;  %vm869_vm2 = vcmp.lt.s32.totalorder %v848_v40, 3  ;;  %vm870_vm3 = vcmp.lt.s32.totalorder %v848_v40, 4  ;;  %v875_v54 = vsel %vm867_vm1, %v854_v5, %v857_v20 }
 0x1cc   : > { %v1943_v13 = vclz %v2288_v9  ;;  %v872_v12 = vsel %vm870_vm3, %v860_v6, 2102212464  ;;  %v876_v42 = vsel %vm870_vm3, %v863_v27, 920167782  ;;  %v879_v41 = vsel %vm867_vm1, %v857_v20, %v860_v6 }
 0x1cd   : > { %v880_v17 = vsel %vm870_vm3, %v866_v11, 1326507024  ;;  %vm868_vm4 = vcmp.lt.s32.totalorder %v848_v40, 2  ;;  %v877_v52 = vsel %vm869_vm2, %v860_v6, %v876_v42  ;;  %v871_v16 = vsel %vm867_vm1, %v851_v36, %v854_v5  ;;  %v2315_v40 = vpop.f32.mrf.mxu0 }
 0x1ce   : > { %v2289_v61 = vadd.s32 4294967294, %v1943_v13  ;;  %v881_v44 = vsel %vm869_vm2, %v863_v27, %v880_v17  ;;  %v878_v63 = vsel %vm868_vm4, %v875_v54, %v877_v52  ;;  %v1671_v2 = vshrl.u32 %v1670_v23, 23  ;;  %v3390_v27 = vld [vmem:[%s3752_s2] ss:$0 sm:$0xff] }
 0x1cf   : > { %v882_v56 = vsel %vm868_vm4, %v879_v41, %v881_v44  ;;  %v873_v0 = vsel %vm869_vm2, %v857_v20, %v872_v12  ;;  %v3359_v59 = vmul.u32.u64.low %v883_v24, %v878_v63  ;;  %v3360_v32 = vmul.u32.u64.high %v883_v24, %v878_v63, %v3359_v59 }
 0x1d0   : > { %vm2290_vm5 = vcmp.lt.s32.totalorder %v2289_v61, 0  ;;  %v3356_v34 = vmul.u32.u64.low %v883_v24, %v882_v56  ;;  %v3357_v4 = vmul.u32.u64.high %v883_v24, %v882_v56, %v3356_v34  ;;  %v2279_v26 = vadd.s32 4294967169, %v1671_v2 }
 0x1d1   : > { %v1946_v58 = vsel %vm2290_vm5, 0, %v2289_v61  ;;  %v1931_v15 = vadd.s32 %v3293_v38, %v3291_v8  ;;  %v1962_v37 = vsel %vm1877_vm15, %v1961_v25, %v3318_v30  ;;  %vm1138_vm6 = vcmp.lt.s32.totalorder %v3320_v48, 2 }
 0x1d2   : > { %v1947_v22 = vsub.s32 32, %v1946_v58  ;;  %v1951_v47 = vsub.s32 4294967266, %v1946_v58  ;;  %vm3371_vm7 = vcmp.le.f32.partialorder %v1875_v7, 0.7853982  ;;  %v874_v10 = vsel %vm868_vm4, %v871_v16, %v873_v0 }
 0x1d3   : > { %v1677_v14 = vadd.s32 1, %v2279_v26  ;;  %vm1135_vm8 = vweird.f32 %v3120_v50  ;;  %v1948_v8 = vshll.u32 %v3332_v57, %v1946_v58  ;;  %vm892_vm9 = vc.u32 %v3357_v4, %v3359_v59 }
 0x1d4   : > { %v1949_v38 = vshrl.u32 %v1931_v15, %v1947_v22  ;;  %v1952_v1 = vadd.s32 127, %v1951_v47  ;;  %v1964_v30 = vsel %vm3371_vm7, 0, %v1962_v37  ;;  %v893_v7 = vadd.s32 1, %v3360_v32 }
 0x1d5   : > { %v1667_v29 = vand.u32 2147483647, %v3330_v60  ;;  %vm1678_vm11 = vcmp.gt.s32.totalorder %v1677_v14, 0  ;;  %v890_v28 = vmul.u32 %v883_v24, %v874_v10  ;;  %vm1139_vm12 = vcmp.eq.s32.totalorder %v3320_v48, 0 }
 0x1d6   : > { %v1950_v33 = vor.u32 %v1949_v38, %v1948_v8  ;;  %v1953_v21 = vshll.u32 %v1952_v1, 23  ;;  %v1679_v31 = vsel %vm1678_vm11, %v1677_v14, 0  ;;  %vm1142_vm10 = vcmp.eq.s32.totalorder %v3320_v48, 2 }
 0x1d7   : > { %v2462_v46 = vpop.eup %2461  ;;  %v894_v57 = vsel %vm892_vm9, %v893_v7, %v3360_v32  ;;  %v1681_v19 = vand.u32 31, %v1679_v31  ;;  %v3393_v11 = vadd.f32 %v3390_v27, %v2315_v40  ;;  %v3395_v24 = vadd.s32 3, %v1964_v30 }
 0x1d8   : > { %v2464_v5 = vpop.eup %2463  ;;  %v1143_v20 = vxor.u32 2147483648, %v2462_v46  ;;  %v1954_v35 = vor.u32 4788187, %v1953_v21  ;;  %v895_v6 = vadd.s32 %v894_v57, %v890_v28  ;;  %v1674_v23 = vand.u32 8388607, %v1667_v29 }
 0x1d9   : > { %v1140_v9 = vxor.u32 2147483648, %v2464_v5  ;;  %v1682_v25 = vsub.s32 32, %v1681_v19  ;;  %v1957_v54 = vcvt.s32.f32 %v1950_v33  ;;  %v1684_v41 = vshll.u32 %v2519_v45, %v1681_v19 }
 0x1da   : > { %v1144_v36 = vsel %vm1142_vm10, %v1143_v20, %v2464_v5  ;;  %v1955_v13 = vand.u32 2147483647, %v1954_v35  ;;  %v896_v12 = vadd.s32 536870912, %v895_v6  ;;  %v1675_v2 = vor.u32 8388608, %v1674_v23 }
 0x1db   : > { %v1141_v42 = vsel %vm1139_vm12, %v2462_v46, %v1140_v9  ;;  %v1685_v17 = vshrl.u32 %v2520_v49, %v1682_v25  ;;  %v1688_v61 = vshrl.u32 %v2521_v51, %v1682_v25  ;;  %v1691_v63 = vshrl.u32 %v2522_v53, %v1682_v25 }
 0x1dc   : > { %v1145_v52 = vsel %vm1138_vm6, %v1141_v42, %v1144_v36  ;;  %v1958_v44 = vmul.f32 %v1957_v54, %v1955_v13  ;;  %v3406_v16 = vshrl.u32 %v896_v12, 30  ;;  %v1680_v0 = vshrl.u32 %v1679_v31, 5  ;;  %v2323_v54 = vpop.f32.mrf.mxu1 }
 0x1dd   : > { %v1146_v56 = vsel %vm1135_vm8, nan, %v1145_v52  ;;  %v1687_v34 = vshll.u32 %v2520_v49, %v1681_v19  ;;  %v1686_v26 = vor.u32 %v1685_v17, %v1684_v41  ;;  %v1690_v48 = vshll.u32 %v2521_v51, %v1681_v19 }
 0x1de   : > { %2090 = vst.msk [vmem:[%s2876_s28 + $0x30] sm:$0xff] %vm2083_vm0, %v1146_v56  ;;  %v1959_v58 = vxor.u32 2147483648, %v1958_v44  ;;  %v898_v32 = vshll.u32 %v3406_v16, 30  ;;  %v1693_v15 = vshll.u32 %v2522_v53, %v1681_v19  ;;  %v1694_v22 = vshrl.u32 %v2523_v55, %v1682_v25 }
 0x1df   : > { %v1696_v47 = vshll.u32 %v2523_v55, %v1681_v19  ;;  %v1697_v50 = vshrl.u32 %v2524_v62, %v1682_v25  ;;  %v1689_v14 = vor.u32 %v1688_v61, %v1687_v34  ;;  %v1692_v8 = vor.u32 %v1691_v63, %v1690_v48 }
 0x1e0   : > { %v1960_v37 = vsel %vm1877_vm15, %v1959_v58, %v1958_v44  ;;  %v3422_v10 = vsub.s32 %v895_v6, %v898_v32  ;;  %v1695_v1 = vor.u32 %v1694_v22, %v1693_v15  ;;  %v1147_v7 = vand.u32 2147483647, %v3393_v11 }
 0x1e1   : > { %v1963_v38 = vsel %vm3371_vm7, %v3193_v43, %v1960_v37  ;;  %v1698_v30 = vor.u32 %v1697_v50, %v1696_v47  ;;  %v1683_v33 = vshrl.u32 %v2519_v45, %v1682_v25  ;;  %v1150_v21 = vand.u32 2139095040, %v3393_v11 }
 0x1e2   : > { %2465 = vcosq.f32 %v1963_v38  ;;  %v901_v40 = vsub.s32 0, %v3422_v10  ;;  %vm837_vm13 = vcmp.lt.s32.totalorder %v3256_v39, 0  ;;  %vm1699_vm14 = vcmp.lt.s32.totalorder %v1680_v0, 1 }
 0x1e3   : > { %2467 = vsinq.f32 %v1963_v38  ;;  %vm1701_vm15 = vcmp.lt.s32.totalorder %v1680_v0, 3  ;;  %vm1702_vm1 = vcmp.lt.s32.totalorder %v1680_v0, 4  ;;  %v1707_v31 = vsel %vm1699_vm14, %v1686_v26, %v1689_v14 }
 0x1e4   : > { %v2248_v3 = vmin.u32 %v901_v40, %v3422_v10  ;;  %v1704_v28 = vsel %vm1702_vm1, %v1692_v8, 2102212464  ;;  %v1708_v46 = vsel %vm1702_vm1, %v1695_v1, 920167782  ;;  %v1711_v19 = vsel %vm1699_vm14, %v1689_v14, %v1692_v8 }
 0x1e5   : > { %v1709_v57 = vsel %vm1701_vm15, %v1692_v8, %v1708_v46  ;;  %v1712_v5 = vsel %vm1702_vm1, %v1698_v30, 1326507024  ;;  %v1715_v20 = vshll.u32 %v1675_v2, 8  ;;  %v921_v6 = vsub.s32 4, %v3406_v16 }
 0x1e6   : > { %v903_v35 = vclz %v2248_v3  ;;  %vm1700_vm2 = vcmp.lt.s32.totalorder %v1680_v0, 2  ;;  %v1703_v9 = vsel %vm1699_vm14, %v1683_v33, %v1686_v26  ;;  %v1705_v23 = vsel %vm1701_vm15, %v1689_v14, %v1704_v28 }
 0x1e7   : > { %v1710_v25 = vsel %vm1700_vm2, %v1707_v31, %v1709_v57  ;;  %v1713_v36 = vsel %vm1701_vm15, %v1695_v1, %v1712_v5  ;;  %v1151_v13 = vshrl.u32 %v1150_v21, 23  ;;  %vm3442_vm3 = vcmp.le.f32.partialorder %v835_v18, 0.7853982 }
 0x1e8   : > { %v2249_v12 = vadd.s32 4294967294, %v903_v35  ;;  %v1714_v42 = vsel %vm1700_vm2, %v1711_v19, %v1713_v36  ;;  %v3437_v41 = vmul.u32.u64.low %v1715_v20, %v1710_v25  ;;  %v3438_v17 = vmul.u32.u64.high %v1715_v20, %v1710_v25, %v3437_v41 }
 0x1e9   : > { %v3446_v52 = vmul.u32.u64.low %v1715_v20, %v1714_v42  ;;  %v3447_v44 = vmul.u32.u64.high %v1715_v20, %v1714_v42, %v3446_v52  ;;  %v2259_v63 = vadd.s32 4294967169, %v1151_v13  ;;  %v1969_v56 = vand.u32 3, %v3395_v24 }
 0x1ea   : > { %vm2250_vm4 = vcmp.lt.s32.totalorder %v2249_v12, 0  ;;  %v1706_v2 = vsel %vm1700_vm2, %v1703_v9, %v1705_v23  ;;  %v3451_v0 = vadd.f32 %v3390_v27, %v2323_v54  ;;  %v891_v34 = vadd.s32 %v3359_v59, %v3357_v4 }
 0x1eb   : > { %v906_v58 = vsel %vm2250_vm4, 0, %v2249_v12  ;;  %v3457_v18 = vand.u32 8388607, %v1147_v7  ;;  %v1157_v32 = vadd.s32 1, %v2259_v63  ;;  %vm1967_vm5 = vweird.f32 %v3193_v43 }
 0x1ec   : > { %v907_v26 = vsub.s32 32, %v906_v58  ;;  %v911_v48 = vsub.s32 4294967266, %v906_v58  ;;  %v922_v24 = vsel %vm837_vm13, %v921_v6, %v3406_v16  ;;  %v1725_v15 = vadd.s32 1, %v3438_v17 }
 0x1ed   : > { %v908_v22 = vshll.u32 %v3422_v10, %v906_v58  ;;  %v1722_v47 = vmul.u32 %v1715_v20, %v1706_v2  ;;  %vm1724_vm6 = vc.u32 %v3447_v44, %v3437_v41  ;;  %vm1158_vm7 = vcmp.gt.s32.totalorder %v1157_v32, 0 }
 0x1ee   : > { %v909_v4 = vshrl.u32 %v891_v34, %v907_v26  ;;  %v912_v59 = vadd.s32 127, %v911_v48  ;;  %v1726_v50 = vsel %vm1724_vm6, %v1725_v15, %v3438_v17  ;;  %v1159_v37 = vsel %vm1158_vm7, %v1157_v32, 0 }
 0x1ef   : > { %v2466_v14 = vpop.eup %2465  ;;  %vm1970_vm8 = vcmp.lt.s32.totalorder %v1969_v56, 2  ;;  %v924_v8 = vsel %vm3442_vm3, 0, %v922_v24  ;;  %v1727_v38 = vadd.s32 %v1726_v50, %v1722_v47  ;;  %v1161_v16 = vand.u32 31, %v1159_v37 }
 0x1f0   : > { %v2468_v1 = vpop.eup %2467  ;;  %vm1971_vm9 = vcmp.eq.s32.totalorder %v1969_v56, 0  ;;  %v1975_v30 = vxor.u32 2147483648, %v2466_v14  ;;  %v910_v10 = vor.u32 %v909_v4, %v908_v22  ;;  %v913_v40 = vshll.u32 %v912_v59, 23 }
 0x1f1   : > { %v1972_v33 = vxor.u32 2147483648, %v2468_v1  ;;  %vm1974_vm11 = vcmp.eq.s32.totalorder %v1969_v56, 2  ;;  %v1728_v21 = vadd.s32 536870912, %v1727_v38  ;;  %v1162_v3 = vsub.s32 32, %v1161_v16 }
 0x1f2   : > { %v1976_v28 = vsel %vm1974_vm11, %v1975_v30, %v2468_v1  ;;  %v914_v31 = vor.u32 4788187, %v913_v40  ;;  %v3469_v46 = vadd.s32 3, %v924_v8  ;;  %v1155_v57 = vor.u32 8388608, %v3457_v18 }
 0x1f3   : > { %v1973_v19 = vsel %vm1971_vm9, %v2466_v14, %v1972_v33  ;;  %v1729_v5 = vshrl.u32 %v1728_v21, 30  ;;  %v1979_v20 = vand.u32 2147483647, %v3451_v0  ;;  %v1982_v35 = vand.u32 2139095040, %v3451_v0 }
 0x1f4   : > { %v1977_v6 = vsel %vm1970_vm8, %v1973_v19, %v1976_v28  ;;  %v915_v9 = vand.u32 2147483647, %v914_v31  ;;  %v917_v23 = vcvt.s32.f32 %v910_v10  ;;  %v1165_v25 = vshrl.u32 %v2520_v49, %v1162_v3 }
 0x1f5   : > { %v1978_v36 = vsel %vm1967_vm5, nan, %v1977_v6  ;;  %v3479_v13 = vadd.s32 %v3437_v41, %v3447_v44  ;;  %v1730_v54 = vshll.u32 %v1729_v5, 30  ;;  %v1168_v12 = vshrl.u32 %v2521_v51, %v1162_v3 }
 0x1f6   : > { %2098 = vst.msk [vmem:[%s2876_s28 + $0x70] sm:$0xff] %vm2083_vm0, %v1978_v36  ;;  %v918_v42 = vmul.f32 %v917_v23, %v915_v9  ;;  %v1160_v17 = vshrl.u32 %v1159_v37, 5  ;;  %v1164_v52 = vshll.u32 %v2519_v45, %v1161_v16  ;;  %v1171_v63 = vshrl.u32 %v2522_v53, %v1162_v3 }
 0x1f7   : > { %v3486_v56 = vsub.s32 %v1727_v38, %v1730_v54  ;;  %v1167_v2 = vshll.u32 %v2520_v49, %v1161_v16  ;;  %v1170_v43 = vshll.u32 %v2521_v51, %v1161_v16  ;;  %v1174_v41 = vshrl.u32 %v2523_v55, %v1162_v3 }
 0x1f8   : > { %v919_v44 = vxor.u32 2147483648, %v918_v42  ;;  %v1166_v34 = vor.u32 %v1165_v25, %v1164_v52  ;;  %v1173_v58 = vshll.u32 %v2522_v53, %v1161_v16  ;;  %v1177_v18 = vshrl.u32 %v2524_v62, %v1162_v3 }
 0x1f9   : > { %vm1669_vm12 = vcmp.lt.s32.totalorder %v3330_v60, 0  ;;  %v1733_v32 = vsub.s32 0, %v3486_v56  ;;  %v1169_v26 = vor.u32 %v1168_v12, %v1167_v2  ;;  %v1172_v48 = vor.u32 %v1171_v63, %v1170_v43 }
 0x1fa   : > { %v1176_v24 = vshll.u32 %v2523_v55, %v1161_v16  ;;  %v920_v15 = vsel %vm837_vm13, %v919_v44, %v918_v42  ;;  %v1175_v22 = vor.u32 %v1174_v41, %v1173_v58  ;;  %v1195_v47 = vshll.u32 %v1155_v57, 8 }
 0x1fb   : > { %v1983_v4 = vshrl.u32 %v1982_v35, 23  ;;  %v923_v59 = vsel %vm3442_vm3, %v3256_v39, %v920_v15  ;;  %v2280_v50 = vmin.u32 %v1733_v32, %v3486_v56  ;;  %v1163_v37 = vshrl.u32 %v2519_v45, %v1162_v3 }
 0x1fc   : > { %v1178_v14 = vor.u32 %v1177_v18, %v1176_v24  ;;  %2469 = vcosq.f32 %v923_v59  ;;  %v1753_v8 = vsub.s32 4, %v1729_v5  ;;  %vm1179_vm10 = vcmp.lt.s32.totalorder %v1160_v17, 1 }
 0x1fd   : > { %vm1182_vm14 = vcmp.lt.s32.totalorder %v1160_v17, 4  ;;  %2471 = vsinq.f32 %v923_v59  ;;  %v1735_v38 = vclz %v2280_v50  ;;  %v1187_v1 = vsel %vm1179_vm10, %v1166_v34, %v1169_v26 }
 0x1fe   : > { %v1184_v16 = vsel %vm1182_vm14, %v1172_v48, 2102212464  ;;  %vm1180_vm13 = vcmp.lt.s32.totalorder %v1160_v17, 2  ;;  %vm1181_vm15 = vcmp.lt.s32.totalorder %v1160_v17, 3  ;;  %v1188_v30 = vsel %vm1182_vm14, %v1175_v22, 920167782 }
 0x1ff   : > { %v1191_v10 = vsel %vm1179_vm10, %v1169_v26, %v1172_v48  ;;  %v2281_v40 = vadd.s32 4294967294, %v1735_v38  ;;  %v1183_v61 = vsel %vm1179_vm10, %v1163_v37, %v1166_v34  ;;  %v1189_v33 = vsel %vm1181_vm15, %v1172_v48, %v1188_v30 }
 0x200   : > { %v1192_v21 = vsel %vm1182_vm14, %v1178_v14, 1326507024  ;;  %v1185_v28 = vsel %vm1181_vm15, %v1169_v26, %v1184_v16  ;;  %v1190_v3 = vsel %vm1180_vm13, %v1187_v1, %v1189_v33  ;;  %v2291_v57 = vadd.s32 4294967169, %v1983_v4 }
 0x201   : > { %v1193_v31 = vsel %vm1181_vm15, %v1175_v22, %v1192_v21  ;;  %vm2282_vm1 = vcmp.lt.s32.totalorder %v2281_v40, 0  ;;  %v3505_v35 = vmul.u32.u64.low %v1195_v47, %v1190_v3  ;;  %v3506_v6 = vmul.u32.u64.high %v1195_v47, %v1190_v3, %v3505_v35 }
 0x202   : > { %v1194_v19 = vsel %vm1180_vm13, %v1191_v10, %v1193_v31  ;;  %v1738_v9 = vsel %vm2282_vm1, 0, %v2281_v40  ;;  %v1754_v23 = vsel %vm1669_vm12, %v1753_v8, %v1729_v5  ;;  %v1186_v42 = vsel %vm1180_vm13, %v1183_v61, %v1185_v28 }
 0x203   : > { %v3511_v25 = vmul.u32.u64.low %v1195_v47, %v1194_v19  ;;  %v3512_v36 = vmul.u32.u64.high %v1195_v47, %v1194_v19, %v3511_v25  ;;  %v1739_v54 = vsub.s32 32, %v1738_v9  ;;  %v1743_v12 = vsub.s32 4294967266, %v1738_v9 }
 0x204   : > { %v1989_v52 = vadd.s32 1, %v2291_v57  ;;  %v929_v63 = vand.u32 3, %v3469_v46  ;;  %vm3518_vm2 = vcmp.le.f32.partialorder %v1667_v29, 0.7853982  ;;  %v1740_v43 = vshll.u32 %v3486_v56, %v1738_v9 }
 0x205   : > { %v1741_v5 = vshrl.u32 %v3479_v13, %v1739_v54  ;;  %v1744_v41 = vadd.s32 127, %v1743_v12  ;;  %v1205_v44 = vadd.s32 1, %v3506_v6  ;;  %v1756_v17 = vsel %vm3518_vm2, 0, %v1754_v23  ;;  %v375_v12 = vpop.f32.mrf.mxu0 }
 0x206   : > { %vm1990_vm3 = vcmp.gt.s32.totalorder %v1989_v52, 0  ;;  %v1202_v34 = vmul.u32 %v1195_v47, %v1186_v42  ;;  %vm1204_vm4 = vc.u32 %v3512_v36, %v3505_v35  ;;  %v1986_v56 = vand.u32 8388607, %v1979_v20 }
 0x207   : > { %v1991_v46 = vsel %vm1990_vm3, %v1989_v52, 0  ;;  %v1742_v29 = vor.u32 %v1741_v5, %v1740_v43  ;;  %v1745_v58 = vshll.u32 %v1744_v41, 23  ;;  %v1206_v18 = vsel %vm1204_vm4, %v1205_v44, %v3506_v6 }
 0x208   : > { %vm927_vm5 = vweird.f32 %v3256_v39  ;;  %v1207_v13 = vadd.s32 %v1206_v18, %v1202_v34  ;;  %v1993_v32 = vand.u32 31, %v1991_v46  ;;  %vm930_vm6 = vcmp.lt.s32.totalorder %v929_v63, 2 }
 0x209   : > { %v2470_v26 = vpop.eup %2469  ;;  %vm931_vm7 = vcmp.eq.s32.totalorder %v929_v63, 0  ;;  %vm934_vm8 = vcmp.eq.s32.totalorder %v929_v63, 2  ;;  %v1746_v48 = vor.u32 4788187, %v1745_v58  ;;  %v1760_v22 = vadd.s32 3, %v1756_v17 }
 0x20a   : > { %v2472_v24 = vpop.eup %2471  ;;  %v935_v15 = vxor.u32 2147483648, %v2470_v26  ;;  %v1208_v47 = vadd.s32 536870912, %v1207_v13  ;;  %v1994_v4 = vsub.s32 32, %v1993_v32  ;;  %v1749_v37 = vcvt.s32.f32 %v1742_v29 }
 0x20b   : > { %v932_v59 = vxor.u32 2147483648, %v2472_v24  ;;  %v1747_v50 = vand.u32 2147483647, %v1746_v48  ;;  %v1987_v14 = vor.u32 8388608, %v1986_v56  ;;  %v1996_v16 = vshll.u32 %v2519_v45, %v1993_v32 }
 0x20c   : > { %v936_v8 = vsel %vm934_vm8, %v935_v15, %v2472_v24  ;;  %v3533_v38 = vshrl.u32 %v1208_v47, 30  ;;  %v1997_v1 = vshrl.u32 %v2520_v49, %v1994_v4  ;;  %v2000_v40 = vshrl.u32 %v2521_v51, %v1994_v4 }
 0x20d   : > { %v933_v30 = vsel %vm931_vm7, %v2470_v26, %v932_v59  ;;  %v1750_v10 = vmul.f32 %v1749_v37, %v1747_v50  ;;  %v2003_v61 = vshrl.u32 %v2522_v53, %v1994_v4  ;;  %v1992_v28 = vshrl.u32 %v1991_v46, 5  ;;  %v407_v37 = vpop.f32.mrf.mxu1 }
 0x20e   : > { %v937_v33 = vsel %vm930_vm6, %v933_v30, %v936_v8  ;;  %v1210_v21 = vshll.u32 %v3533_v38, 30  ;;  %v1999_v3 = vshll.u32 %v2520_v49, %v1993_v32  ;;  %v1998_v19 = vor.u32 %v1997_v1, %v1996_v16 }
 0x20f   : > { %v938_v31 = vsel %vm927_vm5, nan, %v937_v33  ;;  %v1751_v57 = vxor.u32 2147483648, %v1750_v10  ;;  %v2002_v6 = vshll.u32 %v2521_v51, %v1993_v32  ;;  %v2005_v25 = vshll.u32 %v2522_v53, %v1993_v32 }
 0x210   : > { %2088 = vst.msk [vmem:[%s2876_s28 + $0x20] sm:$0xff] %vm2083_vm0, %v938_v31  ;;  %v3548_v9 = vsub.s32 %v1207_v13, %v1210_v21  ;;  %v2001_v23 = vor.u32 %v2000_v40, %v1999_v3  ;;  %v2006_v54 = vshrl.u32 %v2523_v55, %v1994_v4  ;;  %v2008_v39 = vshll.u32 %v2523_v55, %v1993_v32 }
 0x211   : > { %v1752_v42 = vsel %vm1669_vm12, %v1751_v57, %v1750_v10  ;;  %v2004_v52 = vor.u32 %v2003_v61, %v2002_v6  ;;  %v2009_v63 = vshrl.u32 %v2524_v62, %v1994_v4  ;;  %v3559_v5 = vand.u32 3, %v1760_v22 }
 0x212   : > { %v1755_v43 = vsel %vm3518_vm2, %v3330_v60, %v1752_v42  ;;  %v1213_v41 = vsub.s32 0, %v3548_v9  ;;  %v2007_v44 = vor.u32 %v2006_v54, %v2005_v25  ;;  %vm2011_vm9 = vcmp.lt.s32.totalorder %v1992_v28, 1 }
 0x213   : > { %2473 = vcosq.f32 %v1755_v43  ;;  %v2010_v17 = vor.u32 %v2009_v63, %v2008_v39  ;;  %v3563_v34 = vadd.f32 %v3390_v27, %v375_v12  ;;  %v1995_v29 = vshrl.u32 %v2519_v45, %v1994_v4 }
 0x214   : > { %2475 = vsinq.f32 %v1755_v43  ;;  %v2260_v46 = vmin.u32 %v1213_v41, %v3548_v9  ;;  %vm2014_vm11 = vcmp.lt.s32.totalorder %v1992_v28, 4  ;;  %v2019_v2 = vsel %vm2011_vm9, %v1998_v19, %v2001_v23 }
 0x215   : > { %v2016_v58 = vsel %vm2014_vm11, %v2004_v52, 2102212464  ;;  %v2020_v18 = vsel %vm2014_vm11, %v2007_v44, 920167782  ;;  %v2027_v56 = vshll.u32 %v1987_v14, 8  ;;  %vm2013_vm12 = vcmp.lt.s32.totalorder %v1992_v28, 3 }
 0x216   : > { %v1215_v13 = vclz %v2260_v46  ;;  %v2015_v32 = vsel %vm2011_vm9, %v1995_v29, %v1998_v19  ;;  %v2023_v26 = vsel %vm2011_vm9, %v2001_v23, %v2004_v52  ;;  %vm2012_vm10 = vcmp.lt.s32.totalorder %v1992_v28, 2 }
 0x217   : > { %v2017_v48 = vsel %vm2013_vm12, %v2001_v23, %v2016_v58  ;;  %v2021_v24 = vsel %vm2013_vm12, %v2004_v52, %v2020_v18  ;;  %v2024_v15 = vsel %vm2014_vm11, %v2010_v17, 1326507024  ;;  %v1233_v47 = vsub.s32 4, %v3533_v38 }
 0x218   : > { %v2261_v22 = vadd.s32 4294967294, %v1215_v13  ;;  %v2022_v59 = vsel %vm2012_vm10, %v2019_v2, %v2021_v24  ;;  %v2025_v50 = vsel %vm2013_vm12, %v2007_v44, %v2024_v15  ;;  %v2018_v4 = vsel %vm2012_vm10, %v2015_v32, %v2017_v48 }
 0x219   : > { %v2026_v8 = vsel %vm2012_vm10, %v2023_v26, %v2025_v50  ;;  %v3568_v16 = vmul.u32.u64.low %v2027_v56, %v2022_v59  ;;  %v3569_v1 = vmul.u32.u64.high %v2027_v56, %v2022_v59, %v3568_v16  ;;  %v942_v10 = vand.u32 2139095040, %v3563_v34 }
 0x21a   : > { %vm2262_vm14 = vcmp.lt.s32.totalorder %v2261_v22, 0  ;;  %v3572_v14 = vmul.u32.u64.low %v2027_v56, %v2026_v8  ;;  %v3573_v30 = vmul.u32.u64.high %v2027_v56, %v2026_v8, %v3572_v14  ;;  %vm1149_vm13 = vcmp.lt.s32.totalorder %v3393_v11, 0 }
 0x21b   : > { %v1203_v40 = vadd.s32 %v3505_v35, %v3512_v36  ;;  %v1218_v61 = vsel %vm2262_vm14, 0, %v2261_v22  ;;  %v3580_v33 = vadd.f32 %v3390_v27, %v407_v37  ;;  %v1234_v3 = vsel %vm1149_vm13, %v1233_v47, %v3533_v38 }
 0x21c   : > { %v1219_v21 = vsub.s32 32, %v1218_v61  ;;  %v1223_v28 = vsub.s32 4294967266, %v1218_v61  ;;  %v943_v31 = vshrl.u32 %v942_v10, 23  ;;  %vm1762_vm15 = vcmp.lt.s32.totalorder %v3559_v5, 2 }
 0x21d   : > { %vm3588_vm1 = vcmp.le.f32.partialorder %v1147_v7, 0.7853982  ;;  %v2034_v35 = vmul.u32 %v2027_v56, %v2018_v4  ;;  %v2037_v36 = vadd.s32 1, %v3569_v1  ;;  %v1220_v27 = vshll.u32 %v3548_v9, %v1218_v61 }
 0x21e   : > { %v1221_v19 = vshrl.u32 %v1203_v40, %v1219_v21  ;;  %v1224_v6 = vadd.s32 127, %v1223_v28  ;;  %vm2036_vm2 = vc.u32 %v3573_v30, %v3568_v16  ;;  %v1236_v38 = vsel %vm3588_vm1, 0, %v1234_v3 }
 0x21f   : > { %v2038_v23 = vsel %vm2036_vm2, %v2037_v36, %v3569_v1  ;;  %v2251_v25 = vadd.s32 4294967169, %v943_v31  ;;  %v1774_v7 = vand.u32 2139095040, %v3580_v33  ;;  %vm1763_vm3 = vcmp.eq.s32.totalorder %v3559_v5, 0 }
 0x220   : > { %v2474_v54 = vpop.eup %2473  ;;  %v1222_v12 = vor.u32 %v1221_v19, %v1220_v27  ;;  %v1225_v42 = vshll.u32 %v1224_v6, 23  ;;  %v2039_v52 = vadd.s32 %v2038_v23, %v2034_v35  ;;  %vm1766_vm4 = vcmp.eq.s32.totalorder %v3559_v5, 2 }
 0x221   : > { %v2476_v9 = vpop.eup %2475  ;;  %v1767_v39 = vxor.u32 2147483648, %v2474_v54  ;;  %v939_v63 = vand.u32 2147483647, %v3563_v34  ;;  %v949_v43 = vadd.s32 1, %v2251_v25  ;;  %v1240_v17 = vadd.s32 3, %v1236_v38 }
 0x222   : > { %v1764_v41 = vxor.u32 2147483648, %v2476_v9  ;;  %v1226_v44 = vor.u32 4788187, %v1225_v42  ;;  %v2040_v46 = vadd.s32 536870912, %v2039_v52  ;;  %v1229_v58 = vcvt.s32.f32 %v1222_v12 }
 0x223   : > { %v1768_v29 = vsel %vm1766_vm4, %v1767_v39, %v2476_v9  ;;  %vm950_vm5 = vcmp.gt.s32.totalorder %v949_v43, 0  ;;  %v1775_v2 = vshrl.u32 %v1774_v7, 23  ;;  %vm1759_vm6 = vweird.f32 %v3330_v60 }
 0x224   : > { %v1765_v18 = vsel %vm1763_vm3, %v2474_v54, %v1764_v41  ;;  %v1227_v56 = vand.u32 2147483647, %v1226_v44  ;;  %v3605_v13 = vshrl.u32 %v2040_v46, 30  ;;  %v951_v32 = vsel %vm950_vm5, %v949_v43, 0 }
 0x225   : > { %v1769_v26 = vsel %vm1762_vm15, %v1765_v18, %v1768_v29  ;;  %v953_v48 = vand.u32 31, %v951_v32  ;;  %v3613_v47 = vand.u32 3, %v1240_v17  ;;  %v946_v59 = vand.u32 8388607, %v939_v63 }
 0x226   : > { %v1770_v24 = vsel %vm1759_vm6, nan, %v1769_v26  ;;  %v1230_v15 = vmul.f32 %v1229_v58, %v1227_v56  ;;  %v2042_v22 = vshll.u32 %v3605_v13, 30  ;;  %v952_v60 = vshrl.u32 %v951_v32, 5 }
 0x227   : > { %2096 = vst.msk [vmem:[%s2876_s28 + $0x60] sm:$0xff] %vm2083_vm0, %v1770_v24  ;;  %v954_v50 = vsub.s32 32, %v953_v48  ;;  %v2283_v8 = vadd.s32 4294967169, %v1775_v2  ;;  %v956_v5 = vshll.u32 %v2519_v45, %v953_v48  ;;  %v959_v14 = vshll.u32 %v2520_v49, %v953_v48 }
 0x228   : > { %v1231_v37 = vxor.u32 2147483648, %v1230_v15  ;;  %v3617_v4 = vsub.s32 %v2039_v52, %v2042_v22  ;;  %v962_v21 = vshll.u32 %v2521_v51, %v953_v48  ;;  %v965_v35 = vshll.u32 %v2522_v53, %v953_v48 }
 0x229   : > { %v957_v1 = vshrl.u32 %v2520_v49, %v954_v50  ;;  %v960_v10 = vshrl.u32 %v2521_v51, %v954_v50  ;;  %v963_v28 = vshrl.u32 %v2522_v53, %v954_v50  ;;  %v966_v36 = vshrl.u32 %v2523_v55, %v954_v50 }
 0x22a   : > { %v1232_v40 = vsel %vm1149_vm13, %v1231_v37, %v1230_v15  ;;  %v2045_v61 = vsub.s32 0, %v3617_v4  ;;  %v968_v23 = vshll.u32 %v2523_v55, %v953_v48  ;;  %v969_v25 = vshrl.u32 %v2524_v62, %v954_v50 }
 0x22b   : > { %v1235_v3 = vsel %vm3588_vm1, %v3393_v11, %v1232_v40  ;;  %v958_v31 = vor.u32 %v957_v1, %v956_v5  ;;  %v961_v19 = vor.u32 %v960_v10, %v959_v14  ;;  %v964_v6 = vor.u32 %v963_v28, %v962_v21 }
 0x22c   : > { %2477 = vcosq.f32 %v1235_v3  ;;  %v2292_v27 = vmin.u32 %v2045_v61, %v3617_v4  ;;  %v967_v38 = vor.u32 %v966_v36, %v965_v35  ;;  %v2035_v57 = vadd.s32 %v3568_v16, %v3573_v30 }
 0x22d   : > { %2479 = vsinq.f32 %v1235_v3  ;;  %v947_v54 = vor.u32 8388608, %v946_v59  ;;  %v1771_v12 = vand.u32 2147483647, %v3580_v33  ;;  %v955_v42 = vshrl.u32 %v2519_v45, %v954_v50 }
 0x22e   : > { %v2047_v7 = vclz %v2292_v27  ;;  %v970_v52 = vor.u32 %v969_v25, %v968_v23  ;;  %vm971_vm7 = vcmp.lt.s32.totalorder %v952_v60, 1  ;;  %v1781_v9 = vadd.s32 1, %v2283_v8 }
 0x22f   : > { %vm973_vm8 = vcmp.lt.s32.totalorder %v952_v60, 3  ;;  %vm974_vm9 = vcmp.lt.s32.totalorder %v952_v60, 4  ;;  %v979_v43 = vsel %vm971_vm7, %v958_v31, %v961_v19  ;;  %v983_v17 = vsel %vm971_vm7, %v961_v19, %v964_v6 }
 0x230   : > { %v2293_v39 = vadd.s32 4294967294, %v2047_v7  ;;  %v976_v41 = vsel %vm974_vm9, %v964_v6, 2102212464  ;;  %v980_v44 = vsel %vm974_vm9, %v967_v38, 920167782  ;;  %vm1981_vm11 = vcmp.lt.s32.totalorder %v3451_v0, 0 }
 0x231   : > { %v984_v46 = vsel %vm974_vm9, %v970_v52, 1326507024  ;;  %vm972_vm10 = vcmp.lt.s32.totalorder %v952_v60, 2  ;;  %v981_v16 = vsel %vm973_vm8, %v964_v6, %v980_v44  ;;  %v987_v18 = vshll.u32 %v947_v54, 8 }
 0x232   : > { %vm2294_vm12 = vcmp.lt.s32.totalorder %v2293_v39, 0  ;;  %v985_v30 = vsel %vm973_vm8, %v967_v38, %v984_v46  ;;  %v982_v58 = vsel %vm972_vm10, %v979_v43, %v981_v16  ;;  %v975_v26 = vsel %vm971_vm7, %v955_v42, %v958_v31 }
 0x233   : > { %v2050_v29 = vsel %vm2294_vm12, 0, %v2293_v39  ;;  %v986_v2 = vsel %vm972_vm10, %v983_v17, %v985_v30  ;;  %v977_v48 = vsel %vm973_vm8, %v961_v19, %v976_v41  ;;  %vm1239_vm14 = vweird.f32 %v3393_v11 }
 0x234   : > { %v2051_v56 = vsub.s32 32, %v2050_v29  ;;  %v2055_v32 = vsub.s32 4294967266, %v2050_v29  ;;  %v3649_v24 = vmul.u32.u64.low %v987_v18, %v986_v2  ;;  %v3650_v15 = vmul.u32.u64.high %v987_v18, %v986_v2, %v3649_v24 }
 0x235   : > { %v3652_v22 = vmul.u32.u64.low %v987_v18, %v982_v58  ;;  %v3653_v59 = vmul.u32.u64.high %v987_v18, %v982_v58, %v3652_v22  ;;  %v2052_v50 = vshll.u32 %v3617_v4, %v2050_v29  ;;  %vm1782_vm13 = vcmp.gt.s32.totalorder %v1781_v9, 0 }
 0x236   : > { %v2053_v37 = vshrl.u32 %v2035_v57, %v2051_v56  ;;  %v2056_v8 = vadd.s32 127, %v2055_v32  ;;  %v2065_v5 = vsub.s32 4, %v3605_v13  ;;  %v978_v1 = vsel %vm972_vm10, %v975_v26, %v977_v48 }
 0x237   : > { %v1778_v14 = vand.u32 8388607, %v1771_v12  ;;  %v1783_v10 = vsel %vm1782_vm13, %v1781_v9, 0  ;;  %vm1242_vm15 = vcmp.lt.s32.totalorder %v3613_v47, 2  ;;  %vm1243_vm1 = vcmp.eq.s32.totalorder %v3613_v47, 0 }
 0x238   : > { %v2054_v40 = vor.u32 %v2053_v37, %v2052_v50  ;;  %v2057_v61 = vshll.u32 %v2056_v8, 23  ;;  %v1785_v21 = vand.u32 31, %v1783_v10  ;;  %vm1246_vm2 = vcmp.eq.s32.totalorder %v3613_v47, 2 }
 0x239   : > { %v2478_v28 = vpop.eup %2477  ;;  %vm996_vm3 = vc.u32 %v3650_v15, %v3652_v22  ;;  %v997_v4 = vadd.s32 1, %v3653_v59  ;;  %vm3670_vm4 = vcmp.le.f32.partialorder %v1979_v20, 0.7853982  ;;  %v994_v36 = vmul.u32 %v987_v18, %v978_v1 }
 0x23a   : > { %v2480_v60 = vpop.eup %2479  ;;  %v1247_v3 = vxor.u32 2147483648, %v2478_v28  ;;  %v2058_v35 = vor.u32 4788187, %v2057_v61  ;;  %v1786_v27 = vsub.s32 32, %v1785_v21  ;;  %v2066_v6 = vsel %vm1981_vm11, %v2065_v5, %v3605_v13 }
 0x23b   : > { %v1244_v19 = vxor.u32 2147483648, %v2480_v60  ;;  %v998_v38 = vsel %vm996_vm3, %v997_v4, %v3653_v59  ;;  %v1779_v23 = vor.u32 8388608, %v1778_v14  ;;  %v2061_v7 = vcvt.s32.f32 %v2054_v40 }
 0x23c   : > { %v1248_v25 = vsel %vm1246_vm2, %v1247_v3, %v2480_v60  ;;  %v2059_v57 = vand.u32 2147483647, %v2058_v35  ;;  %v999_v54 = vadd.s32 %v998_v38, %v994_v36  ;;  %v1784_v42 = vshrl.u32 %v1783_v10, 5 }
 0x23d   : > { %v1245_v20 = vsel %vm1243_vm1, %v2478_v28, %v1244_v19  ;;  %v1789_v52 = vshrl.u32 %v2520_v49, %v1786_v27  ;;  %v1792_v9 = vshrl.u32 %v2521_v51, %v1786_v27  ;;  %v1795_v41 = vshrl.u32 %v2522_v53, %v1786_v27 }
 0x23e   : > { %v1249_v39 = vsel %vm1242_vm15, %v1245_v20, %v1248_v25  ;;  %v2062_v13 = vmul.f32 %v2061_v7, %v2059_v57  ;;  %v1000_v43 = vadd.s32 536870912, %v999_v54  ;;  %v1788_v17 = vshll.u32 %v2519_v45, %v1785_v21 }
 0x23f   : > { %v1250_v44 = vsel %vm1239_vm14, nan, %v1249_v39  ;;  %v1791_v46 = vshll.u32 %v2520_v49, %v1785_v21  ;;  %v1794_v16 = vshll.u32 %v2521_v51, %v1785_v21  ;;  %v1797_v47 = vshll.u32 %v2522_v53, %v1785_v21 }
 0x240   : > { %2091 = vst.msk [vmem:[%s2876_s28 + $0x38] sm:$0xff] %vm2083_vm0, %v1250_v44  ;;  %v2063_v30 = vxor.u32 2147483648, %v2062_v13  ;;  %v3692_v29 = vshrl.u32 %v1000_v43, 30  ;;  %v1798_v58 = vshrl.u32 %v2523_v55, %v1786_v27  ;;  %v1790_v2 = vor.u32 %v1789_v52, %v1788_v17 }
 0x241   : > { %v1793_v18 = vor.u32 %v1792_v9, %v1791_v46  ;;  %v1800_v11 = vshll.u32 %v2523_v55, %v1785_v21  ;;  %v1801_v56 = vshrl.u32 %v2524_v62, %v1786_v27  ;;  %v1796_v32 = vor.u32 %v1795_v41, %v1794_v16 }
 0x242   : > { %v2064_v49 = vsel %vm1981_vm11, %v2063_v30, %v2062_v13  ;;  %v1002_v51 = vshll.u32 %v3692_v29, 30  ;;  %v1799_v26 = vor.u32 %v1798_v58, %v1797_v47  ;;  %v2068_v53 = vsel %vm3670_vm4, 0, %v2066_v6 }
 0x243   : > { %v2067_v48 = vsel %vm3670_vm4, %v3451_v0, %v2064_v49  ;;  %v1802_v24 = vor.u32 %v1801_v56, %v1800_v11  ;;  %vm1803_vm5 = vcmp.lt.s32.totalorder %v1784_v42, 1  ;;  %v1819_v55 = vshll.u32 %v1779_v23, 8 }
 0x244   : > { %2481 = vcosq.f32 %v2067_v48  ;;  %v1003_v59 = vsub.s32 %v999_v54, %v1002_v51  ;;  %v1787_v62 = vshrl.u32 %v2519_v45, %v1786_v27  ;;  %vm1806_vm6 = vcmp.lt.s32.totalorder %v1784_v42, 4 }
 0x245   : > { %2483 = vsinq.f32 %v2067_v48  ;;  %v1811_v50 = vsel %vm1803_vm5, %v1790_v2, %v1793_v18  ;;  %vm1805_vm7 = vcmp.lt.s32.totalorder %v1784_v42, 3  ;;  %v1808_v8 = vsel %vm1806_vm6, %v1796_v32, 2102212464 }
 0x246   : > { %v1005_v37 = vsub.s32 0, %v1003_v59  ;;  %v1812_v5 = vsel %vm1806_vm6, %v1799_v26, 920167782  ;;  %vm1804_vm8 = vcmp.lt.s32.totalorder %v1784_v42, 2  ;;  %v1815_v14 = vsel %vm1803_vm5, %v1793_v18, %v1796_v32 }
 0x247   : > { %v1813_v1 = vsel %vm1805_vm7, %v1796_v32, %v1812_v5  ;;  %v1816_v10 = vsel %vm1806_vm6, %v1802_v24, 1326507024  ;;  %v1807_v61 = vsel %vm1803_vm5, %v1787_v62, %v1790_v2  ;;  %v1809_v4 = vsel %vm1805_vm7, %v1793_v18, %v1808_v8 }
 0x248   : > { %v2252_v40 = vmin.u32 %v1005_v37, %v1003_v59  ;;  %v1814_v21 = vsel %vm1804_vm8, %v1811_v50, %v1813_v1  ;;  %v1817_v28 = vsel %vm1805_vm7, %v1799_v26, %v1816_v10  ;;  %v2072_v35 = vadd.s32 3, %v2068_v53 }
 0x249   : > { %v1818_v60 = vsel %vm1804_vm8, %v1815_v14, %v1817_v28  ;;  %v3709_v3 = vmul.u32.u64.low %v1819_v55, %v1814_v21  ;;  %v3710_v45 = vmul.u32.u64.high %v1819_v55, %v1814_v21, %v3709_v3  ;;  %v1810_v6 = vsel %vm1804_vm8, %v1807_v61, %v1809_v4 }
 0x24a   : > { %v1007_v31 = vclz %v2252_v40  ;;  %v3712_v36 = vmul.u32.u64.low %v1819_v55, %v1818_v60  ;;  %v3713_v27 = vmul.u32.u64.high %v1819_v55, %v1818_v60, %v3712_v36  ;;  %v2073_v23 = vand.u32 3, %v2072_v35 }
 0x24b   : > { %v1829_v38 = vadd.s32 1, %v3710_v45  ;;  %v1826_v57 = vmul.u32 %v1819_v55, %v1810_v6  ;;  %v995_v7 = vadd.s32 %v3652_v22, %v3650_v15  ;;  %vm2071_vm13 = vweird.f32 %v3451_v0 }
 0x24c   : > { %v2253_v19 = vadd.s32 4294967294, %v1007_v31  ;;  %vm1828_vm11 = vc.u32 %v3713_v27, %v3709_v3  ;;  %vm2078_vm12 = vcmp.eq.s32.totalorder %v2073_v23, 2  ;;  %vm2075_vm10 = vcmp.eq.s32.totalorder %v2073_v23, 0 }
 0x24d   : > { %v1830_v52 = vsel %vm1828_vm11, %v1829_v38, %v3710_v45  ;;  %vm2074_vm14 = vcmp.lt.s32.totalorder %v2073_v23, 2  ;;  %vm941_vm15 = vcmp.lt.s32.totalorder %v3563_v34, 0  ;;  %v1025_v53 = vsub.s32 4, %v3692_v29 }
 0x24e   : > { %vm2254_vm9 = vcmp.lt.s32.totalorder %v2253_v19, 0  ;;  %v1831_v39 = vadd.s32 %v1830_v52, %v1826_v57  ;;  %vm940_vm1 = vcmp.le.f32.partialorder %v939_v63, 0.7853982  ;;  %v1827_v5 = vadd.s32 %v3709_v3, %v3713_v27 }
 0x24f   : > { %v1010_v25 = vsel %vm2254_vm9, 0, %v2253_v19  ;;  %v1026_v62 = vsel %vm941_vm15, %v1025_v53, %v3692_v29  ;;  %vm1031_vm6 = vweird.f32 %v3563_v34  ;;  %vm1773_vm7 = vcmp.lt.s32.totalorder %v3580_v33, 0 }
 0x250   : > { %v1011_v54 = vsub.s32 32, %v1010_v25  ;;  %v1015_v20 = vsub.s32 4294967266, %v1010_v25  ;;  %v1012_v43 = vshll.u32 %v1003_v59, %v1010_v25  ;;  %v1832_v46 = vadd.s32 536870912, %v1831_v39 }
 0x251   : > { %v2482_v9 = vpop.eup %2481  ;;  %v1028_v37 = vsel %vm940_vm1, 0, %v1026_v62  ;;  %vm1772_vm8 = vcmp.le.f32.partialorder %v1771_v12, 0.7853982 }
 0x252   : > { %v2484_v13 = vpop.eup %2483  ;;  %v2079_v42 = vxor.u32 2147483648, %v2482_v9  ;;  %v1013_v41 = vshrl.u32 %v995_v7, %v1011_v54  ;;  %v1016_v44 = vadd.s32 127, %v1015_v20  ;;  %v1833_v22 = vshrl.u32 %v1832_v46, 30 }
 0x253   : > { %v2076_v17 = vxor.u32 2147483648, %v2484_v13  ;;  %v1032_v10 = vadd.s32 3, %v1028_v37 }
 0x254   : > { %v2080_v16 = vsel %vm2078_vm12, %v2079_v42, %v2484_v13  ;;  %v1014_v30 = vor.u32 %v1013_v41, %v1012_v43  ;;  %v1017_v47 = vshll.u32 %v1016_v44, 23  ;;  %v1834_v11 = vshll.u32 %v1833_v22, 30 }
 0x255   : > { %v2077_v15 = vsel %vm2075_vm10, %v2482_v9, %v2076_v17  ;;  %v1033_v4 = vand.u32 3, %v1032_v10  ;;  %v1857_v25 = vsub.s32 4, %v1833_v22  ;;  %vm1863_vm10 = vweird.f32 %v3580_v33 }
 0x256   : > { %v2081_v58 = vsel %vm2074_vm14, %v2077_v15, %v2080_v16  ;;  %v1018_v2 = vor.u32 4788187, %v1017_v47  ;;  %v1021_v49 = vcvt.s32.f32 %v1014_v30  ;;  %v1835_v51 = vsub.s32 %v1831_v39, %v1834_v11 }
 0x257   : > { %v2082_v18 = vsel %vm2071_vm13, nan, %v2081_v58  ;;  %vm1038_vm3 = vcmp.eq.s32.totalorder %v1033_v4, 2  ;;  %vm1035_vm4 = vcmp.eq.s32.totalorder %v1033_v4, 0  ;;  %vm1034_vm5 = vcmp.lt.s32.totalorder %v1033_v4, 2 }
 0x258   : > { %2099 = vst.msk [vmem:[%s2876_s28 + $0x78] sm:$0xff] %vm2083_vm0, %v2082_v18  ;;  %v1019_v56 = vand.u32 2147483647, %v1018_v2  ;;  %v1837_v26 = vsub.s32 0, %v1835_v51  ;;  %v1858_v20 = vsel %vm1773_vm7, %v1857_v25, %v1833_v22 }
 0x259   : > { %v1860_v52 = vsel %vm1772_vm8, 0, %v1858_v20 }
 0x25a   : > { %v1022_v32 = vmul.f32 %v1021_v49, %v1019_v56  ;;  %v2284_v24 = vmin.u32 %v1837_v26, %v1835_v51  ;;  %v1864_v9 = vadd.s32 3, %v1860_v52 }
 0x25c   : > { %v1023_v48 = vxor.u32 2147483648, %v1022_v32  ;;  %v1839_v55 = vclz %v2284_v24 }
 0x25e   : > { %v1024_v0 = vsel %vm941_vm15, %v1023_v48, %v1022_v32  ;;  %v2285_v50 = vadd.s32 4294967294, %v1839_v55 }
 0x25f   : > { %v1027_v59 = vsel %vm940_vm1, %v3563_v34, %v1024_v0  ;;  %v1865_v34 = vand.u32 3, %v1864_v9 }
 0x260   : > { %2485 = vcosq.f32 %v1027_v59  ;;  %vm2286_vm2 = vcmp.lt.s32.totalorder %v2285_v50, 0 }
 0x261   : > { %2487 = vsinq.f32 %v1027_v59  ;;  %v1842_v8 = vsel %vm2286_vm2, 0, %v2285_v50  ;;  %vm1870_vm9 = vcmp.eq.s32.totalorder %v1865_v34, 2  ;;  %vm1867_vm11 = vcmp.eq.s32.totalorder %v1865_v34, 0 }
 0x262   : > { %v1843_v1 = vsub.s32 32, %v1842_v8  ;;  %v1847_v14 = vsub.s32 4294967266, %v1842_v8  ;;  %v1844_v40 = vshll.u32 %v1835_v51, %v1842_v8  ;;  %vm1866_vm12 = vcmp.lt.s32.totalorder %v1865_v34, 2 }
 0x264   : > { %v1845_v61 = vshrl.u32 %v1827_v5, %v1843_v1  ;;  %v1848_v63 = vadd.s32 127, %v1847_v14 }
 0x266   : > { %v1846_v21 = vor.u32 %v1845_v61, %v1844_v40  ;;  %v1849_v28 = vshll.u32 %v1848_v63, 23 }
 0x268   : > { %v1850_v60 = vor.u32 4788187, %v1849_v28  ;;  %v1853_v29 = vcvt.s32.f32 %v1846_v21 }
 0x26a   : > { %v1851_v31 = vand.u32 2147483647, %v1850_v60 }
 0x26c   : > { %v1854_v6 = vmul.f32 %v1853_v29, %v1851_v31 }
 0x26d   : > { %v2486_v45 = vpop.eup %2485 }
 0x26e   : > { %v2488_v35 = vpop.eup %2487  ;;  %v1039_v36 = vxor.u32 2147483648, %v2486_v45  ;;  %v1855_v38 = vxor.u32 2147483648, %v1854_v6 }
 0x26f   : > { %v1036_v19 = vxor.u32 2147483648, %v2488_v35 }
 0x270   : > { %v1040_v3 = vsel %vm1038_vm3, %v1039_v36, %v2488_v35  ;;  %v1856_v7 = vsel %vm1773_vm7, %v1855_v38, %v1854_v6 }
 0x271   : > { %v1037_v27 = vsel %vm1035_vm4, %v2486_v45, %v1036_v19  ;;  %v1859_v54 = vsel %vm1772_vm8, %v3580_v33, %v1856_v7 }
 0x272   : > { %v1041_v23 = vsel %vm1034_vm5, %v1037_v27, %v1040_v3  ;;  %2489 = vcosq.f32 %v1859_v54 }
 0x273   : > { %v1042_v57 = vsel %vm1031_vm6, nan, %v1041_v23  ;;  %2491 = vsinq.f32 %v1859_v54 }
 0x274   : > { %2089 = vst.msk [vmem:[%s2876_s28 + $0x28] sm:$0xff] %vm2083_vm0, %v1042_v57 }
 0x27f   : > { %v2490_v39 = vpop.eup %2489 }
 0x280   : > { %v2492_v13 = vpop.eup %2491  ;;  %v1871_v42 = vxor.u32 2147483648, %v2490_v39 }
 0x281   : > { %v1868_v43 = vxor.u32 2147483648, %v2492_v13 }
 0x282   : > { %v1872_v41 = vsel %vm1870_vm9, %v1871_v42, %v2492_v13 }
 0x283   : > { %v1869_v12 = vsel %vm1867_vm11, %v2490_v39, %v1868_v43 }
 0x284   : > { %v1873_v44 = vsel %vm1866_vm12, %v1869_v12, %v1872_v41 }
 0x285   : > { %v1874_v17 = vsel %vm1863_vm10, nan, %v1873_v44 }
 0x286   : > { %2097 = vst.msk [vmem:[%s2876_s28 + $0x68] sm:$0xff] %vm2083_vm0, %v1874_v17 }
 0x287 PF: > { %s13_s14 = sadd.s32 1, %s2517_s14   ;;  %s3782_s12 = smov %s2513_s13 }
 0x288   : > { %p10_p5 = scmp.ge.s32.totalorder %s13_s14, 4   ;;  %s3783_s13 = smov %s3785_s15 }
 0x28a   :  { %12 = sbr.rel (!%p10_p5) target bundleno = 2 (0x2), region = 68 }

// kernel: tpu_custom_call.1
= control target key start
LH: loop header
LB: loop body
LE: loop exit
PB: predicated region body
PF: predicated region fallthrough
CT: control target
= control target key end

     0   :  { %s2545_s12 = smov 0   ;;  %s2547_s13 = smov 0   ;;  %s3750_s0 = inlined_call_operand.vmem [shape: bf16[256,16], index: 0, kind: input, shape index: {}]   ;;  %s3751_s1 = inlined_call_operand.vmem [shape: bf16[16,32], index: 1, kind: input, shape index: {}]   ;;  %s3752_s2 = inlined_call_operand.vmem [shape: f32[1,32], index: 2, kind: input, shape index: {}]   ;;  %s3753_s3 = inlined_call_operand.vmem [shape: f32[256,32], index: 3, kind: output, shape index: {}]  }
   0x1   :  { %s2549_s14 = smov 0  }
   0x2 LB: > { %s25_s15 = sadd.s32 1, %s2513_s13  ;;  %p2208_p0 = scmp.ge.s32.totalorder %s2517_s14, 1  ;;  %s2517_s14 = sphi %s2549_s14, %s13_s14   ;;  %s2513_s13 = sphi %s2547_s13, %s3783_s13   ;;  %s2509_s12 = sphi %s2545_s12, %s3782_s12  }
   0x3   : > { %p27_p1 = scmp.ge.s32.totalorder %s25_s15, 2  ;;  %p169_p2 = scmp.lt.s32.totalorder %s2517_s14, 3 }
   0x5   : > { %s3785_s15 = smov (%p27_p1, %s25_s15), 0  ;;  %p170_p3 = pnand %p2208_p0, %p169_p2 }
   0x6   : > { %s2209_s18 = sshll.u32 (!%p170_p3), %s2509_s12, 4 }
   0x7   : > { %173 = sbr.rel (%p170_p3) target bundleno = 647 (0x287), region = 32  ;;  %p204_p4 = scmp.lt.s32.totalorder (!%p170_p3), %s2209_s18, 31 }
   0xc   : > { %v2420_v0 = vld [vmem:[%s3751_s1] sm:$0xff]   ;;  %s3787_s18 = smov (!%p204_p4, %s2209_s18), 31  ;;  %vm297_vm0 = vcmask 130048   ;;  %v2519_v45 = vmov 683565275  }
   0xd   : > { %2306 = vmatprep.subr.bf16.mxu0 %v2420_v0  ;;  %2324 = vmatprep.subr.bf16.mxu1 %v2420_v0  ;;  %s2210_s19 = sshll.u32 %s3787_s18, 2  ;;  %v2583_v9 = vld [vmem:[%s3752_s2] ss:$0 sm:$0xff]  ;;  %v2520_v49 = vmov 2475754826   ;;  %s2212_s25 = sshll.u32 %s3787_s18, 3 }
   0xe   : > { %2307 = vmatpush3.bf16.msra.mxu0 %v2420_v0  ;;  %2325 = vmatpush3.bf16.msra.mxu1 %v2420_v0  ;;  %s207_s22 = scalar_lea.vmem %s3750_s0, %s2210_s19  ;;  %v2521_v51 = vmov 2131351028   ;;  %v2522_v53 = vmov 2102212464   ;;  %v2523_v55 = vmov 920167782   ;;  %s2876_s28 = scalar_lea.vmem %s3753_s3, %s2212_s25 }
   0xf   : > { %v2421_v1 = vld [vmem:[%s207_s22] sm:$0xff]   ;;  %v2423_v3 = vld [vmem:[%s207_s22 + $0x8] sm:$0xff]   ;;  %v2425_v5 = vld [vmem:[%s207_s22 + $0x10] sm:$0xff]   ;;  %v2524_v62 = vmov 1326507024  }
  0x10   : > { %v2422_v2 = vld [vmem:[%s207_s22 + $0x20] sm:$0xff]   ;;  %2308 = vmatprep.mubr.msk.bf16.mxu0 %vm297_vm0, %v2421_v1  ;;  %v2424_v4 = vld [vmem:[%s207_s22 + $0x28] sm:$0xff]   ;;  %v2426_v6 = vld [vmem:[%s207_s22 + $0x30] sm:$0xff]  }
  0x11   : > { %2316 = vmatprep.mubr.msk.bf16.mxu1 %vm297_vm0, %v2422_v2  ;;  %2309 = vmatmul.mubr.msk.bf16.vlgmr.msra.gmra.mxu0 %vm297_vm0, %v2423_v3  ;;  %v2427_v7 = vld [vmem:[%s207_s22 + $0x18] sm:$0xff]  }
  0x12   : > { %2317 = vmatmul.mubr.msk.bf16.vlgmr.msra.gmra.mxu1 %vm297_vm0, %v2424_v4  ;;  %2312 = vmatprep.mubr.msk.bf16.mxu0 %vm297_vm0, %v2425_v5  ;;  %v2428_v8 = vld [vmem:[%s207_s22 + $0x38] sm:$0xff]  }
  0x13   : > { %2320 = vmatprep.mubr.msk.bf16.mxu1 %vm297_vm0, %v2426_v6 }
  0x19   : > { %2313 = vmatmul.mubr.msk.bf16.gmra.mxu0 %vm297_vm0, %v2427_v7 }
  0x1a   : > { %2321 = vmatmul.mubr.msk.bf16.gmra.mxu1 %vm297_vm0, %v2428_v8 }
  0xd1   : > { %v2310_v10 = vpop.f32.mrf.mxu0 }
  0xd2   : > { %v2586_v11 = vadd.f32 %v2310_v10, %v2583_v9  ;;  %v2318_v12 = vpop.f32.mrf.mxu1 }
  0xd3   : > { %v2589_v13 = vadd.f32 %v2318_v12, %v2583_v9  ;;  %v356_v14 = vpop.f32.mrf.mxu0 }
  0xd4   : > { %v627_v15 = vand.u32 2147483647, %v2586_v11  ;;  %v630_v16 = vand.u32 2139095040, %v2586_v11  ;;  %v2598_v21 = vadd.f32 %v2583_v9, %v356_v14  ;;  %v388_v33 = vpop.f32.mrf.mxu1  ;;  %vm629_vm14 = vcmp.lt.s32.totalorder %v2586_v11, 0 }
  0xd5   : > { %v1459_v17 = vand.u32 2147483647, %v2589_v13  ;;  %v1462_v18 = vand.u32 2139095040, %v2589_v13  ;;  %v2605_v39 = vadd.f32 %v2583_v9, %v388_v33 }
  0xd6   : > { %v631_v19 = vshrl.u32 %v630_v16, 23  ;;  %v634_v20 = vand.u32 8388607, %v627_v15  ;;  %v422_v26 = vand.u32 2139095040, %v2598_v21  ;;  %v419_v31 = vand.u32 2147483647, %v2598_v21 }
  0xd7   : > { %v1463_v22 = vshrl.u32 %v1462_v18, 23  ;;  %v1466_v23 = vand.u32 8388607, %v1459_v17  ;;  %vm2710_vm15 = vcmp.le.f32.partialorder %v627_v15, 0.7853982 }
  0xd8   : > { %v2239_v24 = vadd.s32 4294967169, %v631_v19  ;;  %v635_v27 = vor.u32 8388608, %v634_v20  ;;  %v423_v32 = vshrl.u32 %v422_v26, 23  ;;  %v2615_v43 = vand.u32 8388607, %v419_v31 }
  0xd9   : > { %v2271_v25 = vadd.s32 4294967169, %v1463_v22  ;;  %v1467_v29 = vor.u32 8388608, %v1466_v23 }
  0xda   : > { %v637_v28 = vadd.s32 1, %v2239_v24  ;;  %v2231_v35 = vadd.s32 4294967169, %v423_v32  ;;  %v2607_v40 = vshll.u32 %v635_v27, 8 }
  0xdb   : > { %v1469_v30 = vadd.s32 1, %v2271_v25  ;;  %v2611_v42 = vshll.u32 %v1467_v29, 8 }
  0xdc   : > { %vm638_vm1 = vcmp.gt.s32.totalorder %v637_v28, 0  ;;  %v2618_v48 = vadd.s32 1, %v2231_v35 }
  0xdd   : > { %v639_v34 = vsel %vm638_vm1, %v637_v28, 0  ;;  %vm1470_vm2 = vcmp.gt.s32.totalorder %v1469_v30, 0 }
  0xde   : > { %v640_v36 = vshrl.u32 %v639_v34, 5  ;;  %v641_v37 = vand.u32 31, %v639_v34  ;;  %v1471_v38 = vsel %vm1470_vm2, %v1469_v30, 0  ;;  %vm430_vm12 = vcmp.gt.s32.totalorder %v2618_v48, 0 }
  0xdf   : > { %v2609_v41 = vshrl.u32 %v1471_v38, 5  ;;  %v1473_v47 = vand.u32 31, %v1471_v38 }
  0xe0   : > { %v642_v44 = vsub.s32 32, %v641_v37  ;;  %v644_v46 = vshll.u32 %v2519_v45, %v641_v37  ;;  %v647_v50 = vshll.u32 %v2520_v49, %v641_v37  ;;  %v650_v52 = vshll.u32 %v2521_v51, %v641_v37 }
  0xe1   : > { %v653_v54 = vshll.u32 %v2522_v53, %v641_v37  ;;  %v656_v56 = vshll.u32 %v2523_v55, %v641_v37  ;;  %vm659_vm3 = vcmp.lt.s32.totalorder %v640_v36, 1  ;;  %vm660_vm4 = vcmp.lt.s32.totalorder %v640_v36, 2 }
  0xe2   : > { %v645_v57 = vshrl.u32 %v2520_v49, %v642_v44  ;;  %v648_v58 = vshrl.u32 %v2521_v51, %v642_v44  ;;  %v651_v59 = vshrl.u32 %v2522_v53, %v642_v44  ;;  %v643_v60 = vshrl.u32 %v2519_v45, %v642_v44 }
  0xe3   : > { %v654_v61 = vshrl.u32 %v2523_v55, %v642_v44  ;;  %v657_v63 = vshrl.u32 %v2524_v62, %v642_v44  ;;  %v1474_v3 = vsub.s32 32, %v1473_v47  ;;  %vm661_vm5 = vcmp.lt.s32.totalorder %v640_v36, 3 }
  0xe4   : > { %v646_v0 = vor.u32 %v645_v57, %v644_v46  ;;  %v649_v1 = vor.u32 %v648_v58, %v647_v50  ;;  %v652_v2 = vor.u32 %v651_v59, %v650_v52  ;;  %vm662_vm6 = vcmp.lt.s32.totalorder %v640_v36, 4 }
  0xe5   : > { %v655_v4 = vor.u32 %v654_v61, %v653_v54  ;;  %v658_v5 = vor.u32 %v657_v63, %v656_v56  ;;  %v1476_v18 = vshll.u32 %v2519_v45, %v1473_v47  ;;  %v1477_v22 = vshrl.u32 %v2520_v49, %v1474_v3 }
  0xe6   : > { %v663_v6 = vsel %vm659_vm3, %v643_v60, %v646_v0  ;;  %v664_v7 = vsel %vm662_vm6, %v652_v2, 2102212464  ;;  %v667_v8 = vsel %vm659_vm3, %v646_v0, %v649_v1  ;;  %v671_v10 = vsel %vm659_vm3, %v649_v1, %v652_v2 }
  0xe7   : > { %v665_v12 = vsel %vm661_vm5, %v649_v1, %v664_v7  ;;  %v668_v14 = vsel %vm662_vm6, %v655_v4, 920167782  ;;  %v672_v16 = vsel %vm662_vm6, %v658_v5, 1326507024  ;;  %v1479_v23 = vshll.u32 %v2520_v49, %v1473_v47 }
  0xe8   : > { %v669_v19 = vsel %vm661_vm5, %v652_v2, %v668_v14  ;;  %v673_v20 = vsel %vm661_vm5, %v655_v4, %v672_v16  ;;  %v666_v24 = vsel %vm660_vm4, %v663_v6, %v665_v12  ;;  %v1480_v27 = vshrl.u32 %v2521_v51, %v1474_v3 }
  0xe9   : > { %v670_v25 = vsel %vm660_vm4, %v667_v8, %v669_v19  ;;  %v674_v26 = vsel %vm660_vm4, %v671_v10, %v673_v20  ;;  %v1478_v33 = vor.u32 %v1477_v22, %v1476_v18  ;;  %v1482_v35 = vshll.u32 %v2521_v51, %v1473_v47 }
  0xea   : > { %v2641_v28 = vmul.u32.u64.low %v2607_v40, %v674_v26  ;;  %v2642_v29 = vmul.u32.u64.high %v2607_v40, %v674_v26, %v2641_v28  ;;  %v2645_v30 = vmul.u32.u64.low %v2607_v40, %v670_v25  ;;  %v2646_v32 = vmul.u32.u64.high %v2607_v40, %v670_v25, %v2645_v30 }
  0xeb   : > { %v1481_v34 = vor.u32 %v1480_v27, %v1479_v23  ;;  %v1483_v37 = vshrl.u32 %v2522_v53, %v1474_v3  ;;  %v1475_v38 = vshrl.u32 %v2519_v45, %v1474_v3  ;;  %v1485_v36 = vshll.u32 %v2522_v53, %v1473_v47 }
  0xec   : > { %v1486_v44 = vshrl.u32 %v2523_v55, %v1474_v3  ;;  %v1489_v46 = vshrl.u32 %v2524_v62, %v1474_v3  ;;  %v682_v50 = vmul.u32 %v2607_v40, %v666_v24  ;;  %v1488_v54 = vshll.u32 %v2523_v55, %v1473_v47 }
  0xed   : > { %v1484_v52 = vor.u32 %v1483_v37, %v1482_v35  ;;  %vm1491_vm7 = vcmp.lt.s32.totalorder %v2609_v41, 1  ;;  %vm684_vm8 = vc.u32 %v2642_v29, %v2645_v30  ;;  %v685_v56 = vadd.s32 1, %v2646_v32 }
  0xee   : > { %v1487_v57 = vor.u32 %v1486_v44, %v1485_v36  ;;  %vm1492_vm9 = vcmp.lt.s32.totalorder %v2609_v41, 2  ;;  %v1490_v58 = vor.u32 %v1489_v46, %v1488_v54  ;;  %vm1493_vm10 = vcmp.lt.s32.totalorder %v2609_v41, 3 }
  0xef   : > { %vm1494_vm11 = vcmp.lt.s32.totalorder %v2609_v41, 4  ;;  %v1499_v59 = vsel %vm1491_vm7, %v1478_v33, %v1481_v34  ;;  %v686_v40 = vsel %vm684_vm8, %v685_v56, %v2646_v32  ;;  %v1503_v47 = vsel %vm1491_vm7, %v1481_v34, %v1484_v52 }
  0xf0   : > { %v1496_v60 = vsel %vm1494_vm11, %v1484_v52, 2102212464  ;;  %v1500_v61 = vsel %vm1494_vm11, %v1487_v57, 920167782  ;;  %v687_v63 = vadd.s32 %v686_v40, %v682_v50  ;;  %v1495_v0 = vsel %vm1491_vm7, %v1475_v38, %v1478_v33 }
  0xf1   : > { %v1501_v1 = vsel %vm1493_vm10, %v1484_v52, %v1500_v61  ;;  %v1504_v2 = vsel %vm1494_vm11, %v1490_v58, 1326507024  ;;  %v1497_v3 = vsel %vm1493_vm10, %v1481_v34, %v1496_v60  ;;  %v431_v16 = vsel %vm430_vm12, %v2618_v48, 0 }
  0xf2   : > { %v1502_v4 = vsel %vm1492_vm9, %v1499_v59, %v1501_v1  ;;  %v1505_v5 = vsel %vm1493_vm10, %v1487_v57, %v1504_v2  ;;  %v688_v6 = vadd.s32 536870912, %v687_v63  ;;  %v1498_v19 = vsel %vm1492_vm9, %v1495_v0, %v1497_v3 }
  0xf3   : > { %v1506_v7 = vsel %vm1492_vm9, %v1503_v47, %v1505_v5  ;;  %v2669_v8 = vmul.u32.u64.low %v2611_v42, %v1502_v4  ;;  %v2670_v10 = vmul.u32.u64.high %v2611_v42, %v1502_v4, %v2669_v8  ;;  %v433_v20 = vand.u32 31, %v431_v16 }
  0xf4   : > { %v2674_v12 = vmul.u32.u64.low %v2611_v42, %v1506_v7  ;;  %v2675_v14 = vmul.u32.u64.high %v2611_v42, %v1506_v7, %v2674_v12  ;;  %v689_v18 = vshrl.u32 %v688_v6, 30  ;;  %v1254_v22 = vand.u32 2139095040, %v2605_v39 }
  0xf5   : > { %v1517_v24 = vadd.s32 1, %v2670_v10  ;;  %v427_v25 = vor.u32 8388608, %v2615_v43  ;;  %v1514_v26 = vmul.u32 %v2611_v42, %v1498_v19  ;;  %v434_v27 = vsub.s32 32, %v433_v20 }
  0xf6   : > { %v690_v23 = vshll.u32 %v689_v18, 30  ;;  %vm1516_vm13 = vc.u32 %v2675_v14, %v2669_v8  ;;  %v1255_v41 = vshrl.u32 %v1254_v22, 23  ;;  %v683_v33 = vadd.s32 %v2645_v30, %v2642_v29 }
  0xf7   : > { %v1518_v48 = vsel %vm1516_vm13, %v1517_v24, %v2670_v10  ;;  %v2692_v35 = vshll.u32 %v427_v25, 8  ;;  %v1251_v42 = vand.u32 2147483647, %v2605_v39  ;;  %v2695_v37 = vshrl.u32 %v431_v16, 5 }
  0xf8   : > { %v2686_v28 = vsub.s32 %v687_v63, %v690_v23  ;;  %v1519_v32 = vadd.s32 %v1518_v48, %v1514_v26  ;;  %v437_v38 = vshrl.u32 %v2520_v49, %v434_v27  ;;  %v440_v36 = vshrl.u32 %v2521_v51, %v434_v27 }
  0xf9   : > { %v443_v46 = vshrl.u32 %v2522_v53, %v434_v27  ;;  %v446_v50 = vshrl.u32 %v2523_v55, %v434_v27  ;;  %v2702_v29 = vadd.s32 4294967169, %v1255_v41  ;;  %v713_v30 = vsub.s32 4, %v689_v18 }
  0xfa   : > { %v693_v34 = vsub.s32 0, %v2686_v28  ;;  %v1520_v43 = vadd.s32 536870912, %v1519_v32  ;;  %v436_v54 = vshll.u32 %v2519_v45, %v433_v20  ;;  %v439_v56 = vshll.u32 %v2520_v49, %v433_v20 }
  0xfb   : > { %v442_v59 = vshll.u32 %v2521_v51, %v433_v20  ;;  %v445_v40 = vshll.u32 %v2522_v53, %v433_v20  ;;  %v449_v60 = vshrl.u32 %v2524_v62, %v434_v27  ;;  %v2720_v0 = vand.u32 8388607, %v1251_v42 }
  0xfc   : > { %v2240_v44 = vmin.u32 %v693_v34, %v2686_v28  ;;  %v2704_v52 = vshrl.u32 %v1520_v43, 30  ;;  %v438_v47 = vor.u32 %v437_v38, %v436_v54  ;;  %v441_v63 = vor.u32 %v440_v36, %v439_v56 }
  0xfd   : > { %v444_v15 = vor.u32 %v443_v46, %v442_v59  ;;  %v447_v2 = vor.u32 %v446_v50, %v445_v40  ;;  %v448_v3 = vshll.u32 %v2523_v55, %v433_v20  ;;  %v714_v4 = vsel %vm629_vm14, %v713_v30, %v689_v18 }
  0xfe   : > { %v695_v58 = vclz %v2240_v44  ;;  %v1522_v61 = vshll.u32 %v2704_v52, 30  ;;  %v435_v6 = vshrl.u32 %v2519_v45, %v434_v27  ;;  %vm451_vm0 = vcmp.lt.s32.totalorder %v2695_v37, 1 }
  0xff   : > { %v450_v7 = vor.u32 %v449_v60, %v448_v3  ;;  %vm452_vm2 = vcmp.lt.s32.totalorder %v2695_v37, 2  ;;  %vm453_vm3 = vcmp.lt.s32.totalorder %v2695_v37, 3  ;;  %vm1461_vm4 = vcmp.lt.s32.totalorder %v2589_v13, 0 }
 0x100   : > { %v2241_v1 = vadd.s32 4294967294, %v695_v58  ;;  %v2725_v5 = vsub.s32 %v1519_v32, %v1522_v61  ;;  %vm454_vm5 = vcmp.lt.s32.totalorder %v2695_v37, 4  ;;  %v459_v16 = vsel %vm451_vm0, %v438_v47, %v441_v63 }
 0x101   : > { %v456_v20 = vsel %vm454_vm5, %v444_v15, 2102212464  ;;  %v460_v22 = vsel %vm454_vm5, %v447_v2, 920167782  ;;  %v463_v26 = vsel %vm451_vm0, %v441_v63, %v444_v15  ;;  %v464_v32 = vsel %vm454_vm5, %v450_v7, 1326507024 }
 0x102   : > { %vm2242_vm1 = vcmp.lt.s32.totalorder %v2241_v1, 0  ;;  %v1525_v12 = vsub.s32 0, %v2725_v5  ;;  %v461_v25 = vsel %vm453_vm3, %v444_v15, %v460_v22  ;;  %v716_v34 = vsel %vm2710_vm15, 0, %v714_v4 }
 0x103   : > { %v698_v10 = vsel %vm2242_vm1, 0, %v2241_v1  ;;  %v462_v41 = vsel %vm452_vm2, %v459_v16, %v461_v25  ;;  %vm2748_vm6 = vcmp.le.f32.partialorder %v1459_v17, 0.7853982  ;;  %v455_v38 = vsel %vm451_vm0, %v435_v6, %v438_v47 }
 0x104   : > { %v699_v18 = vsub.s32 32, %v698_v10  ;;  %v703_v19 = vsub.s32 4294967266, %v698_v10  ;;  %v700_v23 = vshll.u32 %v2686_v28, %v698_v10  ;;  %v2272_v24 = vmin.u32 %v1525_v12, %v2725_v5 }
 0x105   : > { %v1545_v46 = vsub.s32 4, %v2704_v52  ;;  %v465_v50 = vsel %vm453_vm3, %v447_v2, %v464_v32  ;;  %v2762_v54 = vmul.u32.u64.low %v2692_v35, %v462_v41  ;;  %v2763_v56 = vmul.u32.u64.high %v2692_v35, %v462_v41, %v2762_v54 }
 0x106   : > { %v701_v27 = vshrl.u32 %v683_v33, %v699_v18  ;;  %v704_v48 = vadd.s32 127, %v703_v19  ;;  %v1527_v43 = vclz %v2272_v24  ;;  %v457_v33 = vsel %vm453_vm3, %v441_v63, %v456_v20  ;;  %v2311_v18 = vpop.f32.mrf.mxu0 }
 0x107   : > { %v466_v17 = vsel %vm452_vm2, %v463_v26, %v465_v50  ;;  %v458_v59 = vsel %vm452_vm2, %v455_v38, %v457_v33  ;;  %v720_v61 = vadd.s32 3, %v716_v34  ;;  %v1515_v47 = vadd.s32 %v2669_v8, %v2675_v14 }
 0x108   : > { %v702_v36 = vor.u32 %v701_v27, %v700_v23  ;;  %v705_v44 = vshll.u32 %v704_v48, 23  ;;  %v2273_v30 = vadd.s32 4294967294, %v1527_v43  ;;  %v1261_v63 = vadd.s32 1, %v2702_v29 }
 0x109   : > { %v2769_v40 = vmul.u32.u64.low %v2692_v35, %v466_v17  ;;  %v2770_v60 = vmul.u32.u64.high %v2692_v35, %v466_v17, %v2769_v40  ;;  %v1546_v3 = vsel %vm1461_vm4, %v1545_v46, %v2704_v52  ;;  %v474_v6 = vmul.u32 %v2692_v35, %v458_v59 }
 0x10a   : > { %v706_v58 = vor.u32 4788187, %v705_v44  ;;  %vm2274_vm7 = vcmp.lt.s32.totalorder %v2273_v30, 0  ;;  %v709_v15 = vcvt.s32.f32 %v702_v36  ;;  %v477_v7 = vadd.s32 1, %v2763_v56 }
 0x10b   : > { %v1530_v2 = vsel %vm2274_vm7, 0, %v2273_v30  ;;  %vm476_vm8 = vc.u32 %v2770_v60, %v2762_v54  ;;  %vm1262_vm9 = vcmp.gt.s32.totalorder %v1261_v63, 0  ;;  %v1548_v19 = vsel %vm2748_vm6, 0, %v1546_v3 }
 0x10c   : > { %v707_v1 = vand.u32 2147483647, %v706_v58  ;;  %v1531_v37 = vsub.s32 32, %v1530_v2  ;;  %v1535_v4 = vsub.s32 4294967266, %v1530_v2  ;;  %v1532_v12 = vshll.u32 %v2725_v5, %v1530_v2 }
 0x10d   : > { %v478_v29 = vsel %vm476_vm8, %v477_v7, %v2763_v56  ;;  %v1263_v16 = vsel %vm1262_vm9, %v1261_v63, 0  ;;  %v2789_v26 = vadd.f32 %v2311_v18, %v2583_v9  ;;  %v2794_v48 = vand.u32 3, %v720_v61 }
 0x10e   : > { %v710_v10 = vmul.f32 %v709_v15, %v707_v1  ;;  %v1533_v8 = vshrl.u32 %v1515_v47, %v1531_v37  ;;  %v1536_v14 = vadd.s32 127, %v1535_v4  ;;  %v479_v35 = vadd.s32 %v478_v29, %v474_v6 }
 0x10f   : > { %v1265_v20 = vand.u32 31, %v1263_v16  ;;  %v2796_v32 = vadd.s32 3, %v1548_v19  ;;  %v1259_v43 = vor.u32 8388608, %v2720_v0  ;;  %vm421_vm10 = vcmp.lt.s32.totalorder %v2598_v21, 0 }
 0x110   : > { %v711_v52 = vxor.u32 2147483648, %v710_v10  ;;  %v1534_v22 = vor.u32 %v1533_v8, %v1532_v12  ;;  %v1537_v23 = vshll.u32 %v1536_v14, 23  ;;  %v480_v24 = vadd.s32 536870912, %v479_v35 }
 0x111   : > { %v1266_v25 = vsub.s32 32, %v1265_v20  ;;  %v2802_v46 = vshrl.u32 %v1263_v16, 5  ;;  %v1268_v50 = vshll.u32 %v2519_v45, %v1265_v20  ;;  %v1271_v56 = vshll.u32 %v2520_v49, %v1265_v20 }
 0x112   : > { %v712_v5 = vsel %vm629_vm14, %v711_v52, %v710_v10  ;;  %v1538_v41 = vor.u32 4788187, %v1537_v23  ;;  %v481_v34 = vshrl.u32 %v480_v24, 30  ;;  %v1541_v36 = vcvt.s32.f32 %v1534_v22 }
 0x113   : > { %v715_v27 = vsel %vm2710_vm15, %v2586_v11, %v712_v5  ;;  %v1269_v38 = vshrl.u32 %v2520_v49, %v1266_v25  ;;  %v1272_v44 = vshrl.u32 %v2521_v51, %v1266_v25  ;;  %v1275_v30 = vshrl.u32 %v2522_v53, %v1266_v25 }
 0x114   : > { %2429 = vcosq.f32 %v715_v27  ;;  %v1539_v33 = vand.u32 2147483647, %v1538_v41  ;;  %v482_v57 = vshll.u32 %v481_v34, 30  ;;  %v1277_v0 = vshll.u32 %v2522_v53, %v1265_v20 }
 0x115   : > { %2431 = vsinq.f32 %v715_v27  ;;  %v1278_v58 = vshrl.u32 %v2523_v55, %v1266_v25  ;;  %v1270_v40 = vor.u32 %v1269_v38, %v1268_v50  ;;  %v1274_v61 = vshll.u32 %v2521_v51, %v1265_v20 }
 0x116   : > { %v1542_v17 = vmul.f32 %v1541_v36, %v1539_v33  ;;  %v2809_v59 = vsub.s32 %v479_v35, %v482_v57  ;;  %v734_v47 = vand.u32 2139095040, %v2789_v26  ;;  %v1273_v1 = vor.u32 %v1272_v44, %v1271_v56 }
 0x117   : > { %v1279_v15 = vor.u32 %v1278_v58, %v1277_v0  ;;  %v1281_v2 = vshrl.u32 %v2524_v62, %v1266_v25  ;;  %v475_v3 = vadd.s32 %v2762_v54, %v2770_v60  ;;  %v1276_v4 = vor.u32 %v1275_v30, %v1274_v61 }
 0x118   : > { %v1543_v63 = vxor.u32 2147483648, %v1542_v17  ;;  %v485_v37 = vsub.s32 0, %v2809_v59  ;;  %v1280_v6 = vshll.u32 %v2523_v55, %v1265_v20  ;;  %vm726_vm11 = vcmp.eq.s32.totalorder %v2794_v48, 2 }
 0x119   : > { %v505_v10 = vsub.s32 4, %v481_v34  ;;  %vm1283_vm12 = vcmp.lt.s32.totalorder %v2802_v46, 1  ;;  %v2822_v12 = vshll.u32 %v1259_v43, 8  ;;  %vm723_vm13 = vcmp.eq.s32.totalorder %v2794_v48, 0 }
 0x11a   : > { %v1544_v7 = vsel %vm1461_vm4, %v1543_v63, %v1542_v17  ;;  %v2232_v60 = vmin.u32 %v485_v37, %v2809_v59  ;;  %v1282_v8 = vor.u32 %v1281_v2, %v1280_v6  ;;  %vm1286_vm14 = vcmp.lt.s32.totalorder %v2802_v46, 4 }
 0x11b   : > { %v1547_v54 = vsel %vm2748_vm6, %v2589_v13, %v1544_v7  ;;  %vm722_vm15 = vcmp.lt.s32.totalorder %v2794_v48, 2  ;;  %vm2083_vm0 = vcmask 261120   ;;  %v1267_v14 = vshrl.u32 %v2519_v45, %v1266_v25 }
 0x11c   : > { %2433 = vcosq.f32 %v1547_v54  ;;  %v1291_v29 = vsel %vm1283_vm12, %v1270_v40, %v1273_v1  ;;  %v1292_v16 = vsel %vm1286_vm14, %v1279_v15, 920167782  ;;  %vm719_vm1 = vweird.f32 %v2586_v11 }
 0x11d   : > { %2435 = vsinq.f32 %v1547_v54  ;;  %vm2839_vm2 = vcmp.le.f32.partialorder %v419_v31, 0.7853982  ;;  %v487_v18 = vclz %v2232_v60  ;;  %vm1285_vm3 = vcmp.lt.s32.totalorder %v2802_v46, 3 }
 0x11e   : > { %v1288_v52 = vsel %vm1286_vm14, %v1276_v4, 2102212464  ;;  %v506_v19 = vsel %vm421_vm10, %v505_v10, %v481_v34  ;;  %vm1284_vm4 = vcmp.lt.s32.totalorder %v2802_v46, 2  ;;  %v1293_v35 = vsel %vm1285_vm3, %v1276_v4, %v1292_v16 }
 0x11f   : > { %v1295_v20 = vsel %vm1283_vm12, %v1273_v1, %v1276_v4  ;;  %v2233_v31 = vadd.s32 4294967294, %v487_v18  ;;  %v1287_v22 = vsel %vm1283_vm12, %v1267_v14, %v1270_v40  ;;  %v1294_v23 = vsel %vm1284_vm4, %v1291_v29, %v1293_v35 }
 0x120   : > { %v1296_v5 = vsel %vm1286_vm14, %v1282_v8, 1326507024  ;;  %v1289_v25 = vsel %vm1285_vm3, %v1273_v1, %v1288_v52  ;;  %v2858_v41 = vmul.u32.u64.low %v2822_v12, %v1294_v23  ;;  %v2859_v34 = vmul.u32.u64.high %v2822_v12, %v1294_v23, %v2858_v41 }
 0x121   : > { %v2430_v24 = vpop.eup %2429  ;;  %v1297_v27 = vsel %vm1285_vm3, %v1279_v15, %v1296_v5  ;;  %vm2234_vm5 = vcmp.lt.s32.totalorder %v2233_v31, 0  ;;  %v735_v36 = vshrl.u32 %v734_v47, 23  ;;  %v1290_v58 = vsel %vm1284_vm4, %v1287_v22, %v1289_v25 }
 0x122   : > { %v2432_v43 = vpop.eup %2431  ;;  %v727_v38 = vxor.u32 2147483648, %v2430_v24  ;;  %v1298_v33 = vsel %vm1284_vm4, %v1295_v20, %v1297_v27  ;;  %v490_v57 = vsel %vm2234_vm5, 0, %v2233_v31  ;;  %v1553_v61 = vand.u32 3, %v2796_v32  ;;  %v2319_v32 = vpop.f32.mrf.mxu1 }
 0x123   : > { %v724_v44 = vxor.u32 2147483648, %v2432_v43  ;;  %v2866_v50 = vmul.u32.u64.low %v2822_v12, %v1298_v33  ;;  %v2867_v30 = vmul.u32.u64.high %v2822_v12, %v1298_v33, %v2866_v50  ;;  %v491_v56 = vsub.s32 32, %v490_v57 }
 0x124   : > { %v728_v17 = vsel %vm726_vm11, %v727_v38, %v2432_v43  ;;  %v495_v0 = vsub.s32 4294967266, %v490_v57  ;;  %v1309_v47 = vadd.s32 1, %v2859_v34  ;;  %v2243_v63 = vadd.s32 4294967169, %v735_v36 }
 0x125   : > { %v725_v40 = vsel %vm723_vm13, %v2430_v24, %v724_v44  ;;  %v492_v46 = vshll.u32 %v2809_v59, %v490_v57  ;;  %v493_v15 = vshrl.u32 %v475_v3, %v491_v56  ;;  %v508_v4 = vsel %vm2839_vm2, 0, %v506_v19 }
 0x126   : > { %v729_v1 = vsel %vm722_vm15, %v725_v40, %v728_v17  ;;  %v496_v2 = vadd.s32 127, %v495_v0  ;;  %v1306_v6 = vmul.u32 %v2822_v12, %v1290_v58  ;;  %vm1308_vm6 = vc.u32 %v2867_v30, %v2858_v41 }
 0x127   : > { %v730_v37 = vsel %vm719_vm1, nan, %v729_v1  ;;  %v494_v48 = vor.u32 %v493_v15, %v492_v46  ;;  %v1310_v59 = vsel %vm1308_vm6, %v1309_v47, %v2859_v34  ;;  %v741_v3 = vadd.s32 1, %v2243_v63 }
 0x128   : > { %2086 = vst.msk [vmem:[%s2876_s28 + $0x10] sm:$0xff] %vm2083_vm0, %v730_v37  ;;  %v497_v7 = vshll.u32 %v496_v2, 23  ;;  %v1311_v10 = vadd.s32 %v1310_v59, %v1306_v6  ;;  %v731_v11 = vand.u32 2147483647, %v2789_v26  ;;  %vm1558_vm7 = vcmp.eq.s32.totalorder %v1553_v61, 2 }
 0x129   : > { %v2434_v54 = vpop.eup %2433  ;;  %vm742_vm8 = vcmp.gt.s32.totalorder %v741_v3, 0  ;;  %v2897_v12 = vadd.f32 %v2319_v32, %v2583_v9  ;;  %v512_v29 = vadd.s32 3, %v508_v4  ;;  %v501_v35 = vcvt.s32.f32 %v494_v48 }
 0x12a   : > { %v498_v60 = vor.u32 4788187, %v497_v7  ;;  %v2436_v8 = vpop.eup %2435  ;;  %v1559_v14 = vxor.u32 2147483648, %v2434_v54  ;;  %v1312_v16 = vadd.s32 536870912, %v1311_v10  ;;  %v743_v18 = vsel %vm742_vm8, %v741_v3, 0 }
 0x12b   : > { %v1556_v52 = vxor.u32 2147483648, %v2436_v8  ;;  %v745_v20 = vand.u32 31, %v743_v18  ;;  %vm1555_vm9 = vcmp.eq.s32.totalorder %v1553_v61, 0  ;;  %v738_v23 = vand.u32 8388607, %v731_v11 }
 0x12c   : > { %v499_v19 = vand.u32 2147483647, %v498_v60  ;;  %v1560_v31 = vsel %vm1558_vm7, %v1559_v14, %v2436_v8  ;;  %v2899_v22 = vshrl.u32 %v1312_v16, 30  ;;  %vm1554_vm11 = vcmp.lt.s32.totalorder %v1553_v61, 2 }
 0x12d   : > { %v1557_v5 = vsel %vm1555_vm9, %v2434_v54, %v1556_v52  ;;  %v746_v25 = vsub.s32 32, %v745_v20  ;;  %vm1551_vm12 = vweird.f32 %v2589_v13  ;;  %v2905_v33 = vand.u32 3, %v512_v29 }
 0x12e   : > { %v502_v24 = vmul.f32 %v501_v35, %v499_v19  ;;  %v1561_v27 = vsel %vm1554_vm11, %v1557_v5, %v1560_v31  ;;  %v1314_v34 = vshll.u32 %v2899_v22, 30  ;;  %v739_v57 = vor.u32 8388608, %v738_v23 }
 0x12f   : > { %v1562_v43 = vsel %vm1551_vm12, nan, %v1561_v27  ;;  %v749_v36 = vshrl.u32 %v2520_v49, %v746_v25  ;;  %v752_v50 = vshrl.u32 %v2521_v51, %v746_v25  ;;  %v1566_v17 = vand.u32 2139095040, %v2897_v12 }
 0x130   : > { %v503_v38 = vxor.u32 2147483648, %v502_v24  ;;  %2094 = vst.msk [vmem:[%s2876_s28 + $0x50] sm:$0xff] %vm2083_vm0, %v1562_v43  ;;  %v2910_v44 = vsub.s32 %v1311_v10, %v1314_v34  ;;  %v744_v56 = vshrl.u32 %v743_v18, 5  ;;  %v748_v0 = vshll.u32 %v2519_v45, %v745_v20 }
 0x131   : > { %v755_v58 = vshrl.u32 %v2522_v53, %v746_v25  ;;  %v751_v47 = vshll.u32 %v2520_v49, %v745_v20  ;;  %v754_v63 = vshll.u32 %v2521_v51, %v745_v20  ;;  %v757_v46 = vshll.u32 %v2522_v53, %v745_v20 }
 0x132   : > { %v504_v13 = vsel %vm421_vm10, %v503_v38, %v502_v24  ;;  %v1317_v61 = vsub.s32 0, %v2910_v44  ;;  %v750_v1 = vor.u32 %v749_v36, %v748_v0  ;;  %v758_v15 = vshrl.u32 %v2523_v55, %v746_v25 }
 0x133   : > { %v507_v40 = vsel %vm2839_vm2, %v2598_v21, %v504_v13  ;;  %v753_v37 = vor.u32 %v752_v50, %v751_v47  ;;  %v756_v4 = vor.u32 %v755_v58, %v754_v63  ;;  %v760_v28 = vshll.u32 %v2523_v55, %v745_v20 }
 0x134   : > { %2437 = vcosq.f32 %v507_v40  ;;  %v2264_v2 = vmin.u32 %v1317_v61, %v2910_v44  ;;  %v759_v6 = vor.u32 %v758_v15, %v757_v46  ;;  %v761_v32 = vshrl.u32 %v2524_v62, %v746_v25 }
 0x135   : > { %2439 = vsinq.f32 %v507_v40  ;;  %v779_v48 = vshll.u32 %v739_v57, 8  ;;  %v747_v59 = vshrl.u32 %v2519_v45, %v746_v25  ;;  %vm763_vm10 = vcmp.lt.s32.totalorder %v744_v56, 1 }
 0x136   : > { %v1319_v7 = vclz %v2264_v2  ;;  %v1567_v3 = vshrl.u32 %v1566_v17, 23  ;;  %vm1253_vm13 = vcmp.lt.s32.totalorder %v2605_v39, 0  ;;  %v762_v10 = vor.u32 %v761_v32, %v760_v28 }
 0x137   : > { %vm764_vm14 = vcmp.lt.s32.totalorder %v744_v56, 2  ;;  %vm765_vm15 = vcmp.lt.s32.totalorder %v744_v56, 3  ;;  %vm766_vm1 = vcmp.lt.s32.totalorder %v744_v56, 4  ;;  %v771_v8 = vsel %vm763_vm10, %v750_v1, %v753_v37 }
 0x138   : > { %v2265_v54 = vadd.s32 4294967294, %v1319_v7  ;;  %v768_v60 = vsel %vm766_vm1, %v756_v4, 2102212464  ;;  %v772_v14 = vsel %vm766_vm1, %v759_v6, 920167782  ;;  %v767_v29 = vsel %vm763_vm10, %v747_v59, %v750_v1 }
 0x139   : > { %v773_v16 = vsel %vm765_vm15, %v756_v4, %v772_v14  ;;  %v775_v18 = vsel %vm763_vm10, %v753_v37, %v756_v4  ;;  %v776_v52 = vsel %vm766_vm1, %v762_v10, 1326507024  ;;  %vm2933_vm2 = vcmp.le.f32.partialorder %v1251_v42, 0.7853982 }
 0x13a   : > { %vm2266_vm3 = vcmp.lt.s32.totalorder %v2265_v54, 0  ;;  %v769_v35 = vsel %vm765_vm15, %v753_v37, %v768_v60  ;;  %v774_v20 = vsel %vm764_vm14, %v771_v8, %v773_v16  ;;  %v777_v31 = vsel %vm765_vm15, %v759_v6, %v776_v52 }
 0x13b   : > { %v1322_v23 = vsel %vm2266_vm3, 0, %v2265_v54  ;;  %v778_v5 = vsel %vm764_vm14, %v775_v18, %v777_v31  ;;  %v2939_v24 = vmul.u32.u64.low %v779_v48, %v774_v20  ;;  %v2940_v25 = vmul.u32.u64.high %v779_v48, %v774_v20, %v2939_v24 }
 0x13c   : > { %v1307_v27 = vadd.s32 %v2858_v41, %v2867_v30  ;;  %v1323_v34 = vsub.s32 32, %v1322_v23  ;;  %v1327_v42 = vsub.s32 4294967266, %v1322_v23  ;;  %v1337_v43 = vsub.s32 4, %v2899_v22 }
 0x13d   : > { %v2946_v38 = vmul.u32.u64.low %v779_v48, %v778_v5  ;;  %v2947_v36 = vmul.u32.u64.high %v779_v48, %v778_v5, %v2946_v38  ;;  %v1563_v57 = vand.u32 2147483647, %v2897_v12  ;;  %v2275_v50 = vadd.s32 4294967169, %v1567_v3  ;;  %v359_v3 = vpop.f32.mrf.mxu0 }
 0x13e   : > { %v1324_v17 = vshll.u32 %v2910_v44, %v1322_v23  ;;  %v1325_v13 = vshrl.u32 %v1307_v27, %v1323_v34  ;;  %v1328_v0 = vadd.s32 127, %v1327_v42  ;;  %v770_v58 = vsel %vm764_vm14, %v767_v29, %v769_v35 }
 0x13f   : > { %vm514_vm4 = vcmp.lt.s32.totalorder %v2905_v33, 2  ;;  %vm515_vm5 = vcmp.eq.s32.totalorder %v2905_v33, 0  ;;  %v789_v41 = vadd.s32 1, %v2940_v25  ;;  %v1573_v30 = vadd.s32 1, %v2275_v50 }
 0x140   : > { %vm518_vm6 = vcmp.eq.s32.totalorder %v2905_v33, 2  ;;  %v1326_v61 = vor.u32 %v1325_v13, %v1324_v17  ;;  %v1329_v47 = vshll.u32 %v1328_v0, 23  ;;  %v1338_v44 = vsel %vm1253_vm13, %v1337_v43, %v2899_v22 }
 0x141   : > { %v2438_v40 = vpop.eup %2437  ;;  %v786_v56 = vmul.u32 %v779_v48, %v770_v58  ;;  %vm788_vm7 = vc.u32 %v2947_v36, %v2939_v24  ;;  %vm1574_vm8 = vcmp.gt.s32.totalorder %v1573_v30, 0  ;;  %v1570_v37 = vand.u32 8388607, %v1563_v57 }
 0x142   : > { %v2440_v63 = vpop.eup %2439  ;;  %v519_v1 = vxor.u32 2147483648, %v2438_v40  ;;  %v1330_v15 = vor.u32 4788187, %v1329_v47  ;;  %v790_v2 = vsel %vm788_vm7, %v789_v41, %v2940_v25  ;;  %v1340_v6 = vsel %vm2933_vm2, 0, %v1338_v44 }
 0x143   : > { %v516_v46 = vxor.u32 2147483648, %v2440_v63  ;;  %v791_v22 = vadd.s32 %v790_v2, %v786_v56  ;;  %v1575_v28 = vsel %vm1574_vm8, %v1573_v30, 0  ;;  %v1333_v7 = vcvt.s32.f32 %v1326_v61 }
 0x144   : > { %v520_v4 = vsel %vm518_vm6, %v519_v1, %v2440_v63  ;;  %v1331_v48 = vand.u32 2147483647, %v1330_v15  ;;  %v1577_v59 = vand.u32 31, %v1575_v28  ;;  %vm511_vm9 = vweird.f32 %v2598_v21 }
 0x145   : > { %v517_v32 = vsel %vm515_vm5, %v2438_v40, %v516_v46  ;;  %v792_v54 = vadd.s32 536870912, %v791_v22  ;;  %v1344_v14 = vadd.s32 3, %v1340_v6  ;;  %v1571_v18 = vor.u32 8388608, %v1570_v37 }
 0x146   : > { %v521_v10 = vsel %vm514_vm4, %v517_v32, %v520_v4  ;;  %v1334_v8 = vmul.f32 %v1333_v7, %v1331_v48  ;;  %v1578_v29 = vsub.s32 32, %v1577_v59  ;;  %v1580_v52 = vshll.u32 %v2519_v45, %v1577_v59 }
 0x147   : > { %v522_v60 = vsel %vm511_vm9, nan, %v521_v10  ;;  %v2973_v16 = vshrl.u32 %v792_v54, 30  ;;  %v2977_v35 = vadd.f32 %v2583_v9, %v359_v3  ;;  %v1583_v33 = vshll.u32 %v2520_v49, %v1577_v59 }
 0x148   : > { %2084 = vst.msk [vmem:[%s2876_s28] sm:$0xff] %vm2083_vm0, %v522_v60  ;;  %v1335_v20 = vxor.u32 2147483648, %v1334_v8  ;;  %v1581_v21 = vshrl.u32 %v2520_v49, %v1578_v29  ;;  %v1584_v31 = vshrl.u32 %v2521_v51, %v1578_v29  ;;  %v1586_v5 = vshll.u32 %v2521_v51, %v1577_v59 }
 0x149   : > { %v794_v23 = vshll.u32 %v2973_v16, 30  ;;  %v1587_v25 = vshrl.u32 %v2522_v53, %v1578_v29  ;;  %v1590_v27 = vshrl.u32 %v2523_v55, %v1578_v29  ;;  %v1576_v9 = vshrl.u32 %v1575_v28, 5 }
 0x14a   : > { %v1336_v34 = vsel %vm1253_vm13, %v1335_v20, %v1334_v8  ;;  %v1582_v42 = vor.u32 %v1581_v21, %v1580_v52  ;;  %v1589_v43 = vshll.u32 %v2522_v53, %v1577_v59  ;;  %v1585_v17 = vor.u32 %v1584_v31, %v1583_v33 }
 0x14b   : > { %v1339_v38 = vsel %vm2933_vm2, %v2605_v39, %v1336_v34  ;;  %v2992_v50 = vsub.s32 %v791_v22, %v794_v23  ;;  %v1588_v13 = vor.u32 %v1587_v25, %v1586_v5  ;;  %v1592_v58 = vshll.u32 %v2523_v55, %v1577_v59 }
 0x14c   : > { %2441 = vcosq.f32 %v1339_v38  ;;  %v1591_v0 = vor.u32 %v1590_v27, %v1589_v43  ;;  %v1593_v41 = vshrl.u32 %v2524_v62, %v1578_v29  ;;  %v2996_v30 = vand.u32 3, %v1344_v14 }
 0x14d   : > { %2443 = vsinq.f32 %v1339_v38  ;;  %v797_v40 = vsub.s32 0, %v2992_v50  ;;  %vm733_vm11 = vcmp.lt.s32.totalorder %v2789_v26, 0  ;;  %vm1598_vm12 = vcmp.lt.s32.totalorder %v1576_v9, 4 }
 0x14e   : > { %v1594_v61 = vor.u32 %v1593_v41, %v1592_v58  ;;  %v1611_v19 = vshll.u32 %v1571_v18, 8  ;;  %v526_v47 = vand.u32 2139095040, %v2977_v35  ;;  %v1579_v63 = vshrl.u32 %v2519_v45, %v1578_v29 }
 0x14f   : > { %v2244_v44 = vmin.u32 %v797_v40, %v2992_v50  ;;  %vm1595_vm10 = vcmp.lt.s32.totalorder %v1576_v9, 1  ;;  %v1600_v1 = vsel %vm1598_vm12, %v1588_v13, 2102212464  ;;  %vm1596_vm13 = vcmp.lt.s32.totalorder %v1576_v9, 2 }
 0x150   : > { %v1603_v56 = vsel %vm1595_vm10, %v1582_v42, %v1585_v17  ;;  %v1604_v46 = vsel %vm1598_vm12, %v1591_v0, 920167782  ;;  %v523_v15 = vand.u32 2147483647, %v2977_v35  ;;  %vm1597_vm14 = vcmp.lt.s32.totalorder %v1576_v9, 3 }
 0x151   : > { %v799_v2 = vclz %v2244_v44  ;;  %v1599_v37 = vsel %vm1595_vm10, %v1579_v63, %v1582_v42  ;;  %v1607_v4 = vsel %vm1595_vm10, %v1585_v17, %v1588_v13  ;;  %v1601_v6 = vsel %vm1597_vm14, %v1585_v17, %v1600_v1 }
 0x152   : > { %v1605_v22 = vsel %vm1597_vm14, %v1588_v13, %v1604_v46  ;;  %v1608_v28 = vsel %vm1598_vm12, %v1594_v61, 1326507024  ;;  %v527_v32 = vshrl.u32 %v526_v47, 23  ;;  %v817_v7 = vsub.s32 4, %v2973_v16 }
 0x153   : > { %v2245_v48 = vadd.s32 4294967294, %v799_v2  ;;  %v1606_v59 = vsel %vm1596_vm13, %v1603_v56, %v1605_v22  ;;  %v1609_v3 = vsel %vm1597_vm14, %v1591_v0, %v1608_v28  ;;  %v1602_v14 = vsel %vm1596_vm13, %v1599_v37, %v1601_v6 }
 0x154   : > { %v1610_v10 = vsel %vm1596_vm13, %v1607_v4, %v1609_v3  ;;  %v3010_v54 = vmul.u32.u64.low %v1611_v19, %v1606_v59  ;;  %v3011_v60 = vmul.u32.u64.high %v1611_v19, %v1606_v59, %v3010_v54  ;;  %v2235_v8 = vadd.s32 4294967169, %v527_v32 }
 0x155   : > { %vm2246_vm15 = vcmp.lt.s32.totalorder %v2245_v48, 0  ;;  %v3015_v29 = vmul.u32.u64.low %v1611_v19, %v1610_v10  ;;  %v3016_v18 = vmul.u32.u64.high %v1611_v19, %v1610_v10, %v3015_v29  ;;  %vm1343_vm1 = vweird.f32 %v2605_v39 }
 0x156   : > { %vm1350_vm2 = vcmp.eq.s32.totalorder %v2996_v30, 2  ;;  %vm3022_vm3 = vcmp.le.f32.partialorder %v731_v11, 0.7853982  ;;  %v802_v20 = vsel %vm2246_vm15, 0, %v2245_v48  ;;  %v533_v21 = vadd.s32 1, %v2235_v8 }
 0x157   : > { %v787_v33 = vadd.s32 %v2939_v24, %v2947_v36  ;;  %v803_v31 = vsub.s32 32, %v802_v20  ;;  %v807_v23 = vsub.s32 4294967266, %v802_v20  ;;  %v818_v5 = vsel %vm733_vm11, %v817_v7, %v2973_v16  ;;  %v391_v24 = vpop.f32.mrf.mxu1 }
 0x158   : > { %v1618_v25 = vmul.u32 %v1611_v19, %v1602_v14  ;;  %v1621_v27 = vadd.s32 1, %v3011_v60  ;;  %v530_v11 = vand.u32 8388607, %v523_v15  ;;  %vm534_vm4 = vcmp.gt.s32.totalorder %v533_v21, 0  ;;  %v3046_v19 = vld [vmem:[%s3752_s2] ss:$0 sm:$0xff] }
 0x159   : > { %v2442_v34 = vpop.eup %2441  ;;  %v804_v9 = vshll.u32 %v2992_v50, %v802_v20  ;;  %v805_v42 = vshrl.u32 %v787_v33, %v803_v31  ;;  %v808_v43 = vadd.s32 127, %v807_v23  ;;  %vm1620_vm5 = vc.u32 %v3016_v18, %v3010_v54 }
 0x15a   : > { %v2444_v36 = vpop.eup %2443  ;;  %v1351_v38 = vxor.u32 2147483648, %v2442_v34  ;;  %v820_v16 = vsel %vm3022_vm3, 0, %v818_v5  ;;  %v1622_v17 = vsel %vm1620_vm5, %v1621_v27, %v3011_v60  ;;  %v535_v13 = vsel %vm534_vm4, %v533_v21, 0 }
 0x15b   : > { %v1348_v0 = vxor.u32 2147483648, %v2444_v36  ;;  %v806_v58 = vor.u32 %v805_v42, %v804_v9  ;;  %v809_v41 = vshll.u32 %v808_v43, 23  ;;  %v1623_v40 = vadd.s32 %v1622_v17, %v1618_v25 }
 0x15c   : > { %vm1347_vm6 = vcmp.eq.s32.totalorder %v2996_v30, 0  ;;  %v1352_v50 = vsel %vm1350_vm2, %v1351_v38, %v2444_v36  ;;  %v537_v61 = vand.u32 31, %v535_v13  ;;  %v3049_v47 = vadd.f32 %v3046_v19, %v391_v24 }
 0x15d   : > { %vm1346_vm7 = vcmp.lt.s32.totalorder %v2996_v30, 2  ;;  %v1349_v44 = vsel %vm1347_vm6, %v2442_v34, %v1348_v0  ;;  %v810_v63 = vor.u32 4788187, %v809_v41  ;;  %v1624_v1 = vadd.s32 536870912, %v1623_v40 }
 0x15e   : > { %v1353_v56 = vsel %vm1346_vm7, %v1349_v44, %v1352_v50  ;;  %v3052_v46 = vadd.s32 3, %v820_v16  ;;  %v531_v2 = vor.u32 8388608, %v530_v11  ;;  %v538_v37 = vsub.s32 32, %v537_v61 }
 0x15f   : > { %v1354_v4 = vsel %vm1343_vm1, nan, %v1353_v56  ;;  %v811_v6 = vand.u32 2147483647, %v810_v63  ;;  %v813_v22 = vcvt.s32.f32 %v806_v58  ;;  %v3056_v28 = vshrl.u32 %v1624_v1, 30 }
 0x160   : > { %2092 = vst.msk [vmem:[%s2876_s28 + $0x40] sm:$0xff] %vm2083_vm0, %v1354_v4  ;;  %v541_v32 = vshrl.u32 %v2520_v49, %v538_v37  ;;  %v544_v30 = vshrl.u32 %v2521_v51, %v538_v37  ;;  %v547_v48 = vshrl.u32 %v2522_v53, %v538_v37  ;;  %v1358_v7 = vand.u32 2139095040, %v3049_v47 }
 0x161   : > { %v814_v59 = vmul.f32 %v813_v22, %v811_v6  ;;  %v1626_v3 = vshll.u32 %v3056_v28, 30  ;;  %v540_v39 = vshll.u32 %v2519_v45, %v537_v61  ;;  %v543_v10 = vshll.u32 %v2520_v49, %v537_v61 }
 0x162   : > { %v536_v60 = vshrl.u32 %v535_v13, 5  ;;  %v546_v8 = vshll.u32 %v2521_v51, %v537_v61  ;;  %v549_v14 = vshll.u32 %v2522_v53, %v537_v61  ;;  %v550_v29 = vshrl.u32 %v2523_v55, %v538_v37 }
 0x163   : > { %v815_v20 = vxor.u32 2147483648, %v814_v59  ;;  %v3070_v21 = vsub.s32 %v1623_v40, %v1626_v3  ;;  %v542_v33 = vor.u32 %v541_v32, %v540_v39  ;;  %v545_v31 = vor.u32 %v544_v30, %v543_v10 }
 0x164   : > { %v548_v23 = vor.u32 %v547_v48, %v546_v8  ;;  %v551_v5 = vor.u32 %v550_v29, %v549_v14  ;;  %v552_v25 = vshll.u32 %v2523_v55, %v537_v61  ;;  %v553_v27 = vshrl.u32 %v2524_v62, %v538_v37 }
 0x165   : > { %v816_v11 = vsel %vm733_vm11, %v815_v20, %v814_v59  ;;  %v1629_v34 = vsub.s32 0, %v3070_v21  ;;  %v571_v9 = vshll.u32 %v531_v2, 8  ;;  %v1355_v42 = vand.u32 2147483647, %v3049_v47 }
 0x166   : > { %v819_v43 = vsel %vm3022_vm3, %v2789_v26, %v816_v11  ;;  %v539_v24 = vshrl.u32 %v2519_v45, %v538_v37  ;;  %v554_v36 = vor.u32 %v553_v27, %v552_v25  ;;  %v1359_v38 = vshrl.u32 %v1358_v7, 23 }
 0x167   : > { %2445 = vcosq.f32 %v819_v43  ;;  %v2276_v16 = vmin.u32 %v1629_v34, %v3070_v21  ;;  %vm555_vm8 = vcmp.lt.s32.totalorder %v536_v60, 1  ;;  %vm558_vm9 = vcmp.lt.s32.totalorder %v536_v60, 4 }
 0x168   : > { %2447 = vsinq.f32 %v819_v43  ;;  %v560_v17 = vsel %vm558_vm9, %v548_v23, 2102212464  ;;  %v563_v13 = vsel %vm555_vm8, %v542_v33, %v545_v31  ;;  %v564_v0 = vsel %vm558_vm9, %v551_v5, 920167782 }
 0x169   : > { %v1631_v58 = vclz %v2276_v16  ;;  %vm556_vm11 = vcmp.lt.s32.totalorder %v536_v60, 2  ;;  %vm557_vm12 = vcmp.lt.s32.totalorder %v536_v60, 3  ;;  %v559_v41 = vsel %vm555_vm8, %v539_v24, %v542_v33  ;;  %v2314_v24 = vpop.f32.mrf.mxu0 }
 0x16a   : > { %v561_v40 = vsel %vm557_vm12, %v545_v31, %v560_v17  ;;  %v565_v52 = vsel %vm557_vm12, %v548_v23, %v564_v0  ;;  %v567_v50 = vsel %vm555_vm8, %v545_v31, %v548_v23  ;;  %v568_v61 = vsel %vm558_vm9, %v554_v36, 1326507024 }
 0x16b   : > { %v2277_v44 = vadd.s32 4294967294, %v1631_v58  ;;  %v1649_v63 = vsub.s32 4, %v3056_v28  ;;  %v566_v1 = vsel %vm556_vm11, %v563_v13, %v565_v52  ;;  %v569_v56 = vsel %vm557_vm12, %v551_v5, %v568_v61 }
 0x16c   : > { %v562_v2 = vsel %vm556_vm11, %v559_v41, %v561_v40  ;;  %v570_v37 = vsel %vm556_vm11, %v567_v50, %v569_v56  ;;  %v3084_v4 = vmul.u32.u64.low %v571_v9, %v566_v1  ;;  %v3085_v6 = vmul.u32.u64.high %v571_v9, %v566_v1, %v3084_v4 }
 0x16d   : > { %vm2278_vm10 = vcmp.lt.s32.totalorder %v2277_v44, 0  ;;  %v3087_v22 = vmul.u32.u64.low %v571_v9, %v570_v37  ;;  %v3088_v32 = vmul.u32.u64.high %v571_v9, %v570_v37, %v3087_v22  ;;  %v2267_v30 = vadd.s32 4294967169, %v1359_v38 }
 0x16e   : > { %vm3092_vm13 = vcmp.le.f32.partialorder %v1563_v57, 0.7853982  ;;  %vm1565_vm14 = vcmp.lt.s32.totalorder %v2897_v12, 0  ;;  %v1619_v7 = vadd.s32 %v3010_v54, %v3016_v18  ;;  %v1634_v59 = vsel %vm2278_vm10, 0, %v2277_v44 }
 0x16f   : > { %v1635_v3 = vsub.s32 32, %v1634_v59  ;;  %v1639_v39 = vsub.s32 4294967266, %v1634_v59  ;;  %v1650_v10 = vsel %vm1565_vm14, %v1649_v63, %v3056_v28  ;;  %v1365_v60 = vadd.s32 1, %v2267_v30 }
 0x170   : > { %v825_v8 = vand.u32 3, %v3052_v46  ;;  %v578_v14 = vmul.u32 %v571_v9, %v562_v2  ;;  %v581_v57 = vadd.s32 1, %v3085_v6  ;;  %v1362_v29 = vand.u32 8388607, %v1355_v42 }
 0x171   : > { %v1636_v20 = vshll.u32 %v3070_v21, %v1634_v59  ;;  %v1637_v33 = vshrl.u32 %v1619_v7, %v1635_v3  ;;  %v1640_v54 = vadd.s32 127, %v1639_v39  ;;  %vm580_vm15 = vc.u32 %v3088_v32, %v3084_v4 }
 0x172   : > { %v1652_v18 = vsel %vm3092_vm13, 0, %v1650_v10  ;;  %v582_v28 = vsel %vm580_vm15, %v581_v57, %v3085_v6  ;;  %vm1366_vm1 = vcmp.gt.s32.totalorder %v1365_v60, 0  ;;  %vm823_vm2 = vweird.f32 %v2789_v26 }
 0x173   : > { %v1638_v31 = vor.u32 %v1637_v33, %v1636_v20  ;;  %v1641_v46 = vshll.u32 %v1640_v54, 23  ;;  %v583_v23 = vadd.s32 %v582_v28, %v578_v14  ;;  %v1367_v5 = vsel %vm1366_vm1, %v1365_v60, 0 }
 0x174   : > { %v2446_v25 = vpop.eup %2445  ;;  %vm826_vm3 = vcmp.lt.s32.totalorder %v825_v8, 2  ;;  %vm827_vm4 = vcmp.eq.s32.totalorder %v825_v8, 0  ;;  %v1369_v21 = vand.u32 31, %v1367_v5  ;;  %v1363_v43 = vor.u32 8388608, %v1362_v29 }
 0x175   : > { %v2448_v27 = vpop.eup %2447  ;;  %v831_v11 = vxor.u32 2147483648, %v2446_v25  ;;  %v1642_v34 = vor.u32 4788187, %v1641_v46  ;;  %v584_v9 = vadd.s32 536870912, %v583_v23  ;;  %vm830_vm5 = vcmp.eq.s32.totalorder %v825_v8, 2 }
 0x176   : > { %v828_v36 = vxor.u32 2147483648, %v2448_v27  ;;  %v3112_v38 = vadd.s32 3, %v1652_v18  ;;  %v1370_v16 = vsub.s32 32, %v1369_v21  ;;  %v1645_v0 = vcvt.s32.f32 %v1638_v31 }
 0x177   : > { %v832_v17 = vsel %vm830_vm5, %v831_v11, %v2448_v27  ;;  %v1643_v13 = vand.u32 2147483647, %v1642_v34  ;;  %v585_v58 = vshrl.u32 %v584_v9, 30  ;;  %v3116_v40 = vadd.s32 %v3084_v4, %v3088_v32 }
 0x178   : > { %v829_v41 = vsel %vm827_vm4, %v2446_v25, %v828_v36  ;;  %v1373_v52 = vshrl.u32 %v2520_v49, %v1370_v16  ;;  %v3120_v50 = vadd.f32 %v3046_v19, %v2314_v24  ;;  %v3123_v1 = vshll.u32 %v1363_v43, 8 }
 0x179   : > { %v833_v61 = vsel %vm826_vm3, %v829_v41, %v832_v17  ;;  %v1646_v44 = vmul.f32 %v1645_v0, %v1643_v13  ;;  %v586_v63 = vshll.u32 %v585_v58, 30  ;;  %v1372_v2 = vshll.u32 %v2519_v45, %v1369_v21 }
 0x17a   : > { %v834_v56 = vsel %vm823_vm2, nan, %v833_v61  ;;  %v1376_v37 = vshrl.u32 %v2521_v51, %v1370_v16  ;;  %v1379_v4 = vshrl.u32 %v2522_v53, %v1370_v16  ;;  %v1368_v32 = vshrl.u32 %v1367_v5, 5 }
 0x17b   : > { %2087 = vst.msk [vmem:[%s2876_s28 + $0x18] sm:$0xff] %vm2083_vm0, %v834_v56  ;;  %v1647_v6 = vxor.u32 2147483648, %v1646_v44  ;;  %v3132_v22 = vsub.s32 %v583_v23, %v586_v63  ;;  %v1375_v30 = vshll.u32 %v2520_v49, %v1369_v21  ;;  %v1374_v7 = vor.u32 %v1373_v52, %v1372_v2 }
 0x17c   : > { %v1378_v59 = vshll.u32 %v2521_v51, %v1369_v21  ;;  %v1381_v26 = vshll.u32 %v2522_v53, %v1369_v21  ;;  %v1382_v3 = vshrl.u32 %v2523_v55, %v1370_v16  ;;  %vm525_vm6 = vcmp.lt.s32.totalorder %v2977_v35, 0 }
 0x17d   : > { %v1648_v39 = vsel %vm1565_vm14, %v1647_v6, %v1646_v44  ;;  %v589_v10 = vsub.s32 0, %v3132_v22  ;;  %v1384_v60 = vshll.u32 %v2523_v55, %v1369_v21  ;;  %v1385_v8 = vshrl.u32 %v2524_v62, %v1370_v16 }
 0x17e   : > { %v1651_v14 = vsel %vm3092_vm13, %v2897_v12, %v1648_v39  ;;  %v1377_v57 = vor.u32 %v1376_v37, %v1375_v30  ;;  %v1380_v29 = vor.u32 %v1379_v4, %v1378_v59  ;;  %v1383_v20 = vor.u32 %v1382_v3, %v1381_v26 }
 0x17f   : > { %2449 = vcosq.f32 %v1651_v14  ;;  %v2236_v33 = vmin.u32 %v589_v10, %v3132_v22  ;;  %v1386_v54 = vor.u32 %v1385_v8, %v1384_v60  ;;  %v1046_v18 = vand.u32 2139095040, %v3120_v50 }
 0x180   : > { %2451 = vsinq.f32 %v1651_v14  ;;  %v609_v28 = vsub.s32 4, %v585_v58  ;;  %v1371_v31 = vshrl.u32 %v2519_v45, %v1370_v16  ;;  %vm1387_vm7 = vcmp.lt.s32.totalorder %v1368_v32, 1 }
 0x181   : > { %v591_v46 = vclz %v2236_v33  ;;  %vm1388_vm8 = vcmp.lt.s32.totalorder %v1368_v32, 2  ;;  %vm1389_vm9 = vcmp.lt.s32.totalorder %v1368_v32, 3  ;;  %vm1390_vm11 = vcmp.lt.s32.totalorder %v1368_v32, 4 }
 0x182   : > { %v1392_v48 = vsel %vm1390_vm11, %v1380_v29, 2102212464  ;;  %v1395_v23 = vsel %vm1387_vm7, %v1374_v7, %v1377_v57  ;;  %v1396_v5 = vsel %vm1390_vm11, %v1383_v20, 920167782  ;;  %v1399_v25 = vsel %vm1387_vm7, %v1377_v57, %v1380_v29 }
 0x183   : > { %v2237_v21 = vadd.s32 4294967294, %v591_v46  ;;  %v1391_v27 = vsel %vm1387_vm7, %v1371_v31, %v1374_v7  ;;  %v1397_v11 = vsel %vm1389_vm9, %v1380_v29, %v1396_v5  ;;  %v1400_v34 = vsel %vm1390_vm11, %v1386_v54, 1326507024  ;;  %v2322_v31 = vpop.f32.mrf.mxu1 }
 0x184   : > { %v1393_v9 = vsel %vm1389_vm9, %v1377_v57, %v1392_v48  ;;  %v1398_v43 = vsel %vm1388_vm8, %v1395_v23, %v1397_v11  ;;  %v1401_v24 = vsel %vm1389_vm9, %v1383_v20, %v1400_v34  ;;  %v1047_v36 = vshrl.u32 %v1046_v18, 23 }
 0x185   : > { %vm2238_vm12 = vcmp.lt.s32.totalorder %v2237_v21, 0  ;;  %v1402_v16 = vsel %vm1388_vm8, %v1399_v25, %v1401_v24  ;;  %v3153_v17 = vmul.u32.u64.low %v3123_v1, %v1398_v43  ;;  %v3154_v13 = vmul.u32.u64.high %v3123_v1, %v1398_v43, %v3153_v17 }
 0x186   : > { %v594_v0 = vsel %vm2238_vm12, 0, %v2237_v21  ;;  %v610_v41 = vsel %vm525_vm6, %v609_v28, %v585_v58  ;;  %v3160_v52 = vmul.u32.u64.low %v3123_v1, %v1402_v16  ;;  %v3161_v61 = vmul.u32.u64.high %v3123_v1, %v1402_v16, %v3160_v52 }
 0x187   : > { %v595_v44 = vsub.s32 32, %v594_v0  ;;  %v599_v63 = vsub.s32 4294967266, %v594_v0  ;;  %v1394_v56 = vsel %vm1388_vm8, %v1391_v27, %v1393_v9  ;;  %v2255_v2 = vadd.s32 4294967169, %v1047_v36 }
 0x188   : > { %vm3166_vm10 = vcmp.le.f32.partialorder %v523_v15, 0.7853982  ;;  %v596_v4 = vshll.u32 %v3132_v22, %v594_v0  ;;  %v1043_v6 = vand.u32 2147483647, %v3120_v50  ;;  %v1413_v7 = vadd.s32 1, %v3154_v13 }
 0x189   : > { %v597_v58 = vshrl.u32 %v3116_v40, %v595_v44  ;;  %v600_v30 = vadd.s32 127, %v599_v63  ;;  %v1053_v59 = vadd.s32 1, %v2255_v2  ;;  %v1657_v32 = vand.u32 3, %v3112_v38 }
 0x18a   : > { %v612_v26 = vsel %vm3166_vm10, 0, %v610_v41  ;;  %v1410_v15 = vmul.u32 %v3123_v1, %v1394_v56  ;;  %vm1412_vm13 = vc.u32 %v3161_v61, %v3153_v17  ;;  %vm1655_vm15 = vweird.f32 %v2897_v12 }
 0x18b   : > { %v598_v3 = vor.u32 %v597_v58, %v596_v4  ;;  %v601_v22 = vshll.u32 %v600_v30, 23  ;;  %v1414_v39 = vsel %vm1412_vm13, %v1413_v7, %v3154_v13  ;;  %vm1054_vm14 = vcmp.gt.s32.totalorder %v1053_v59, 0 }
 0x18c   : > { %v2450_v40 = vpop.eup %2449  ;;  %v1415_v10 = vadd.s32 %v1414_v39, %v1410_v15  ;;  %v1055_v60 = vsel %vm1054_vm14, %v1053_v59, 0  ;;  %v616_v57 = vadd.s32 3, %v612_v26  ;;  %v1050_v1 = vand.u32 8388607, %v1043_v6 }
 0x18d   : > { %v2452_v8 = vpop.eup %2451  ;;  %v1663_v38 = vxor.u32 2147483648, %v2450_v40  ;;  %v602_v14 = vor.u32 4788187, %v601_v22  ;;  %vm1662_vm1 = vcmp.eq.s32.totalorder %v1657_v32, 2  ;;  %v1057_v33 = vand.u32 31, %v1055_v60 }
 0x18e   : > { %v1660_v29 = vxor.u32 2147483648, %v2452_v8  ;;  %v1416_v20 = vadd.s32 536870912, %v1415_v10  ;;  %vm1659_vm2 = vcmp.eq.s32.totalorder %v1657_v32, 0  ;;  %v605_v28 = vcvt.s32.f32 %v598_v3 }
 0x18f   : > { %v1664_v54 = vsel %vm1662_vm1, %v1663_v38, %v2452_v8  ;;  %v603_v18 = vand.u32 2147483647, %v602_v14  ;;  %vm1658_vm3 = vcmp.lt.s32.totalorder %v1657_v32, 2  ;;  %v1058_v23 = vsub.s32 32, %v1057_v33 }
 0x190   : > { %v1661_v46 = vsel %vm1659_vm2, %v2450_v40, %v1660_v29  ;;  %v3184_v48 = vshrl.u32 %v1416_v20, 30  ;;  %v3186_v21 = vand.u32 3, %v616_v57  ;;  %v1051_v27 = vor.u32 8388608, %v1050_v1 }
 0x191   : > { %v1665_v5 = vsel %vm1658_vm3, %v1661_v46, %v1664_v54  ;;  %v606_v25 = vmul.f32 %v605_v28, %v603_v18  ;;  %v1060_v9 = vshll.u32 %v2519_v45, %v1057_v33  ;;  %v3193_v43 = vadd.f32 %v3046_v19, %v2322_v31 }
 0x192   : > { %v1666_v11 = vsel %vm1655_vm15, nan, %v1665_v5  ;;  %v1418_v34 = vshll.u32 %v3184_v48, 30  ;;  %v1061_v36 = vshrl.u32 %v2520_v49, %v1058_v23  ;;  %v1064_v16 = vshrl.u32 %v2521_v51, %v1058_v23 }
 0x193   : > { %2095 = vst.msk [vmem:[%s2876_s28 + $0x58] sm:$0xff] %vm2083_vm0, %v1666_v11  ;;  %v607_v24 = vxor.u32 2147483648, %v606_v25  ;;  %v1067_v13 = vshrl.u32 %v2522_v53, %v1058_v23  ;;  %v1063_v12 = vshll.u32 %v2520_v49, %v1057_v33  ;;  %v1066_v41 = vshll.u32 %v2521_v51, %v1057_v33 }
 0x194   : > { %v3200_v0 = vsub.s32 %v1415_v10, %v1418_v34  ;;  %v1070_v52 = vshrl.u32 %v2523_v55, %v1058_v23  ;;  %v1056_v63 = vshrl.u32 %v1055_v60, 5  ;;  %v1062_v56 = vor.u32 %v1061_v36, %v1060_v9 }
 0x195   : > { %v608_v44 = vsel %vm525_vm6, %v607_v24, %v606_v25  ;;  %v1069_v2 = vshll.u32 %v2522_v53, %v1057_v33  ;;  %v1065_v30 = vor.u32 %v1064_v16, %v1063_v12  ;;  %v1068_v7 = vor.u32 %v1067_v13, %v1066_v41 }
 0x196   : > { %v611_v4 = vsel %vm3166_vm10, %v2977_v35, %v608_v44  ;;  %v1421_v58 = vsub.s32 0, %v3200_v0  ;;  %v1072_v32 = vshll.u32 %v2523_v55, %v1057_v33  ;;  %v1073_v26 = vshrl.u32 %v2524_v62, %v1058_v23 }
 0x197   : > { %2453 = vcosq.f32 %v611_v4  ;;  %v1071_v59 = vor.u32 %v1070_v52, %v1069_v2  ;;  %v1091_v3 = vshll.u32 %v1051_v27, 8  ;;  %v1878_v22 = vand.u32 2139095040, %v3193_v43 }
 0x198   : > { %2455 = vsinq.f32 %v611_v4  ;;  %v2268_v15 = vmin.u32 %v1421_v58, %v3200_v0  ;;  %v1059_v39 = vshrl.u32 %v2519_v45, %v1058_v23  ;;  %v1074_v37 = vor.u32 %v1073_v26, %v1072_v32 }
 0x199   : > { %vm1075_vm4 = vcmp.lt.s32.totalorder %v1056_v63, 1  ;;  %vm1076_vm5 = vcmp.lt.s32.totalorder %v1056_v63, 2  ;;  %vm1077_vm6 = vcmp.lt.s32.totalorder %v1056_v63, 3  ;;  %vm1078_vm7 = vcmp.lt.s32.totalorder %v1056_v63, 4 }
 0x19a   : > { %v1423_v40 = vclz %v2268_v15  ;;  %v1083_v10 = vsel %vm1075_vm4, %v1062_v56, %v1065_v30  ;;  %v1080_v60 = vsel %vm1078_vm7, %v1068_v7, 2102212464  ;;  %v1084_v8 = vsel %vm1078_vm7, %v1071_v59, 920167782 }
 0x19b   : > { %v1087_v38 = vsel %vm1075_vm4, %v1065_v30, %v1068_v7  ;;  %v1088_v14 = vsel %vm1078_vm7, %v1074_v37, 1326507024  ;;  %v1441_v1 = vsub.s32 4, %v3184_v48  ;;  %v1085_v29 = vsel %vm1077_vm6, %v1068_v7, %v1084_v8 }
 0x19c   : > { %v2269_v57 = vadd.s32 4294967294, %v1423_v40  ;;  %v1089_v20 = vsel %vm1077_vm6, %v1071_v59, %v1088_v14  ;;  %v1079_v33 = vsel %vm1075_vm4, %v1059_v39, %v1062_v56  ;;  %v1086_v54 = vsel %vm1076_vm5, %v1083_v10, %v1085_v29 }
 0x19d   : > { %v1090_v18 = vsel %vm1076_vm5, %v1087_v38, %v1089_v20  ;;  %v1879_v28 = vshrl.u32 %v1878_v22, 23  ;;  %v1081_v31 = vsel %vm1077_vm6, %v1065_v30, %v1080_v60  ;;  %vm3232_vm9 = vcmp.le.f32.partialorder %v1355_v42, 0.7853982 }
 0x19e   : > { %vm2270_vm8 = vcmp.lt.s32.totalorder %v2269_v57, 0  ;;  %v3223_v46 = vmul.u32.u64.low %v1091_v3, %v1090_v18  ;;  %v3224_v23 = vmul.u32.u64.high %v1091_v3, %v1090_v18, %v3223_v46  ;;  %v1411_v9 = vadd.s32 %v3153_v17, %v3161_v61 }
 0x19f   : > { %v1426_v5 = vsel %vm2270_vm8, 0, %v2269_v57  ;;  %v3226_v25 = vmul.u32.u64.low %v1091_v3, %v1086_v54  ;;  %v3227_v27 = vmul.u32.u64.high %v1091_v3, %v1086_v54, %v3226_v25  ;;  %v2287_v11 = vadd.s32 4294967169, %v1879_v28 }
 0x1a0   : > { %v1427_v24 = vsub.s32 32, %v1426_v5  ;;  %v1431_v36 = vsub.s32 4294967266, %v1426_v5  ;;  %vm615_vm11 = vweird.f32 %v2977_v35  ;;  %vm618_vm12 = vcmp.lt.s32.totalorder %v3186_v21, 2 }
 0x1a1   : > { %vm1357_vm10 = vcmp.lt.s32.totalorder %v3049_v47, 0  ;;  %v1082_v16 = vsel %vm1076_vm5, %v1079_v33, %v1081_v31  ;;  %v1885_v13 = vadd.s32 1, %v2287_v11  ;;  %v1428_v12 = vshll.u32 %v3200_v0, %v1426_v5  ;;  %v372_v0 = vpop.f32.mrf.mxu0 }
 0x1a2   : > { %v1429_v42 = vshrl.u32 %v1411_v9, %v1427_v24  ;;  %v1432_v41 = vadd.s32 127, %v1431_v36  ;;  %vm1100_vm13 = vc.u32 %v3224_v23, %v3226_v25  ;;  %vm619_vm14 = vcmp.eq.s32.totalorder %v3186_v21, 0 }
 0x1a3   : > { %v1442_v17 = vsel %vm1357_vm10, %v1441_v1, %v3184_v48  ;;  %v1101_v61 = vadd.s32 1, %v3227_v27  ;;  %vm1886_vm15 = vcmp.gt.s32.totalorder %v1885_v13, 0  ;;  %v1098_v56 = vmul.u32 %v1091_v3, %v1082_v16 }
 0x1a4   : > { %v2454_v52 = vpop.eup %2453  ;;  %v1430_v44 = vor.u32 %v1429_v42, %v1428_v12  ;;  %v1433_v63 = vshll.u32 %v1432_v41, 23  ;;  %v1887_v2 = vsel %vm1886_vm15, %v1885_v13, 0  ;;  %v1875_v7 = vand.u32 2147483647, %v3193_v43 }
 0x1a5   : > { %v2456_v4 = vpop.eup %2455  ;;  %v623_v58 = vxor.u32 2147483648, %v2454_v52  ;;  %v1102_v30 = vsel %vm1100_vm13, %v1101_v61, %v3227_v27  ;;  %v1889_v59 = vand.u32 31, %v1887_v2  ;;  %vm622_vm1 = vcmp.eq.s32.totalorder %v3186_v21, 2 }
 0x1a6   : > { %v620_v32 = vxor.u32 2147483648, %v2456_v4  ;;  %v1434_v48 = vor.u32 4788187, %v1433_v63  ;;  %v1103_v26 = vadd.s32 %v1102_v30, %v1098_v56  ;;  %v1444_v22 = vsel %vm3232_vm9, 0, %v1442_v17 }
 0x1a7   : > { %v624_v15 = vsel %vm622_vm1, %v623_v58, %v2456_v4  ;;  %v1890_v3 = vsub.s32 32, %v1889_v59  ;;  %v3256_v39 = vadd.f32 %v3046_v19, %v372_v0  ;;  %v1437_v10 = vcvt.s32.f32 %v1430_v44 }
 0x1a8   : > { %v621_v37 = vsel %vm619_vm14, %v2454_v52, %v620_v32  ;;  %v1435_v40 = vand.u32 2147483647, %v1434_v48  ;;  %v1104_v60 = vadd.s32 536870912, %v1103_v26  ;;  %v1882_v38 = vand.u32 8388607, %v1875_v7 }
 0x1a9   : > { %v625_v8 = vsel %vm618_vm12, %v621_v37, %v624_v15  ;;  %v1893_v14 = vshrl.u32 %v2520_v49, %v1890_v3  ;;  %v1896_v57 = vshrl.u32 %v2521_v51, %v1890_v3  ;;  %v1899_v33 = vshrl.u32 %v2522_v53, %v1890_v3 }
 0x1aa   : > { %v626_v1 = vsel %vm615_vm11, nan, %v625_v8  ;;  %v1438_v29 = vmul.f32 %v1437_v10, %v1435_v40  ;;  %v1105_v20 = vshrl.u32 %v1104_v60, 30  ;;  %v1888_v54 = vshrl.u32 %v1887_v2, 5 }
 0x1ab   : > { %2085 = vst.msk [vmem:[%s2876_s28 + $0x8] sm:$0xff] %vm2083_vm0, %v626_v1  ;;  %v1892_v21 = vshll.u32 %v2519_v45, %v1889_v59  ;;  %v1898_v18 = vshll.u32 %v2521_v51, %v1889_v59  ;;  %v1902_v28 = vshrl.u32 %v2523_v55, %v1890_v3  ;;  %v1895_v5 = vshll.u32 %v2520_v49, %v1889_v59 }
 0x1ac   : > { %v1439_v31 = vxor.u32 2147483648, %v1438_v29  ;;  %v1106_v46 = vshll.u32 %v1105_v20, 30  ;;  %v1901_v35 = vshll.u32 %v2522_v53, %v1889_v59  ;;  %v1904_v9 = vshll.u32 %v2523_v55, %v1889_v59 }
 0x1ad   : > { %v1894_v27 = vor.u32 %v1893_v14, %v1892_v21  ;;  %v1900_v11 = vor.u32 %v1899_v33, %v1898_v18  ;;  %v1905_v24 = vshrl.u32 %v2524_v62, %v1890_v3  ;;  %v1897_v13 = vor.u32 %v1896_v57, %v1895_v5 }
 0x1ae   : > { %v1440_v36 = vsel %vm1357_vm10, %v1439_v31, %v1438_v29  ;;  %v3280_v16 = vsub.s32 %v1103_v26, %v1106_v46  ;;  %v1903_v12 = vor.u32 %v1902_v28, %v1901_v35  ;;  %v1448_v41 = vadd.s32 3, %v1444_v22 }
 0x1af   : > { %v1443_v42 = vsel %vm3232_vm9, %v3049_v47, %v1440_v36  ;;  %v1883_v17 = vor.u32 8388608, %v1882_v38  ;;  %v1906_v61 = vor.u32 %v1905_v24, %v1904_v9  ;;  %vm1910_vm2 = vcmp.lt.s32.totalorder %v1888_v54, 4 }
 0x1b0   : > { %2457 = vcosq.f32 %v1443_v42  ;;  %v1109_v52 = vsub.s32 0, %v3280_v16  ;;  %v838_v44 = vand.u32 2139095040, %v3256_v39  ;;  %v1891_v63 = vshrl.u32 %v2519_v45, %v1890_v3 }
 0x1b1   : > { %2459 = vsinq.f32 %v1443_v42  ;;  %vm1907_vm3 = vcmp.lt.s32.totalorder %v1888_v54, 1  ;;  %v1912_v56 = vsel %vm1910_vm2, %v1900_v11, 2102212464  ;;  %vm1909_vm4 = vcmp.lt.s32.totalorder %v1888_v54, 3 }
 0x1b2   : > { %v2256_v2 = vmin.u32 %v1109_v52, %v3280_v16  ;;  %v1915_v0 = vsel %vm1907_vm3, %v1894_v27, %v1897_v13  ;;  %v1916_v34 = vsel %vm1910_vm2, %v1903_v12, 920167782  ;;  %v1129_v4 = vsub.s32 4, %v1105_v20 }
 0x1b3   : > { %v1917_v58 = vsel %vm1909_vm4, %v1900_v11, %v1916_v34  ;;  %v1919_v30 = vsel %vm1907_vm3, %v1897_v13, %v1900_v11  ;;  %v1920_v59 = vsel %vm1910_vm2, %v1906_v61, 1326507024  ;;  %vm1908_vm5 = vcmp.lt.s32.totalorder %v1888_v54, 2 }
 0x1b4   : > { %v1111_v32 = vclz %v2256_v2  ;;  %v1911_v48 = vsel %vm1907_vm3, %v1891_v63, %v1894_v27  ;;  %v1913_v26 = vsel %vm1909_vm4, %v1897_v13, %v1912_v56  ;;  %v1918_v15 = vsel %vm1908_vm5, %v1915_v0, %v1917_v58 }
 0x1b5   : > { %v1921_v22 = vsel %vm1909_vm4, %v1903_v12, %v1920_v59  ;;  %v1923_v37 = vshll.u32 %v1883_v17, 8  ;;  %v839_v40 = vshrl.u32 %v838_v44, 23  ;;  %vm1045_vm6 = vcmp.lt.s32.totalorder %v3120_v50, 0  ;;  %v404_v59 = vpop.f32.mrf.mxu1 }
 0x1b6   : > { %v2257_v3 = vadd.s32 4294967294, %v1111_v32  ;;  %v1922_v10 = vsel %vm1908_vm5, %v1919_v30, %v1921_v22  ;;  %v1130_v57 = vsel %vm1045_vm6, %v1129_v4, %v1105_v20  ;;  %v1914_v1 = vsel %vm1908_vm5, %v1911_v48, %v1913_v26 }
 0x1b7   : > { %v3290_v60 = vmul.u32.u64.low %v1923_v37, %v1922_v10  ;;  %v3291_v8 = vmul.u32.u64.high %v1923_v37, %v1922_v10, %v3290_v60  ;;  %v3293_v38 = vmul.u32.u64.low %v1923_v37, %v1918_v15  ;;  %v3294_v14 = vmul.u32.u64.high %v1923_v37, %v1918_v15, %v3293_v38 }
 0x1b8   : > { %vm2258_vm7 = vcmp.lt.s32.totalorder %v2257_v3, 0  ;;  %v2247_v29 = vadd.s32 4294967169, %v839_v40  ;;  %v1449_v33 = vand.u32 3, %v1448_v41  ;;  %vm3301_vm8 = vcmp.le.f32.partialorder %v1043_v6, 0.7853982 }
 0x1b9   : > { %v1114_v21 = vsel %vm2258_vm7, 0, %v2257_v3  ;;  %v835_v18 = vand.u32 2147483647, %v3256_v39  ;;  %v1099_v28 = vadd.s32 %v3226_v25, %v3224_v23  ;;  %v1132_v20 = vsel %vm3301_vm8, 0, %v1130_v57 }
 0x1ba   : > { %v1115_v31 = vsub.s32 32, %v1114_v21  ;;  %v1119_v46 = vsub.s32 4294967266, %v1114_v21  ;;  %v845_v5 = vadd.s32 1, %v2247_v29  ;;  %v1930_v35 = vmul.u32 %v1923_v37, %v1914_v1 }
 0x1bb   : > { %vm1932_vm9 = vc.u32 %v3291_v8, %v3293_v38  ;;  %v1933_v6 = vadd.s32 1, %v3294_v14  ;;  %v1116_v27 = vshll.u32 %v3280_v16, %v1114_v21  ;;  %vm1454_vm12 = vcmp.eq.s32.totalorder %v1449_v33, 2 }
 0x1bc   : > { %v1117_v11 = vshrl.u32 %v1099_v28, %v1115_v31  ;;  %v1120_v9 = vadd.s32 127, %v1119_v46  ;;  %vm846_vm11 = vcmp.gt.s32.totalorder %v845_v5, 0  ;;  %v1136_v61 = vadd.s32 3, %v1132_v20 }
 0x1bd   : > { %v2458_v24 = vpop.eup %2457  ;;  %v1934_v23 = vsel %vm1932_vm9, %v1933_v6, %v3294_v14  ;;  %v847_v25 = vsel %vm846_vm11, %v845_v5, 0  ;;  %v842_v52 = vand.u32 8388607, %v835_v18  ;;  %vm1451_vm10 = vcmp.eq.s32.totalorder %v1449_v33, 0 }
 0x1be   : > { %v2460_v36 = vpop.eup %2459  ;;  %v1455_v13 = vxor.u32 2147483648, %v2458_v24  ;;  %v1118_v12 = vor.u32 %v1117_v11, %v1116_v27  ;;  %v1121_v42 = vshll.u32 %v1120_v9, 23  ;;  %v1935_v41 = vadd.s32 %v1934_v23, %v1930_v35 }
 0x1bf   : > { %v1452_v17 = vxor.u32 2147483648, %v2460_v36  ;;  %v849_v44 = vand.u32 31, %v847_v25  ;;  %vm1447_vm13 = vweird.f32 %v3049_v47  ;;  %vm1450_vm14 = vcmp.lt.s32.totalorder %v1449_v33, 2 }
 0x1c0   : > { %v1456_v16 = vsel %vm1454_vm12, %v1455_v13, %v2460_v36  ;;  %v1122_v63 = vor.u32 4788187, %v1121_v42  ;;  %v1936_v56 = vadd.s32 536870912, %v1935_v41  ;;  %v1125_v58 = vcvt.s32.f32 %v1118_v12 }
 0x1c1   : > { %v1453_v2 = vsel %vm1451_vm10, %v2458_v24, %v1452_v17  ;;  %v850_v0 = vsub.s32 32, %v849_v44  ;;  %v3320_v48 = vand.u32 3, %v1136_v61  ;;  %v843_v26 = vor.u32 8388608, %v842_v52 }
 0x1c2   : > { %v1457_v34 = vsel %vm1450_vm14, %v1453_v2, %v1456_v16  ;;  %v1123_v4 = vand.u32 2147483647, %v1122_v63  ;;  %v3318_v30 = vshrl.u32 %v1936_v56, 30  ;;  %v848_v40 = vshrl.u32 %v847_v25, 5 }
 0x1c3   : > { %v1458_v32 = vsel %vm1447_vm13, nan, %v1457_v34  ;;  %v853_v47 = vshrl.u32 %v2520_v49, %v850_v0  ;;  %v856_v37 = vshrl.u32 %v2521_v51, %v850_v0  ;;  %v859_v3 = vshrl.u32 %v2522_v53, %v850_v0 }
 0x1c4   : > { %2093 = vst.msk [vmem:[%s2876_s28 + $0x48] sm:$0xff] %vm2083_vm0, %v1458_v32  ;;  %v1126_v15 = vmul.f32 %v1125_v58, %v1123_v4  ;;  %v1938_v22 = vshll.u32 %v3318_v30, 30  ;;  %v862_v10 = vshrl.u32 %v2523_v55, %v850_v0  ;;  %v3330_v60 = vadd.f32 %v3046_v19, %v404_v59 }
 0x1c5   : > { %v852_v1 = vshll.u32 %v2519_v45, %v849_v44  ;;  %v855_v29 = vshll.u32 %v2520_v49, %v849_v44  ;;  %v858_v33 = vshll.u32 %v2521_v51, %v849_v44  ;;  %v861_v21 = vshll.u32 %v2522_v53, %v849_v44 }
 0x1c6   : > { %v1127_v14 = vxor.u32 2147483648, %v1126_v15  ;;  %v3332_v57 = vsub.s32 %v1935_v41, %v1938_v22  ;;  %v864_v28 = vshll.u32 %v2523_v55, %v849_v44  ;;  %v865_v31 = vshrl.u32 %v2524_v62, %v850_v0 }
 0x1c7   : > { %v854_v5 = vor.u32 %v853_v47, %v852_v1  ;;  %v857_v20 = vor.u32 %v856_v37, %v855_v29  ;;  %vm1877_vm15 = vcmp.lt.s32.totalorder %v3193_v43, 0  ;;  %v860_v6 = vor.u32 %v859_v3, %v858_v33 }
 0x1c8   : > { %v1128_v46 = vsel %vm1045_vm6, %v1127_v14, %v1126_v15  ;;  %v1941_v19 = vsub.s32 0, %v3332_v57  ;;  %v863_v27 = vor.u32 %v862_v10, %v861_v21  ;;  %v866_v11 = vor.u32 %v865_v31, %v864_v28 }
 0x1c9   : > { %v1131_v35 = vsel %vm3301_vm8, %v3120_v50, %v1128_v46  ;;  %v883_v24 = vshll.u32 %v843_v26, 8  ;;  %v1670_v23 = vand.u32 2139095040, %v3330_v60  ;;  %v1961_v25 = vsub.s32 4, %v3318_v30 }
 0x1ca   : > { %2461 = vcosq.f32 %v1131_v35  ;;  %v2288_v9 = vmin.u32 %v1941_v19, %v3332_v57  ;;  %v851_v36 = vshrl.u32 %v2519_v45, %v850_v0  ;;  %vm867_vm1 = vcmp.lt.s32.totalorder %v848_v40, 1 }
 0x1cb   : > { %2463 = vsinq.f32 %v1131_v35  ;;  %vm869_vm2 = vcmp.lt.s32.totalorder %v848_v40, 3  ;;  %vm870_vm3 = vcmp.lt.s32.totalorder %v848_v40, 4  ;;  %v875_v54 = vsel %vm867_vm1, %v854_v5, %v857_v20 }
 0x1cc   : > { %v1943_v13 = vclz %v2288_v9  ;;  %v872_v12 = vsel %vm870_vm3, %v860_v6, 2102212464  ;;  %v876_v42 = vsel %vm870_vm3, %v863_v27, 920167782  ;;  %v879_v41 = vsel %vm867_vm1, %v857_v20, %v860_v6 }
 0x1cd   : > { %v880_v17 = vsel %vm870_vm3, %v866_v11, 1326507024  ;;  %vm868_vm4 = vcmp.lt.s32.totalorder %v848_v40, 2  ;;  %v877_v52 = vsel %vm869_vm2, %v860_v6, %v876_v42  ;;  %v871_v16 = vsel %vm867_vm1, %v851_v36, %v854_v5  ;;  %v2315_v40 = vpop.f32.mrf.mxu0 }
 0x1ce   : > { %v2289_v61 = vadd.s32 4294967294, %v1943_v13  ;;  %v881_v44 = vsel %vm869_vm2, %v863_v27, %v880_v17  ;;  %v878_v63 = vsel %vm868_vm4, %v875_v54, %v877_v52  ;;  %v1671_v2 = vshrl.u32 %v1670_v23, 23  ;;  %v3390_v27 = vld [vmem:[%s3752_s2] ss:$0 sm:$0xff] }
 0x1cf   : > { %v882_v56 = vsel %vm868_vm4, %v879_v41, %v881_v44  ;;  %v873_v0 = vsel %vm869_vm2, %v857_v20, %v872_v12  ;;  %v3359_v59 = vmul.u32.u64.low %v883_v24, %v878_v63  ;;  %v3360_v32 = vmul.u32.u64.high %v883_v24, %v878_v63, %v3359_v59 }
 0x1d0   : > { %vm2290_vm5 = vcmp.lt.s32.totalorder %v2289_v61, 0  ;;  %v3356_v34 = vmul.u32.u64.low %v883_v24, %v882_v56  ;;  %v3357_v4 = vmul.u32.u64.high %v883_v24, %v882_v56, %v3356_v34  ;;  %v2279_v26 = vadd.s32 4294967169, %v1671_v2 }
 0x1d1   : > { %v1946_v58 = vsel %vm2290_vm5, 0, %v2289_v61  ;;  %v1931_v15 = vadd.s32 %v3293_v38, %v3291_v8  ;;  %v1962_v37 = vsel %vm1877_vm15, %v1961_v25, %v3318_v30  ;;  %vm1138_vm6 = vcmp.lt.s32.totalorder %v3320_v48, 2 }
 0x1d2   : > { %v1947_v22 = vsub.s32 32, %v1946_v58  ;;  %v1951_v47 = vsub.s32 4294967266, %v1946_v58  ;;  %vm3371_vm7 = vcmp.le.f32.partialorder %v1875_v7, 0.7853982  ;;  %v874_v10 = vsel %vm868_vm4, %v871_v16, %v873_v0 }
 0x1d3   : > { %v1677_v14 = vadd.s32 1, %v2279_v26  ;;  %vm1135_vm8 = vweird.f32 %v3120_v50  ;;  %v1948_v8 = vshll.u32 %v3332_v57, %v1946_v58  ;;  %vm892_vm9 = vc.u32 %v3357_v4, %v3359_v59 }
 0x1d4   : > { %v1949_v38 = vshrl.u32 %v1931_v15, %v1947_v22  ;;  %v1952_v1 = vadd.s32 127, %v1951_v47  ;;  %v1964_v30 = vsel %vm3371_vm7, 0, %v1962_v37  ;;  %v893_v7 = vadd.s32 1, %v3360_v32 }
 0x1d5   : > { %v1667_v29 = vand.u32 2147483647, %v3330_v60  ;;  %vm1678_vm11 = vcmp.gt.s32.totalorder %v1677_v14, 0  ;;  %v890_v28 = vmul.u32 %v883_v24, %v874_v10  ;;  %vm1139_vm12 = vcmp.eq.s32.totalorder %v3320_v48, 0 }
 0x1d6   : > { %v1950_v33 = vor.u32 %v1949_v38, %v1948_v8  ;;  %v1953_v21 = vshll.u32 %v1952_v1, 23  ;;  %v1679_v31 = vsel %vm1678_vm11, %v1677_v14, 0  ;;  %vm1142_vm10 = vcmp.eq.s32.totalorder %v3320_v48, 2 }
 0x1d7   : > { %v2462_v46 = vpop.eup %2461  ;;  %v894_v57 = vsel %vm892_vm9, %v893_v7, %v3360_v32  ;;  %v1681_v19 = vand.u32 31, %v1679_v31  ;;  %v3393_v11 = vadd.f32 %v3390_v27, %v2315_v40  ;;  %v3395_v24 = vadd.s32 3, %v1964_v30 }
 0x1d8   : > { %v2464_v5 = vpop.eup %2463  ;;  %v1143_v20 = vxor.u32 2147483648, %v2462_v46  ;;  %v1954_v35 = vor.u32 4788187, %v1953_v21  ;;  %v895_v6 = vadd.s32 %v894_v57, %v890_v28  ;;  %v1674_v23 = vand.u32 8388607, %v1667_v29 }
 0x1d9   : > { %v1140_v9 = vxor.u32 2147483648, %v2464_v5  ;;  %v1682_v25 = vsub.s32 32, %v1681_v19  ;;  %v1957_v54 = vcvt.s32.f32 %v1950_v33  ;;  %v1684_v41 = vshll.u32 %v2519_v45, %v1681_v19 }
 0x1da   : > { %v1144_v36 = vsel %vm1142_vm10, %v1143_v20, %v2464_v5  ;;  %v1955_v13 = vand.u32 2147483647, %v1954_v35  ;;  %v896_v12 = vadd.s32 536870912, %v895_v6  ;;  %v1675_v2 = vor.u32 8388608, %v1674_v23 }
 0x1db   : > { %v1141_v42 = vsel %vm1139_vm12, %v2462_v46, %v1140_v9  ;;  %v1685_v17 = vshrl.u32 %v2520_v49, %v1682_v25  ;;  %v1688_v61 = vshrl.u32 %v2521_v51, %v1682_v25  ;;  %v1691_v63 = vshrl.u32 %v2522_v53, %v1682_v25 }
 0x1dc   : > { %v1145_v52 = vsel %vm1138_vm6, %v1141_v42, %v1144_v36  ;;  %v1958_v44 = vmul.f32 %v1957_v54, %v1955_v13  ;;  %v3406_v16 = vshrl.u32 %v896_v12, 30  ;;  %v1680_v0 = vshrl.u32 %v1679_v31, 5  ;;  %v2323_v54 = vpop.f32.mrf.mxu1 }
 0x1dd   : > { %v1146_v56 = vsel %vm1135_vm8, nan, %v1145_v52  ;;  %v1687_v34 = vshll.u32 %v2520_v49, %v1681_v19  ;;  %v1686_v26 = vor.u32 %v1685_v17, %v1684_v41  ;;  %v1690_v48 = vshll.u32 %v2521_v51, %v1681_v19 }
 0x1de   : > { %2090 = vst.msk [vmem:[%s2876_s28 + $0x30] sm:$0xff] %vm2083_vm0, %v1146_v56  ;;  %v1959_v58 = vxor.u32 2147483648, %v1958_v44  ;;  %v898_v32 = vshll.u32 %v3406_v16, 30  ;;  %v1693_v15 = vshll.u32 %v2522_v53, %v1681_v19  ;;  %v1694_v22 = vshrl.u32 %v2523_v55, %v1682_v25 }
 0x1df   : > { %v1696_v47 = vshll.u32 %v2523_v55, %v1681_v19  ;;  %v1697_v50 = vshrl.u32 %v2524_v62, %v1682_v25  ;;  %v1689_v14 = vor.u32 %v1688_v61, %v1687_v34  ;;  %v1692_v8 = vor.u32 %v1691_v63, %v1690_v48 }
 0x1e0   : > { %v1960_v37 = vsel %vm1877_vm15, %v1959_v58, %v1958_v44  ;;  %v3422_v10 = vsub.s32 %v895_v6, %v898_v32  ;;  %v1695_v1 = vor.u32 %v1694_v22, %v1693_v15  ;;  %v1147_v7 = vand.u32 2147483647, %v3393_v11 }
 0x1e1   : > { %v1963_v38 = vsel %vm3371_vm7, %v3193_v43, %v1960_v37  ;;  %v1698_v30 = vor.u32 %v1697_v50, %v1696_v47  ;;  %v1683_v33 = vshrl.u32 %v2519_v45, %v1682_v25  ;;  %v1150_v21 = vand.u32 2139095040, %v3393_v11 }
 0x1e2   : > { %2465 = vcosq.f32 %v1963_v38  ;;  %v901_v40 = vsub.s32 0, %v3422_v10  ;;  %vm837_vm13 = vcmp.lt.s32.totalorder %v3256_v39, 0  ;;  %vm1699_vm14 = vcmp.lt.s32.totalorder %v1680_v0, 1 }
 0x1e3   : > { %2467 = vsinq.f32 %v1963_v38  ;;  %vm1701_vm15 = vcmp.lt.s32.totalorder %v1680_v0, 3  ;;  %vm1702_vm1 = vcmp.lt.s32.totalorder %v1680_v0, 4  ;;  %v1707_v31 = vsel %vm1699_vm14, %v1686_v26, %v1689_v14 }
 0x1e4   : > { %v2248_v3 = vmin.u32 %v901_v40, %v3422_v10  ;;  %v1704_v28 = vsel %vm1702_vm1, %v1692_v8, 2102212464  ;;  %v1708_v46 = vsel %vm1702_vm1, %v1695_v1, 920167782  ;;  %v1711_v19 = vsel %vm1699_vm14, %v1689_v14, %v1692_v8 }
 0x1e5   : > { %v1709_v57 = vsel %vm1701_vm15, %v1692_v8, %v1708_v46  ;;  %v1712_v5 = vsel %vm1702_vm1, %v1698_v30, 1326507024  ;;  %v1715_v20 = vshll.u32 %v1675_v2, 8  ;;  %v921_v6 = vsub.s32 4, %v3406_v16 }
 0x1e6   : > { %v903_v35 = vclz %v2248_v3  ;;  %vm1700_vm2 = vcmp.lt.s32.totalorder %v1680_v0, 2  ;;  %v1703_v9 = vsel %vm1699_vm14, %v1683_v33, %v1686_v26  ;;  %v1705_v23 = vsel %vm1701_vm15, %v1689_v14, %v1704_v28 }
 0x1e7   : > { %v1710_v25 = vsel %vm1700_vm2, %v1707_v31, %v1709_v57  ;;  %v1713_v36 = vsel %vm1701_vm15, %v1695_v1, %v1712_v5  ;;  %v1151_v13 = vshrl.u32 %v1150_v21, 23  ;;  %vm3442_vm3 = vcmp.le.f32.partialorder %v835_v18, 0.7853982 }
 0x1e8   : > { %v2249_v12 = vadd.s32 4294967294, %v903_v35  ;;  %v1714_v42 = vsel %vm1700_vm2, %v1711_v19, %v1713_v36  ;;  %v3437_v41 = vmul.u32.u64.low %v1715_v20, %v1710_v25  ;;  %v3438_v17 = vmul.u32.u64.high %v1715_v20, %v1710_v25, %v3437_v41 }
 0x1e9   : > { %v3446_v52 = vmul.u32.u64.low %v1715_v20, %v1714_v42  ;;  %v3447_v44 = vmul.u32.u64.high %v1715_v20, %v1714_v42, %v3446_v52  ;;  %v2259_v63 = vadd.s32 4294967169, %v1151_v13  ;;  %v1969_v56 = vand.u32 3, %v3395_v24 }
 0x1ea   : > { %vm2250_vm4 = vcmp.lt.s32.totalorder %v2249_v12, 0  ;;  %v1706_v2 = vsel %vm1700_vm2, %v1703_v9, %v1705_v23  ;;  %v3451_v0 = vadd.f32 %v3390_v27, %v2323_v54  ;;  %v891_v34 = vadd.s32 %v3359_v59, %v3357_v4 }
 0x1eb   : > { %v906_v58 = vsel %vm2250_vm4, 0, %v2249_v12  ;;  %v3457_v18 = vand.u32 8388607, %v1147_v7  ;;  %v1157_v32 = vadd.s32 1, %v2259_v63  ;;  %vm1967_vm5 = vweird.f32 %v3193_v43 }
 0x1ec   : > { %v907_v26 = vsub.s32 32, %v906_v58  ;;  %v911_v48 = vsub.s32 4294967266, %v906_v58  ;;  %v922_v24 = vsel %vm837_vm13, %v921_v6, %v3406_v16  ;;  %v1725_v15 = vadd.s32 1, %v3438_v17 }
 0x1ed   : > { %v908_v22 = vshll.u32 %v3422_v10, %v906_v58  ;;  %v1722_v47 = vmul.u32 %v1715_v20, %v1706_v2  ;;  %vm1724_vm6 = vc.u32 %v3447_v44, %v3437_v41  ;;  %vm1158_vm7 = vcmp.gt.s32.totalorder %v1157_v32, 0 }
 0x1ee   : > { %v909_v4 = vshrl.u32 %v891_v34, %v907_v26  ;;  %v912_v59 = vadd.s32 127, %v911_v48  ;;  %v1726_v50 = vsel %vm1724_vm6, %v1725_v15, %v3438_v17  ;;  %v1159_v37 = vsel %vm1158_vm7, %v1157_v32, 0 }
 0x1ef   : > { %v2466_v14 = vpop.eup %2465  ;;  %vm1970_vm8 = vcmp.lt.s32.totalorder %v1969_v56, 2  ;;  %v924_v8 = vsel %vm3442_vm3, 0, %v922_v24  ;;  %v1727_v38 = vadd.s32 %v1726_v50, %v1722_v47  ;;  %v1161_v16 = vand.u32 31, %v1159_v37 }
 0x1f0   : > { %v2468_v1 = vpop.eup %2467  ;;  %vm1971_vm9 = vcmp.eq.s32.totalorder %v1969_v56, 0  ;;  %v1975_v30 = vxor.u32 2147483648, %v2466_v14  ;;  %v910_v10 = vor.u32 %v909_v4, %v908_v22  ;;  %v913_v40 = vshll.u32 %v912_v59, 23 }
 0x1f1   : > { %v1972_v33 = vxor.u32 2147483648, %v2468_v1  ;;  %vm1974_vm11 = vcmp.eq.s32.totalorder %v1969_v56, 2  ;;  %v1728_v21 = vadd.s32 536870912, %v1727_v38  ;;  %v1162_v3 = vsub.s32 32, %v1161_v16 }
 0x1f2   : > { %v1976_v28 = vsel %vm1974_vm11, %v1975_v30, %v2468_v1  ;;  %v914_v31 = vor.u32 4788187, %v913_v40  ;;  %v3469_v46 = vadd.s32 3, %v924_v8  ;;  %v1155_v57 = vor.u32 8388608, %v3457_v18 }
 0x1f3   : > { %v1973_v19 = vsel %vm1971_vm9, %v2466_v14, %v1972_v33  ;;  %v1729_v5 = vshrl.u32 %v1728_v21, 30  ;;  %v1979_v20 = vand.u32 2147483647, %v3451_v0  ;;  %v1982_v35 = vand.u32 2139095040, %v3451_v0 }
 0x1f4   : > { %v1977_v6 = vsel %vm1970_vm8, %v1973_v19, %v1976_v28  ;;  %v915_v9 = vand.u32 2147483647, %v914_v31  ;;  %v917_v23 = vcvt.s32.f32 %v910_v10  ;;  %v1165_v25 = vshrl.u32 %v2520_v49, %v1162_v3 }
 0x1f5   : > { %v1978_v36 = vsel %vm1967_vm5, nan, %v1977_v6  ;;  %v3479_v13 = vadd.s32 %v3437_v41, %v3447_v44  ;;  %v1730_v54 = vshll.u32 %v1729_v5, 30  ;;  %v1168_v12 = vshrl.u32 %v2521_v51, %v1162_v3 }
 0x1f6   : > { %2098 = vst.msk [vmem:[%s2876_s28 + $0x70] sm:$0xff] %vm2083_vm0, %v1978_v36  ;;  %v918_v42 = vmul.f32 %v917_v23, %v915_v9  ;;  %v1160_v17 = vshrl.u32 %v1159_v37, 5  ;;  %v1164_v52 = vshll.u32 %v2519_v45, %v1161_v16  ;;  %v1171_v63 = vshrl.u32 %v2522_v53, %v1162_v3 }
 0x1f7   : > { %v3486_v56 = vsub.s32 %v1727_v38, %v1730_v54  ;;  %v1167_v2 = vshll.u32 %v2520_v49, %v1161_v16  ;;  %v1170_v43 = vshll.u32 %v2521_v51, %v1161_v16  ;;  %v1174_v41 = vshrl.u32 %v2523_v55, %v1162_v3 }
 0x1f8   : > { %v919_v44 = vxor.u32 2147483648, %v918_v42  ;;  %v1166_v34 = vor.u32 %v1165_v25, %v1164_v52  ;;  %v1173_v58 = vshll.u32 %v2522_v53, %v1161_v16  ;;  %v1177_v18 = vshrl.u32 %v2524_v62, %v1162_v3 }
 0x1f9   : > { %vm1669_vm12 = vcmp.lt.s32.totalorder %v3330_v60, 0  ;;  %v1733_v32 = vsub.s32 0, %v3486_v56  ;;  %v1169_v26 = vor.u32 %v1168_v12, %v1167_v2  ;;  %v1172_v48 = vor.u32 %v1171_v63, %v1170_v43 }
 0x1fa   : > { %v1176_v24 = vshll.u32 %v2523_v55, %v1161_v16  ;;  %v920_v15 = vsel %vm837_vm13, %v919_v44, %v918_v42  ;;  %v1175_v22 = vor.u32 %v1174_v41, %v1173_v58  ;;  %v1195_v47 = vshll.u32 %v1155_v57, 8 }
 0x1fb   : > { %v1983_v4 = vshrl.u32 %v1982_v35, 23  ;;  %v923_v59 = vsel %vm3442_vm3, %v3256_v39, %v920_v15  ;;  %v2280_v50 = vmin.u32 %v1733_v32, %v3486_v56  ;;  %v1163_v37 = vshrl.u32 %v2519_v45, %v1162_v3 }
 0x1fc   : > { %v1178_v14 = vor.u32 %v1177_v18, %v1176_v24  ;;  %2469 = vcosq.f32 %v923_v59  ;;  %v1753_v8 = vsub.s32 4, %v1729_v5  ;;  %vm1179_vm10 = vcmp.lt.s32.totalorder %v1160_v17, 1 }
 0x1fd   : > { %vm1182_vm14 = vcmp.lt.s32.totalorder %v1160_v17, 4  ;;  %2471 = vsinq.f32 %v923_v59  ;;  %v1735_v38 = vclz %v2280_v50  ;;  %v1187_v1 = vsel %vm1179_vm10, %v1166_v34, %v1169_v26 }
 0x1fe   : > { %v1184_v16 = vsel %vm1182_vm14, %v1172_v48, 2102212464  ;;  %vm1180_vm13 = vcmp.lt.s32.totalorder %v1160_v17, 2  ;;  %vm1181_vm15 = vcmp.lt.s32.totalorder %v1160_v17, 3  ;;  %v1188_v30 = vsel %vm1182_vm14, %v1175_v22, 920167782 }
 0x1ff   : > { %v1191_v10 = vsel %vm1179_vm10, %v1169_v26, %v1172_v48  ;;  %v2281_v40 = vadd.s32 4294967294, %v1735_v38  ;;  %v1183_v61 = vsel %vm1179_vm10, %v1163_v37, %v1166_v34  ;;  %v1189_v33 = vsel %vm1181_vm15, %v1172_v48, %v1188_v30 }
 0x200   : > { %v1192_v21 = vsel %vm1182_vm14, %v1178_v14, 1326507024  ;;  %v1185_v28 = vsel %vm1181_vm15, %v1169_v26, %v1184_v16  ;;  %v1190_v3 = vsel %vm1180_vm13, %v1187_v1, %v1189_v33  ;;  %v2291_v57 = vadd.s32 4294967169, %v1983_v4 }
 0x201   : > { %v1193_v31 = vsel %vm1181_vm15, %v1175_v22, %v1192_v21  ;;  %vm2282_vm1 = vcmp.lt.s32.totalorder %v2281_v40, 0  ;;  %v3505_v35 = vmul.u32.u64.low %v1195_v47, %v1190_v3  ;;  %v3506_v6 = vmul.u32.u64.high %v1195_v47, %v1190_v3, %v3505_v35 }
 0x202   : > { %v1194_v19 = vsel %vm1180_vm13, %v1191_v10, %v1193_v31  ;;  %v1738_v9 = vsel %vm2282_vm1, 0, %v2281_v40  ;;  %v1754_v23 = vsel %vm1669_vm12, %v1753_v8, %v1729_v5  ;;  %v1186_v42 = vsel %vm1180_vm13, %v1183_v61, %v1185_v28 }
 0x203   : > { %v3511_v25 = vmul.u32.u64.low %v1195_v47, %v1194_v19  ;;  %v3512_v36 = vmul.u32.u64.high %v1195_v47, %v1194_v19, %v3511_v25  ;;  %v1739_v54 = vsub.s32 32, %v1738_v9  ;;  %v1743_v12 = vsub.s32 4294967266, %v1738_v9 }
 0x204   : > { %v1989_v52 = vadd.s32 1, %v2291_v57  ;;  %v929_v63 = vand.u32 3, %v3469_v46  ;;  %vm3518_vm2 = vcmp.le.f32.partialorder %v1667_v29, 0.7853982  ;;  %v1740_v43 = vshll.u32 %v3486_v56, %v1738_v9 }
 0x205   : > { %v1741_v5 = vshrl.u32 %v3479_v13, %v1739_v54  ;;  %v1744_v41 = vadd.s32 127, %v1743_v12  ;;  %v1205_v44 = vadd.s32 1, %v3506_v6  ;;  %v1756_v17 = vsel %vm3518_vm2, 0, %v1754_v23  ;;  %v375_v12 = vpop.f32.mrf.mxu0 }
 0x206   : > { %vm1990_vm3 = vcmp.gt.s32.totalorder %v1989_v52, 0  ;;  %v1202_v34 = vmul.u32 %v1195_v47, %v1186_v42  ;;  %vm1204_vm4 = vc.u32 %v3512_v36, %v3505_v35  ;;  %v1986_v56 = vand.u32 8388607, %v1979_v20 }
 0x207   : > { %v1991_v46 = vsel %vm1990_vm3, %v1989_v52, 0  ;;  %v1742_v29 = vor.u32 %v1741_v5, %v1740_v43  ;;  %v1745_v58 = vshll.u32 %v1744_v41, 23  ;;  %v1206_v18 = vsel %vm1204_vm4, %v1205_v44, %v3506_v6 }
 0x208   : > { %vm927_vm5 = vweird.f32 %v3256_v39  ;;  %v1207_v13 = vadd.s32 %v1206_v18, %v1202_v34  ;;  %v1993_v32 = vand.u32 31, %v1991_v46  ;;  %vm930_vm6 = vcmp.lt.s32.totalorder %v929_v63, 2 }
 0x209   : > { %v2470_v26 = vpop.eup %2469  ;;  %vm931_vm7 = vcmp.eq.s32.totalorder %v929_v63, 0  ;;  %vm934_vm8 = vcmp.eq.s32.totalorder %v929_v63, 2  ;;  %v1746_v48 = vor.u32 4788187, %v1745_v58  ;;  %v1760_v22 = vadd.s32 3, %v1756_v17 }
 0x20a   : > { %v2472_v24 = vpop.eup %2471  ;;  %v935_v15 = vxor.u32 2147483648, %v2470_v26  ;;  %v1208_v47 = vadd.s32 536870912, %v1207_v13  ;;  %v1994_v4 = vsub.s32 32, %v1993_v32  ;;  %v1749_v37 = vcvt.s32.f32 %v1742_v29 }
 0x20b   : > { %v932_v59 = vxor.u32 2147483648, %v2472_v24  ;;  %v1747_v50 = vand.u32 2147483647, %v1746_v48  ;;  %v1987_v14 = vor.u32 8388608, %v1986_v56  ;;  %v1996_v16 = vshll.u32 %v2519_v45, %v1993_v32 }
 0x20c   : > { %v936_v8 = vsel %vm934_vm8, %v935_v15, %v2472_v24  ;;  %v3533_v38 = vshrl.u32 %v1208_v47, 30  ;;  %v1997_v1 = vshrl.u32 %v2520_v49, %v1994_v4  ;;  %v2000_v40 = vshrl.u32 %v2521_v51, %v1994_v4 }
 0x20d   : > { %v933_v30 = vsel %vm931_vm7, %v2470_v26, %v932_v59  ;;  %v1750_v10 = vmul.f32 %v1749_v37, %v1747_v50  ;;  %v2003_v61 = vshrl.u32 %v2522_v53, %v1994_v4  ;;  %v1992_v28 = vshrl.u32 %v1991_v46, 5  ;;  %v407_v37 = vpop.f32.mrf.mxu1 }
 0x20e   : > { %v937_v33 = vsel %vm930_vm6, %v933_v30, %v936_v8  ;;  %v1210_v21 = vshll.u32 %v3533_v38, 30  ;;  %v1999_v3 = vshll.u32 %v2520_v49, %v1993_v32  ;;  %v1998_v19 = vor.u32 %v1997_v1, %v1996_v16 }
 0x20f   : > { %v938_v31 = vsel %vm927_vm5, nan, %v937_v33  ;;  %v1751_v57 = vxor.u32 2147483648, %v1750_v10  ;;  %v2002_v6 = vshll.u32 %v2521_v51, %v1993_v32  ;;  %v2005_v25 = vshll.u32 %v2522_v53, %v1993_v32 }
 0x210   : > { %2088 = vst.msk [vmem:[%s2876_s28 + $0x20] sm:$0xff] %vm2083_vm0, %v938_v31  ;;  %v3548_v9 = vsub.s32 %v1207_v13, %v1210_v21  ;;  %v2001_v23 = vor.u32 %v2000_v40, %v1999_v3  ;;  %v2006_v54 = vshrl.u32 %v2523_v55, %v1994_v4  ;;  %v2008_v39 = vshll.u32 %v2523_v55, %v1993_v32 }
 0x211   : > { %v1752_v42 = vsel %vm1669_vm12, %v1751_v57, %v1750_v10  ;;  %v2004_v52 = vor.u32 %v2003_v61, %v2002_v6  ;;  %v2009_v63 = vshrl.u32 %v2524_v62, %v1994_v4  ;;  %v3559_v5 = vand.u32 3, %v1760_v22 }
 0x212   : > { %v1755_v43 = vsel %vm3518_vm2, %v3330_v60, %v1752_v42  ;;  %v1213_v41 = vsub.s32 0, %v3548_v9  ;;  %v2007_v44 = vor.u32 %v2006_v54, %v2005_v25  ;;  %vm2011_vm9 = vcmp.lt.s32.totalorder %v1992_v28, 1 }
 0x213   : > { %2473 = vcosq.f32 %v1755_v43  ;;  %v2010_v17 = vor.u32 %v2009_v63, %v2008_v39  ;;  %v3563_v34 = vadd.f32 %v3390_v27, %v375_v12  ;;  %v1995_v29 = vshrl.u32 %v2519_v45, %v1994_v4 }
 0x214   : > { %2475 = vsinq.f32 %v1755_v43  ;;  %v2260_v46 = vmin.u32 %v1213_v41, %v3548_v9  ;;  %vm2014_vm11 = vcmp.lt.s32.totalorder %v1992_v28, 4  ;;  %v2019_v2 = vsel %vm2011_vm9, %v1998_v19, %v2001_v23 }
 0x215   : > { %v2016_v58 = vsel %vm2014_vm11, %v2004_v52, 2102212464  ;;  %v2020_v18 = vsel %vm2014_vm11, %v2007_v44, 920167782  ;;  %v2027_v56 = vshll.u32 %v1987_v14, 8  ;;  %vm2013_vm12 = vcmp.lt.s32.totalorder %v1992_v28, 3 }
 0x216   : > { %v1215_v13 = vclz %v2260_v46  ;;  %v2015_v32 = vsel %vm2011_vm9, %v1995_v29, %v1998_v19  ;;  %v2023_v26 = vsel %vm2011_vm9, %v2001_v23, %v2004_v52  ;;  %vm2012_vm10 = vcmp.lt.s32.totalorder %v1992_v28, 2 }
 0x217   : > { %v2017_v48 = vsel %vm2013_vm12, %v2001_v23, %v2016_v58  ;;  %v2021_v24 = vsel %vm2013_vm12, %v2004_v52, %v2020_v18  ;;  %v2024_v15 = vsel %vm2014_vm11, %v2010_v17, 1326507024  ;;  %v1233_v47 = vsub.s32 4, %v3533_v38 }
 0x218   : > { %v2261_v22 = vadd.s32 4294967294, %v1215_v13  ;;  %v2022_v59 = vsel %vm2012_vm10, %v2019_v2, %v2021_v24  ;;  %v2025_v50 = vsel %vm2013_vm12, %v2007_v44, %v2024_v15  ;;  %v2018_v4 = vsel %vm2012_vm10, %v2015_v32, %v2017_v48 }
 0x219   : > { %v2026_v8 = vsel %vm2012_vm10, %v2023_v26, %v2025_v50  ;;  %v3568_v16 = vmul.u32.u64.low %v2027_v56, %v2022_v59  ;;  %v3569_v1 = vmul.u32.u64.high %v2027_v56, %v2022_v59, %v3568_v16  ;;  %v942_v10 = vand.u32 2139095040, %v3563_v34 }
 0x21a   : > { %vm2262_vm14 = vcmp.lt.s32.totalorder %v2261_v22, 0  ;;  %v3572_v14 = vmul.u32.u64.low %v2027_v56, %v2026_v8  ;;  %v3573_v30 = vmul.u32.u64.high %v2027_v56, %v2026_v8, %v3572_v14  ;;  %vm1149_vm13 = vcmp.lt.s32.totalorder %v3393_v11, 0 }
 0x21b   : > { %v1203_v40 = vadd.s32 %v3505_v35, %v3512_v36  ;;  %v1218_v61 = vsel %vm2262_vm14, 0, %v2261_v22  ;;  %v3580_v33 = vadd.f32 %v3390_v27, %v407_v37  ;;  %v1234_v3 = vsel %vm1149_vm13, %v1233_v47, %v3533_v38 }
 0x21c   : > { %v1219_v21 = vsub.s32 32, %v1218_v61  ;;  %v1223_v28 = vsub.s32 4294967266, %v1218_v61  ;;  %v943_v31 = vshrl.u32 %v942_v10, 23  ;;  %vm1762_vm15 = vcmp.lt.s32.totalorder %v3559_v5, 2 }
 0x21d   : > { %vm3588_vm1 = vcmp.le.f32.partialorder %v1147_v7, 0.7853982  ;;  %v2034_v35 = vmul.u32 %v2027_v56, %v2018_v4  ;;  %v2037_v36 = vadd.s32 1, %v3569_v1  ;;  %v1220_v27 = vshll.u32 %v3548_v9, %v1218_v61 }
 0x21e   : > { %v1221_v19 = vshrl.u32 %v1203_v40, %v1219_v21  ;;  %v1224_v6 = vadd.s32 127, %v1223_v28  ;;  %vm2036_vm2 = vc.u32 %v3573_v30, %v3568_v16  ;;  %v1236_v38 = vsel %vm3588_vm1, 0, %v1234_v3 }
 0x21f   : > { %v2038_v23 = vsel %vm2036_vm2, %v2037_v36, %v3569_v1  ;;  %v2251_v25 = vadd.s32 4294967169, %v943_v31  ;;  %v1774_v7 = vand.u32 2139095040, %v3580_v33  ;;  %vm1763_vm3 = vcmp.eq.s32.totalorder %v3559_v5, 0 }
 0x220   : > { %v2474_v54 = vpop.eup %2473  ;;  %v1222_v12 = vor.u32 %v1221_v19, %v1220_v27  ;;  %v1225_v42 = vshll.u32 %v1224_v6, 23  ;;  %v2039_v52 = vadd.s32 %v2038_v23, %v2034_v35  ;;  %vm1766_vm4 = vcmp.eq.s32.totalorder %v3559_v5, 2 }
 0x221   : > { %v2476_v9 = vpop.eup %2475  ;;  %v1767_v39 = vxor.u32 2147483648, %v2474_v54  ;;  %v939_v63 = vand.u32 2147483647, %v3563_v34  ;;  %v949_v43 = vadd.s32 1, %v2251_v25  ;;  %v1240_v17 = vadd.s32 3, %v1236_v38 }
 0x222   : > { %v1764_v41 = vxor.u32 2147483648, %v2476_v9  ;;  %v1226_v44 = vor.u32 4788187, %v1225_v42  ;;  %v2040_v46 = vadd.s32 536870912, %v2039_v52  ;;  %v1229_v58 = vcvt.s32.f32 %v1222_v12 }
 0x223   : > { %v1768_v29 = vsel %vm1766_vm4, %v1767_v39, %v2476_v9  ;;  %vm950_vm5 = vcmp.gt.s32.totalorder %v949_v43, 0  ;;  %v1775_v2 = vshrl.u32 %v1774_v7, 23  ;;  %vm1759_vm6 = vweird.f32 %v3330_v60 }
 0x224   : > { %v1765_v18 = vsel %vm1763_vm3, %v2474_v54, %v1764_v41  ;;  %v1227_v56 = vand.u32 2147483647, %v1226_v44  ;;  %v3605_v13 = vshrl.u32 %v2040_v46, 30  ;;  %v951_v32 = vsel %vm950_vm5, %v949_v43, 0 }
 0x225   : > { %v1769_v26 = vsel %vm1762_vm15, %v1765_v18, %v1768_v29  ;;  %v953_v48 = vand.u32 31, %v951_v32  ;;  %v3613_v47 = vand.u32 3, %v1240_v17  ;;  %v946_v59 = vand.u32 8388607, %v939_v63 }
 0x226   : > { %v1770_v24 = vsel %vm1759_vm6, nan, %v1769_v26  ;;  %v1230_v15 = vmul.f32 %v1229_v58, %v1227_v56  ;;  %v2042_v22 = vshll.u32 %v3605_v13, 30  ;;  %v952_v60 = vshrl.u32 %v951_v32, 5 }
 0x227   : > { %2096 = vst.msk [vmem:[%s2876_s28 + $0x60] sm:$0xff] %vm2083_vm0, %v1770_v24  ;;  %v954_v50 = vsub.s32 32, %v953_v48  ;;  %v2283_v8 = vadd.s32 4294967169, %v1775_v2  ;;  %v956_v5 = vshll.u32 %v2519_v45, %v953_v48  ;;  %v959_v14 = vshll.u32 %v2520_v49, %v953_v48 }
 0x228   : > { %v1231_v37 = vxor.u32 2147483648, %v1230_v15  ;;  %v3617_v4 = vsub.s32 %v2039_v52, %v2042_v22  ;;  %v962_v21 = vshll.u32 %v2521_v51, %v953_v48  ;;  %v965_v35 = vshll.u32 %v2522_v53, %v953_v48 }
 0x229   : > { %v957_v1 = vshrl.u32 %v2520_v49, %v954_v50  ;;  %v960_v10 = vshrl.u32 %v2521_v51, %v954_v50  ;;  %v963_v28 = vshrl.u32 %v2522_v53, %v954_v50  ;;  %v966_v36 = vshrl.u32 %v2523_v55, %v954_v50 }
 0x22a   : > { %v1232_v40 = vsel %vm1149_vm13, %v1231_v37, %v1230_v15  ;;  %v2045_v61 = vsub.s32 0, %v3617_v4  ;;  %v968_v23 = vshll.u32 %v2523_v55, %v953_v48  ;;  %v969_v25 = vshrl.u32 %v2524_v62, %v954_v50 }
 0x22b   : > { %v1235_v3 = vsel %vm3588_vm1, %v3393_v11, %v1232_v40  ;;  %v958_v31 = vor.u32 %v957_v1, %v956_v5  ;;  %v961_v19 = vor.u32 %v960_v10, %v959_v14  ;;  %v964_v6 = vor.u32 %v963_v28, %v962_v21 }
 0x22c   : > { %2477 = vcosq.f32 %v1235_v3  ;;  %v2292_v27 = vmin.u32 %v2045_v61, %v3617_v4  ;;  %v967_v38 = vor.u32 %v966_v36, %v965_v35  ;;  %v2035_v57 = vadd.s32 %v3568_v16, %v3573_v30 }
 0x22d   : > { %2479 = vsinq.f32 %v1235_v3  ;;  %v947_v54 = vor.u32 8388608, %v946_v59  ;;  %v1771_v12 = vand.u32 2147483647, %v3580_v33  ;;  %v955_v42 = vshrl.u32 %v2519_v45, %v954_v50 }
 0x22e   : > { %v2047_v7 = vclz %v2292_v27  ;;  %v970_v52 = vor.u32 %v969_v25, %v968_v23  ;;  %vm971_vm7 = vcmp.lt.s32.totalorder %v952_v60, 1  ;;  %v1781_v9 = vadd.s32 1, %v2283_v8 }
 0x22f   : > { %vm973_vm8 = vcmp.lt.s32.totalorder %v952_v60, 3  ;;  %vm974_vm9 = vcmp.lt.s32.totalorder %v952_v60, 4  ;;  %v979_v43 = vsel %vm971_vm7, %v958_v31, %v961_v19  ;;  %v983_v17 = vsel %vm971_vm7, %v961_v19, %v964_v6 }
 0x230   : > { %v2293_v39 = vadd.s32 4294967294, %v2047_v7  ;;  %v976_v41 = vsel %vm974_vm9, %v964_v6, 2102212464  ;;  %v980_v44 = vsel %vm974_vm9, %v967_v38, 920167782  ;;  %vm1981_vm11 = vcmp.lt.s32.totalorder %v3451_v0, 0 }
 0x231   : > { %v984_v46 = vsel %vm974_vm9, %v970_v52, 1326507024  ;;  %vm972_vm10 = vcmp.lt.s32.totalorder %v952_v60, 2  ;;  %v981_v16 = vsel %vm973_vm8, %v964_v6, %v980_v44  ;;  %v987_v18 = vshll.u32 %v947_v54, 8 }
 0x232   : > { %vm2294_vm12 = vcmp.lt.s32.totalorder %v2293_v39, 0  ;;  %v985_v30 = vsel %vm973_vm8, %v967_v38, %v984_v46  ;;  %v982_v58 = vsel %vm972_vm10, %v979_v43, %v981_v16  ;;  %v975_v26 = vsel %vm971_vm7, %v955_v42, %v958_v31 }
 0x233   : > { %v2050_v29 = vsel %vm2294_vm12, 0, %v2293_v39  ;;  %v986_v2 = vsel %vm972_vm10, %v983_v17, %v985_v30  ;;  %v977_v48 = vsel %vm973_vm8, %v961_v19, %v976_v41  ;;  %vm1239_vm14 = vweird.f32 %v3393_v11 }
 0x234   : > { %v2051_v56 = vsub.s32 32, %v2050_v29  ;;  %v2055_v32 = vsub.s32 4294967266, %v2050_v29  ;;  %v3649_v24 = vmul.u32.u64.low %v987_v18, %v986_v2  ;;  %v3650_v15 = vmul.u32.u64.high %v987_v18, %v986_v2, %v3649_v24 }
 0x235   : > { %v3652_v22 = vmul.u32.u64.low %v987_v18, %v982_v58  ;;  %v3653_v59 = vmul.u32.u64.high %v987_v18, %v982_v58, %v3652_v22  ;;  %v2052_v50 = vshll.u32 %v3617_v4, %v2050_v29  ;;  %vm1782_vm13 = vcmp.gt.s32.totalorder %v1781_v9, 0 }
 0x236   : > { %v2053_v37 = vshrl.u32 %v2035_v57, %v2051_v56  ;;  %v2056_v8 = vadd.s32 127, %v2055_v32  ;;  %v2065_v5 = vsub.s32 4, %v3605_v13  ;;  %v978_v1 = vsel %vm972_vm10, %v975_v26, %v977_v48 }
 0x237   : > { %v1778_v14 = vand.u32 8388607, %v1771_v12  ;;  %v1783_v10 = vsel %vm1782_vm13, %v1781_v9, 0  ;;  %vm1242_vm15 = vcmp.lt.s32.totalorder %v3613_v47, 2  ;;  %vm1243_vm1 = vcmp.eq.s32.totalorder %v3613_v47, 0 }
 0x238   : > { %v2054_v40 = vor.u32 %v2053_v37, %v2052_v50  ;;  %v2057_v61 = vshll.u32 %v2056_v8, 23  ;;  %v1785_v21 = vand.u32 31, %v1783_v10  ;;  %vm1246_vm2 = vcmp.eq.s32.totalorder %v3613_v47, 2 }
 0x239   : > { %v2478_v28 = vpop.eup %2477  ;;  %vm996_vm3 = vc.u32 %v3650_v15, %v3652_v22  ;;  %v997_v4 = vadd.s32 1, %v3653_v59  ;;  %vm3670_vm4 = vcmp.le.f32.partialorder %v1979_v20, 0.7853982  ;;  %v994_v36 = vmul.u32 %v987_v18, %v978_v1 }
 0x23a   : > { %v2480_v60 = vpop.eup %2479  ;;  %v1247_v3 = vxor.u32 2147483648, %v2478_v28  ;;  %v2058_v35 = vor.u32 4788187, %v2057_v61  ;;  %v1786_v27 = vsub.s32 32, %v1785_v21  ;;  %v2066_v6 = vsel %vm1981_vm11, %v2065_v5, %v3605_v13 }
 0x23b   : > { %v1244_v19 = vxor.u32 2147483648, %v2480_v60  ;;  %v998_v38 = vsel %vm996_vm3, %v997_v4, %v3653_v59  ;;  %v1779_v23 = vor.u32 8388608, %v1778_v14  ;;  %v2061_v7 = vcvt.s32.f32 %v2054_v40 }
 0x23c   : > { %v1248_v25 = vsel %vm1246_vm2, %v1247_v3, %v2480_v60  ;;  %v2059_v57 = vand.u32 2147483647, %v2058_v35  ;;  %v999_v54 = vadd.s32 %v998_v38, %v994_v36  ;;  %v1784_v42 = vshrl.u32 %v1783_v10, 5 }
 0x23d   : > { %v1245_v20 = vsel %vm1243_vm1, %v2478_v28, %v1244_v19  ;;  %v1789_v52 = vshrl.u32 %v2520_v49, %v1786_v27  ;;  %v1792_v9 = vshrl.u32 %v2521_v51, %v1786_v27  ;;  %v1795_v41 = vshrl.u32 %v2522_v53, %v1786_v27 }
 0x23e   : > { %v1249_v39 = vsel %vm1242_vm15, %v1245_v20, %v1248_v25  ;;  %v2062_v13 = vmul.f32 %v2061_v7, %v2059_v57  ;;  %v1000_v43 = vadd.s32 536870912, %v999_v54  ;;  %v1788_v17 = vshll.u32 %v2519_v45, %v1785_v21 }
 0x23f   : > { %v1250_v44 = vsel %vm1239_vm14, nan, %v1249_v39  ;;  %v1791_v46 = vshll.u32 %v2520_v49, %v1785_v21  ;;  %v1794_v16 = vshll.u32 %v2521_v51, %v1785_v21  ;;  %v1797_v47 = vshll.u32 %v2522_v53, %v1785_v21 }
 0x240   : > { %2091 = vst.msk [vmem:[%s2876_s28 + $0x38] sm:$0xff] %vm2083_vm0, %v1250_v44  ;;  %v2063_v30 = vxor.u32 2147483648, %v2062_v13  ;;  %v3692_v29 = vshrl.u32 %v1000_v43, 30  ;;  %v1798_v58 = vshrl.u32 %v2523_v55, %v1786_v27  ;;  %v1790_v2 = vor.u32 %v1789_v52, %v1788_v17 }
 0x241   : > { %v1793_v18 = vor.u32 %v1792_v9, %v1791_v46  ;;  %v1800_v11 = vshll.u32 %v2523_v55, %v1785_v21  ;;  %v1801_v56 = vshrl.u32 %v2524_v62, %v1786_v27  ;;  %v1796_v32 = vor.u32 %v1795_v41, %v1794_v16 }
 0x242   : > { %v2064_v49 = vsel %vm1981_vm11, %v2063_v30, %v2062_v13  ;;  %v1002_v51 = vshll.u32 %v3692_v29, 30  ;;  %v1799_v26 = vor.u32 %v1798_v58, %v1797_v47  ;;  %v2068_v53 = vsel %vm3670_vm4, 0, %v2066_v6 }
 0x243   : > { %v2067_v48 = vsel %vm3670_vm4, %v3451_v0, %v2064_v49  ;;  %v1802_v24 = vor.u32 %v1801_v56, %v1800_v11  ;;  %vm1803_vm5 = vcmp.lt.s32.totalorder %v1784_v42, 1  ;;  %v1819_v55 = vshll.u32 %v1779_v23, 8 }
 0x244   : > { %2481 = vcosq.f32 %v2067_v48  ;;  %v1003_v59 = vsub.s32 %v999_v54, %v1002_v51  ;;  %v1787_v62 = vshrl.u32 %v2519_v45, %v1786_v27  ;;  %vm1806_vm6 = vcmp.lt.s32.totalorder %v1784_v42, 4 }
 0x245   : > { %2483 = vsinq.f32 %v2067_v48  ;;  %v1811_v50 = vsel %vm1803_vm5, %v1790_v2, %v1793_v18  ;;  %vm1805_vm7 = vcmp.lt.s32.totalorder %v1784_v42, 3  ;;  %v1808_v8 = vsel %vm1806_vm6, %v1796_v32, 2102212464 }
 0x246   : > { %v1005_v37 = vsub.s32 0, %v1003_v59  ;;  %v1812_v5 = vsel %vm1806_vm6, %v1799_v26, 920167782  ;;  %vm1804_vm8 = vcmp.lt.s32.totalorder %v1784_v42, 2  ;;  %v1815_v14 = vsel %vm1803_vm5, %v1793_v18, %v1796_v32 }
 0x247   : > { %v1813_v1 = vsel %vm1805_vm7, %v1796_v32, %v1812_v5  ;;  %v1816_v10 = vsel %vm1806_vm6, %v1802_v24, 1326507024  ;;  %v1807_v61 = vsel %vm1803_vm5, %v1787_v62, %v1790_v2  ;;  %v1809_v4 = vsel %vm1805_vm7, %v1793_v18, %v1808_v8 }
 0x248   : > { %v2252_v40 = vmin.u32 %v1005_v37, %v1003_v59  ;;  %v1814_v21 = vsel %vm1804_vm8, %v1811_v50, %v1813_v1  ;;  %v1817_v28 = vsel %vm1805_vm7, %v1799_v26, %v1816_v10  ;;  %v2072_v35 = vadd.s32 3, %v2068_v53 }
 0x249   : > { %v1818_v60 = vsel %vm1804_vm8, %v1815_v14, %v1817_v28  ;;  %v3709_v3 = vmul.u32.u64.low %v1819_v55, %v1814_v21  ;;  %v3710_v45 = vmul.u32.u64.high %v1819_v55, %v1814_v21, %v3709_v3  ;;  %v1810_v6 = vsel %vm1804_vm8, %v1807_v61, %v1809_v4 }
 0x24a   : > { %v1007_v31 = vclz %v2252_v40  ;;  %v3712_v36 = vmul.u32.u64.low %v1819_v55, %v1818_v60  ;;  %v3713_v27 = vmul.u32.u64.high %v1819_v55, %v1818_v60, %v3712_v36  ;;  %v2073_v23 = vand.u32 3, %v2072_v35 }
 0x24b   : > { %v1829_v38 = vadd.s32 1, %v3710_v45  ;;  %v1826_v57 = vmul.u32 %v1819_v55, %v1810_v6  ;;  %v995_v7 = vadd.s32 %v3652_v22, %v3650_v15  ;;  %vm2071_vm13 = vweird.f32 %v3451_v0 }
 0x24c   : > { %v2253_v19 = vadd.s32 4294967294, %v1007_v31  ;;  %vm1828_vm11 = vc.u32 %v3713_v27, %v3709_v3  ;;  %vm2078_vm12 = vcmp.eq.s32.totalorder %v2073_v23, 2  ;;  %vm2075_vm10 = vcmp.eq.s32.totalorder %v2073_v23, 0 }
 0x24d   : > { %v1830_v52 = vsel %vm1828_vm11, %v1829_v38, %v3710_v45  ;;  %vm2074_vm14 = vcmp.lt.s32.totalorder %v2073_v23, 2  ;;  %vm941_vm15 = vcmp.lt.s32.totalorder %v3563_v34, 0  ;;  %v1025_v53 = vsub.s32 4, %v3692_v29 }
 0x24e   : > { %vm2254_vm9 = vcmp.lt.s32.totalorder %v2253_v19, 0  ;;  %v1831_v39 = vadd.s32 %v1830_v52, %v1826_v57  ;;  %vm940_vm1 = vcmp.le.f32.partialorder %v939_v63, 0.7853982  ;;  %v1827_v5 = vadd.s32 %v3709_v3, %v3713_v27 }
 0x24f   : > { %v1010_v25 = vsel %vm2254_vm9, 0, %v2253_v19  ;;  %v1026_v62 = vsel %vm941_vm15, %v1025_v53, %v3692_v29  ;;  %vm1031_vm6 = vweird.f32 %v3563_v34  ;;  %vm1773_vm7 = vcmp.lt.s32.totalorder %v3580_v33, 0 }
 0x250   : > { %v1011_v54 = vsub.s32 32, %v1010_v25  ;;  %v1015_v20 = vsub.s32 4294967266, %v1010_v25  ;;  %v1012_v43 = vshll.u32 %v1003_v59, %v1010_v25  ;;  %v1832_v46 = vadd.s32 536870912, %v1831_v39 }
 0x251   : > { %v2482_v9 = vpop.eup %2481  ;;  %v1028_v37 = vsel %vm940_vm1, 0, %v1026_v62  ;;  %vm1772_vm8 = vcmp.le.f32.partialorder %v1771_v12, 0.7853982 }
 0x252   : > { %v2484_v13 = vpop.eup %2483  ;;  %v2079_v42 = vxor.u32 2147483648, %v2482_v9  ;;  %v1013_v41 = vshrl.u32 %v995_v7, %v1011_v54  ;;  %v1016_v44 = vadd.s32 127, %v1015_v20  ;;  %v1833_v22 = vshrl.u32 %v1832_v46, 30 }
 0x253   : > { %v2076_v17 = vxor.u32 2147483648, %v2484_v13  ;;  %v1032_v10 = vadd.s32 3, %v1028_v37 }
 0x254   : > { %v2080_v16 = vsel %vm2078_vm12, %v2079_v42, %v2484_v13  ;;  %v1014_v30 = vor.u32 %v1013_v41, %v1012_v43  ;;  %v1017_v47 = vshll.u32 %v1016_v44, 23  ;;  %v1834_v11 = vshll.u32 %v1833_v22, 30 }
 0x255   : > { %v2077_v15 = vsel %vm2075_vm10, %v2482_v9, %v2076_v17  ;;  %v1033_v4 = vand.u32 3, %v1032_v10  ;;  %v1857_v25 = vsub.s32 4, %v1833_v22  ;;  %vm1863_vm10 = vweird.f32 %v3580_v33 }
 0x256   : > { %v2081_v58 = vsel %vm2074_vm14, %v2077_v15, %v2080_v16  ;;  %v1018_v2 = vor.u32 4788187, %v1017_v47  ;;  %v1021_v49 = vcvt.s32.f32 %v1014_v30  ;;  %v1835_v51 = vsub.s32 %v1831_v39, %v1834_v11 }
 0x257   : > { %v2082_v18 = vsel %vm2071_vm13, nan, %v2081_v58  ;;  %vm1038_vm3 = vcmp.eq.s32.totalorder %v1033_v4, 2  ;;  %vm1035_vm4 = vcmp.eq.s32.totalorder %v1033_v4, 0  ;;  %vm1034_vm5 = vcmp.lt.s32.totalorder %v1033_v4, 2 }
 0x258   : > { %2099 = vst.msk [vmem:[%s2876_s28 + $0x78] sm:$0xff] %vm2083_vm0, %v2082_v18  ;;  %v1019_v56 = vand.u32 2147483647, %v1018_v2  ;;  %v1837_v26 = vsub.s32 0, %v1835_v51  ;;  %v1858_v20 = vsel %vm1773_vm7, %v1857_v25, %v1833_v22 }
 0x259   : > { %v1860_v52 = vsel %vm1772_vm8, 0, %v1858_v20 }
 0x25a   : > { %v1022_v32 = vmul.f32 %v1021_v49, %v1019_v56  ;;  %v2284_v24 = vmin.u32 %v1837_v26, %v1835_v51  ;;  %v1864_v9 = vadd.s32 3, %v1860_v52 }
 0x25c   : > { %v1023_v48 = vxor.u32 2147483648, %v1022_v32  ;;  %v1839_v55 = vclz %v2284_v24 }
 0x25e   : > { %v1024_v0 = vsel %vm941_vm15, %v1023_v48, %v1022_v32  ;;  %v2285_v50 = vadd.s32 4294967294, %v1839_v55 }
 0x25f   : > { %v1027_v59 = vsel %vm940_vm1, %v3563_v34, %v1024_v0  ;;  %v1865_v34 = vand.u32 3, %v1864_v9 }
 0x260   : > { %2485 = vcosq.f32 %v1027_v59  ;;  %vm2286_vm2 = vcmp.lt.s32.totalorder %v2285_v50, 0 }
 0x261   : > { %2487 = vsinq.f32 %v1027_v59  ;;  %v1842_v8 = vsel %vm2286_vm2, 0, %v2285_v50  ;;  %vm1870_vm9 = vcmp.eq.s32.totalorder %v1865_v34, 2  ;;  %vm1867_vm11 = vcmp.eq.s32.totalorder %v1865_v34, 0 }
 0x262   : > { %v1843_v1 = vsub.s32 32, %v1842_v8  ;;  %v1847_v14 = vsub.s32 4294967266, %v1842_v8  ;;  %v1844_v40 = vshll.u32 %v1835_v51, %v1842_v8  ;;  %vm1866_vm12 = vcmp.lt.s32.totalorder %v1865_v34, 2 }
 0x264   : > { %v1845_v61 = vshrl.u32 %v1827_v5, %v1843_v1  ;;  %v1848_v63 = vadd.s32 127, %v1847_v14 }
 0x266   : > { %v1846_v21 = vor.u32 %v1845_v61, %v1844_v40  ;;  %v1849_v28 = vshll.u32 %v1848_v63, 23 }
 0x268   : > { %v1850_v60 = vor.u32 4788187, %v1849_v28  ;;  %v1853_v29 = vcvt.s32.f32 %v1846_v21 }
 0x26a   : > { %v1851_v31 = vand.u32 2147483647, %v1850_v60 }
 0x26c   : > { %v1854_v6 = vmul.f32 %v1853_v29, %v1851_v31 }
 0x26d   : > { %v2486_v45 = vpop.eup %2485 }
 0x26e   : > { %v2488_v35 = vpop.eup %2487  ;;  %v1039_v36 = vxor.u32 2147483648, %v2486_v45  ;;  %v1855_v38 = vxor.u32 2147483648, %v1854_v6 }
 0x26f   : > { %v1036_v19 = vxor.u32 2147483648, %v2488_v35 }
 0x270   : > { %v1040_v3 = vsel %vm1038_vm3, %v1039_v36, %v2488_v35  ;;  %v1856_v7 = vsel %vm1773_vm7, %v1855_v38, %v1854_v6 }
 0x271   : > { %v1037_v27 = vsel %vm1035_vm4, %v2486_v45, %v1036_v19  ;;  %v1859_v54 = vsel %vm1772_vm8, %v3580_v33, %v1856_v7 }
 0x272   : > { %v1041_v23 = vsel %vm1034_vm5, %v1037_v27, %v1040_v3  ;;  %2489 = vcosq.f32 %v1859_v54 }
 0x273   : > { %v1042_v57 = vsel %vm1031_vm6, nan, %v1041_v23  ;;  %2491 = vsinq.f32 %v1859_v54 }
 0x274   : > { %2089 = vst.msk [vmem:[%s2876_s28 + $0x28] sm:$0xff] %vm2083_vm0, %v1042_v57 }
 0x27f   : > { %v2490_v39 = vpop.eup %2489 }
 0x280   : > { %v2492_v13 = vpop.eup %2491  ;;  %v1871_v42 = vxor.u32 2147483648, %v2490_v39 }
 0x281   : > { %v1868_v43 = vxor.u32 2147483648, %v2492_v13 }
 0x282   : > { %v1872_v41 = vsel %vm1870_vm9, %v1871_v42, %v2492_v13 }
 0x283   : > { %v1869_v12 = vsel %vm1867_vm11, %v2490_v39, %v1868_v43 }
 0x284   : > { %v1873_v44 = vsel %vm1866_vm12, %v1869_v12, %v1872_v41 }
 0x285   : > { %v1874_v17 = vsel %vm1863_vm10, nan, %v1873_v44 }
 0x286   : > { %2097 = vst.msk [vmem:[%s2876_s28 + $0x68] sm:$0xff] %vm2083_vm0, %v1874_v17 }
 0x287 PF: > { %s13_s14 = sadd.s32 1, %s2517_s14   ;;  %s3782_s12 = smov %s2513_s13 }
 0x288   : > { %p10_p5 = scmp.ge.s32.totalorder %s13_s14, 4   ;;  %s3783_s13 = smov %s3785_s15 }
 0x28a   :  { %12 = sbr.rel (!%p10_p5) target bundleno = 2 (0x2), region = 68 }

</bundles_post_ra>
